<compile_context>
chip_gen: v7x
topology: tpu7x:2x2x1
jax: 0.10.0
libtpu: 0.0.40
codegen_flags: <defaults>
</compile_context>

<pallas_src>
import functools

import numpy as np
import jax
import jax.numpy as jnp
from jax.experimental import pallas as pl
from jax.experimental.pallas import tpu as pltpu


def _round_up(x, m):
    return ((x + m - 1) // m) * m


# -----------------------------------------------------------------------------
# Coordinate helpers.
# PyTorch: np.dstack(np.meshgrid(np.linspace(0,1,h), np.linspace(0,1,w)))
#   -> coords (w, h, 2) with coords[i, j] = (j/(h-1), i/(w-1)).
# Flattened pixel p = i*h + j  =>  x0[p] = linspace(0,1,h)[p % h],
#                                  x1[p] = linspace(0,1,w)[p // h].
# -----------------------------------------------------------------------------
def get_coords(h, w):
    """Numpy version (used by the float64 reference)."""
    coords = np.dstack(np.meshgrid(np.linspace(0, 1, h), np.linspace(0, 1, w)))
    return coords.astype(np.float32)                       # (w, h, 2)


def _get_coords_flat(h, w):
    """Device-side (jnp) feature-major flattened coords: two (1, w*h) planes."""
    jj = jnp.linspace(0.0, 1.0, h, dtype=jnp.float32)      # column coordinate
    ii = jnp.linspace(0.0, 1.0, w, dtype=jnp.float32)      # row coordinate
    x0 = jnp.tile(jj, (w,)).reshape(1, w * h)
    x1 = jnp.repeat(ii, h).reshape(1, w * h)
    return x0, x1


def _pick_tile_n(n):
    """Large tiles amortize grid-step overhead; cap at 512 so the fully
    unrolled body stays within the vector register file; keep >= 2 tiles when
    possible so both v7x TensorCores get work (no-op on v5e/v6e)."""
    tile = 512
    if n <= tile:
        tile = max(128, _round_up((n + 1) // 2, 128))
    return tile


# -----------------------------------------------------------------------------
# Kernel: one pixel tile through the whole WIRE network (feature-major).
# -----------------------------------------------------------------------------
def _wire_kernel(x0_ref, x1_ref, w1a_ref, w1b_ref, b1_ref,
                 wa_ref, wb_ref, bb_ref, wfa_ref, wfb_ref, bf_ref,
                 out_ref, *, n_hidden, hp, omega_first, omega_hidden, sigma):
    s2 = sigma * sigma
    x0 = x0_ref[...]                                       # (1, T)
    x1 = x1_ref[...]                                       # (1, T)

    # --- first Gabor layer: real Linear(2 -> Hc) as two broadcast FMAs on the
    #     VPU (a K=2 matmul wastes a full MXU pass for 2 MACs of useful work).
    lin = w1a_ref[...] * x0 + w1b_ref[...] * x1 + b1_ref[...]   # (Hp, T)
    env = jnp.exp(-s2 * lin * lin)
    ph = omega_first * lin
    hr = env * jnp.cos(ph)
    hi = env * jnp.sin(ph)

    # --- hidden Gabor layers.  Complex Linear folded into two stacked real
    #     matmuls:  z = [[wr],[wi]] @ hr + [[-wi],[wr]] @ hi + [br ; bi]
    #     so z[:Hp] = lr, z[Hp:] = li  (Hp is a multiple of 8 -> clean slices).
    #     Fully unrolled; all weights already resident in VMEM.
    for l in range(n_hidden):
        z = (jnp.dot(wa_ref[l], hr, preferred_element_type=jnp.float32)
             + jnp.dot(wb_ref[l], hi, preferred_element_type=jnp.float32)
             + bb_ref[l])                                  # (2*Hp, T)
        lr = z[:hp]
        li = z[hp:]
        # exp(i*w0*z - |s0*z|^2), z = lr + i*li:
        #   magnitude = exp(-w0*li - s0^2*(lr^2+li^2)), phase = w0*lr
        env = jnp.exp(-omega_hidden * li - s2 * (lr * lr + li * li))
        ph = omega_hidden * lr
        hr = env * jnp.cos(ph)
        hi = env * jnp.sin(ph)

    # --- final complex Linear(Hc -> C_out), same stacked-weight trick.
    #     Rows [0:C_out] = real, [C_out:2*C_out] = imag; lane-dense store.
    out = (jnp.dot(wfa_ref[...], hr, preferred_element_type=jnp.float32)
           + jnp.dot(wfb_ref[...], hi, preferred_element_type=jnp.float32)
           + bf_ref[...])
    out_ref[...] = out.astype(out_ref.dtype)


# -----------------------------------------------------------------------------
# Wrapper: weight packing + pallas_call + epilogue.
# -----------------------------------------------------------------------------
def wire_forward(image, params, *, first_omega_0=20.0, hidden_omega_0=20.0,
                 scale=10.0, tile_n=None):
    """WIRE.forward: only the spatial size of `image` is used.  Returns a
    complex64 array of shape (w, h, out_channels), matching PyTorch."""
    (w1, b1, whr, whi, bhr, bhi, wfr, wfi, bfr, bfi) = params
    hc, d_in = w1.shape
    n_hidden = int(whr.shape[0])
    c_out = int(wfr.shape[0])
    assert d_in == 2 and n_hidden >= 1

    h, w = int(image.shape[-2]), int(image.shape[-1])      # get_image_size(image)
    n = w * h
    if tile_n is None:
        tile_n = _pick_tile_n(n)
    assert tile_n % 128 == 0
    n_pad = _round_up(n, tile_n)

    # Padded channel sizes (sublane alignment): Hc -> Hp (mult. of 8),
    # 2*C_out -> Cp (mult. of 8).  Zero padding is exactly neutral: padded
    # activation rows turn into (hr,hi)=(1,0) after the Gabor but multiply
    # zero weight columns in every subsequent layer.
    hp = _round_up(hc, 8)
    cp = _round_up(2 * c_out, 8)
    f32 = jnp.float32

    # ---- on-device coordinate planes (feature-major, lane-dense) ----
    x0, x1 = _get_coords_flat(h, w)                        # (1, n) each
    x0 = jnp.pad(x0.astype(f32), ((0, 0), (0, n_pad - n)))
    x1 = jnp.pad(x1.astype(f32), ((0, 0), (0, n_pad - n)))

    # ---- pack weights (host/XLA side, once per call, ~tens of KB) ----
    w1 = w1.astype(f32)
    w1a = jnp.zeros((hp, 1), f32).at[:hc, 0].set(w1[:, 0])
    w1b = jnp.zeros((hp, 1), f32).at[:hc, 0].set(w1[:, 1])
    b1p = jnp.zeros((hp, 1), f32).at[:hc, 0].set(b1.astype(f32))

    wa = jnp.zeros((n_hidden, 2 * hp, hp), f32)
    wa = wa.at[:, :hc, :hc].set(whr.astype(f32))
    wa = wa.at[:, hp:hp + hc, :hc].set(whi.astype(f32))
    wb = jnp.zeros((n_hidden, 2 * hp, hp), f32)
    wb = wb.at[:, :hc, :hc].set(-whi.astype(f32))
    wb = wb.at[:, hp:hp + hc, :hc].set(whr.astype(f32))
    bb = jnp.zeros((n_hidden, 2 * hp, 1), f32)
    bb = bb.at[:, :hc, 0].set(bhr.astype(f32))
    bb = bb.at[:, hp:hp + hc, 0].set(bhi.astype(f32))

    wfa = jnp.zeros((cp, hp), f32)
    wfa = wfa.at[:c_out, :hc].set(wfr.astype(f32))
    wfa = wfa.at[c_out:2 * c_out, :hc].set(wfi.astype(f32))
    wfb = jnp.zeros((cp, hp), f32)
    wfb = wfb.at[:c_out, :hc].set(-wfi.astype(f32))
    wfb = wfb.at[c_out:2 * c_out, :hc].set(wfr.astype(f32))
    bf = jnp.zeros((cp, 1), f32)
    bf = bf.at[:c_out, 0].set(bfr.astype(f32))
    bf = bf.at[c_out:2 * c_out, 0].set(bfi.astype(f32))

    kernel = functools.partial(
        _wire_kernel, n_hidden=n_hidden, hp=hp,
        omega_first=float(first_omega_0), omega_hidden=float(hidden_omega_0),
        sigma=float(scale))

    # Weights use constant index_maps -> DMA'd into VMEM once, stay resident.
    resident2 = lambda i: (0, 0)
    resident3 = lambda i: (0, 0, 0)

    out = pl.pallas_call(
        kernel,
        out_shape=jax.ShapeDtypeStruct((cp, n_pad), jnp.float32),
        grid=(pl.cdiv(n_pad, tile_n),),
        in_specs=[
            pl.BlockSpec((1, tile_n), lambda i: (0, i)),        # x0 tile
            pl.BlockSpec((1, tile_n), lambda i: (0, i)),        # x1 tile
            pl.BlockSpec((hp, 1), resident2),                   # W1 column 0
            pl.BlockSpec((hp, 1), resident2),                   # W1 column 1
            pl.BlockSpec((hp, 1), resident2),                   # b1
            pl.BlockSpec((n_hidden, 2 * hp, hp), resident3),    # hidden WA
            pl.BlockSpec((n_hidden, 2 * hp, hp), resident3),    # hidden WB
            pl.BlockSpec((n_hidden, 2 * hp, 1), resident3),     # hidden bias
            pl.BlockSpec((cp, hp), resident2),                  # final WA
            pl.BlockSpec((cp, hp), resident2),                  # final WB
            pl.BlockSpec((cp, 1), resident2),                   # final bias
        ],
        out_specs=pl.BlockSpec((cp, tile_n), lambda i: (0, i)), # stacked re/im
        compiler_params=pltpu.CompilerParams(
            dimension_semantics=("parallel",)),   # pixel tiles are independent
    )(x0, x1, w1a, w1b, b1p, wa, wb, bb, wfa, wfb, bf)

    out_c = jax.lax.complex(out[:c_out, :n], out[c_out:2 * c_out, :n])
    return out_c.T.reshape(w, h, c_out)                    # (w, h, C_out) complex64


# -----------------------------------------------------------------------------
# Deterministic torch-style parameter init (complex weights as real/imag pairs).
# -----------------------------------------------------------------------------
def make_wire_params(key, in_channels, out_channels, hidden_channels,
                     hidden_layers, hidden_omega_0):
    hc = int(hidden_channels / np.sqrt(2))

    def unif(k, shape, bound):
        return jax.random.uniform(k, shape, jnp.float32, -bound, bound)

    key, k1, k2 = jax.random.split(key, 3)
    bnd = 1.0 / np.sqrt(in_channels)
    w1 = unif(k1, (hc, in_channels), bnd)                  # first (real) Linear
    b1 = unif(k2, (hc,), bnd)

    whr, whi, bhr, bhi = [], [], [], []
    bnd = 1.0 / np.sqrt(hc)
    for _ in range(hidden_layers):                         # hidden complex Linears
        key, ka, kb, kc, kd = jax.random.split(key, 5)
        whr.append(unif(ka, (hc, hc), bnd))
        whi.append(unif(kb, (hc, hc), bnd))
        bhr.append(unif(kc, (hc,), bnd))
        bhi.append(unif(kd, (hc,), bnd))
    whr, whi = jnp.stack(whr), jnp.stack(whi)
    bhr, bhi = jnp.stack(bhr), jnp.stack(bhi)

    key, ka, kb, kc, kd = jax.random.split(key, 5)         # final complex Linear
    wbnd = np.sqrt(6.0 / hc) / hidden_omega_0              # WIRE-specific init
    wfr = unif(ka, (out_channels, hc), wbnd)
    wfi = unif(kb, (out_channels, hc), wbnd)
    bfr = unif(kc, (out_channels,), bnd)
    bfi = unif(kd, (out_channels,), bnd)

    return (w1, b1, whr, whi, bhr, bhi, wfr, wfi, bfr, bfi), hc


def wire_reference(image_shape, params, *, first_omega_0, hidden_omega_0, scale):
    """Pure numpy (float64/complex128) mirror of the PyTorch forward."""
    p = [np.asarray(t, dtype=np.float64) for t in params]
    (w1, b1, whr, whi, bhr, bhi, wfr, wfi, bfr, bfi) = p
    h, w = int(image_shape[-2]), int(image_shape[-1])
    x = get_coords(h, w).astype(np.float64).reshape(-1, 2)  # (n, 2)

    def gabor(lin, omega_0, sigma_0):
        omega = omega_0 * lin
        s = sigma_0 * lin
        return np.exp(1j * omega - np.abs(s) ** 2)

    x = gabor(x @ w1.T + b1, first_omega_0, scale)           # first (real) layer
    for l in range(whr.shape[0]):                            # hidden complex layers
        W = whr[l] + 1j * whi[l]
        b = bhr[l] + 1j * bhi[l]
        x = gabor(x @ W.T + b, hidden_omega_0, scale)
    out = x @ (wfr + 1j * wfi).T + (bfr + 1j * bfi)          # final complex linear
    return out.reshape(w, h, -1)


if __name__ == "__main__":
    # Small deterministic example consistent with the module:
    #   in_channels=2 (xy coords), hidden_channels=32 -> Hc=22, 2 hidden Gabor
    #   layers, out_channels=3, image spatial size 24 x 16 -> 384 pixels
    #   (auto tile 256 -> 2 grid steps, exercising both the pipeline and v7x).
    in_channels, out_channels = 2, 3
    hidden_channels, hidden_layers = 32, 2
    first_omega_0, hidden_omega_0, scale = 5.0, 5.0, 3.0

    key = jax.random.PRNGKey(0)
    key, kp, ki = jax.random.split(key, 3)
    params, hc = make_wire_params(kp, in_channels, out_channels,
                                  hidden_channels, hidden_layers,
                                  hidden_omega_0)

    # WIRE.forward only consumes the spatial size of `image`.
    image = jax.random.normal(ki, (1, 3, 24, 16), jnp.float32)
    h, w = int(image.shape[-2]), int(image.shape[-1])

    out = wire_forward(image, params, first_omega_0=first_omega_0,
                       hidden_omega_0=hidden_omega_0, scale=scale)
    out = jax.block_until_ready(out)
    assert out.shape == (w, h, out_channels) and out.dtype == jnp.complex64

    ref = wire_reference(image.shape, params, first_omega_0=first_omega_0,
                         hidden_omega_0=hidden_omega_0, scale=scale)
    np.testing.assert_allclose(np.asarray(out.real), ref.real, rtol=3e-3, atol=3e-3)
    np.testing.assert_allclose(np.asarray(out.imag), ref.imag, rtol=3e-3, atol=3e-3)
    print("KERNEL_OK")
</pallas_src>

<mosaic_0001>
module attributes {stable_mosaic.version = 11 : i64} {
  func.func @_wire_kernel(%arg0: i32, %arg1: memref<1x256xf32, #tpu.memory_space<vmem>>, %arg2: memref<1x256xf32, #tpu.memory_space<vmem>>, %arg3: memref<24x1xf32, #tpu.memory_space<vmem>>, %arg4: memref<24x1xf32, #tpu.memory_space<vmem>>, %arg5: memref<24x1xf32, #tpu.memory_space<vmem>>, %arg6: memref<2x48x24xf32, #tpu.memory_space<vmem>>, %arg7: memref<2x48x24xf32, #tpu.memory_space<vmem>>, %arg8: memref<2x48x1xf32, #tpu.memory_space<vmem>>, %arg9: memref<8x24xf32, #tpu.memory_space<vmem>>, %arg10: memref<8x24xf32, #tpu.memory_space<vmem>>, %arg11: memref<8x1xf32, #tpu.memory_space<vmem>>, %arg12: memref<8x256xf32, #tpu.memory_space<vmem>>) attributes {dimension_semantics = [#tpu.dimension_semantics<parallel>], iteration_bounds = array<i64: 2>, scalar_prefetch = 0 : i64, scratch_operands = 0 : i64, tpu.core_type = #tpu.core_type<tc>, window_params = [{transform_indices = @transform_0, window_bounds = array<i64: 1, 256>}, {transform_indices = @transform_1, window_bounds = array<i64: 1, 256>}, {pipeline_mode = #tpu.pipeline_mode<synchronous>, transform_indices = @transform_2, window_bounds = array<i64: 24, 1>}, {pipeline_mode = #tpu.pipeline_mode<synchronous>, transform_indices = @transform_3, window_bounds = array<i64: 24, 1>}, {pipeline_mode = #tpu.pipeline_mode<synchronous>, transform_indices = @transform_4, window_bounds = array<i64: 24, 1>}, {pipeline_mode = #tpu.pipeline_mode<synchronous>, transform_indices = @transform_5, window_bounds = array<i64: 2, 48, 24>}, {pipeline_mode = #tpu.pipeline_mode<synchronous>, transform_indices = @transform_6, window_bounds = array<i64: 2, 48, 24>}, {pipeline_mode = #tpu.pipeline_mode<synchronous>, transform_indices = @transform_7, window_bounds = array<i64: 2, 48, 1>}, {pipeline_mode = #tpu.pipeline_mode<synchronous>, transform_indices = @transform_8, window_bounds = array<i64: 8, 24>}, {pipeline_mode = #tpu.pipeline_mode<synchronous>, transform_indices = @transform_9, window_bounds = array<i64: 8, 24>}, {pipeline_mode = #tpu.pipeline_mode<synchronous>, transform_indices = @transform_10, window_bounds = array<i64: 8, 1>}, {transform_indices = @transform_11, window_bounds = array<i64: 8, 256>}]} {
    %c0 = arith.constant 0 : index
    %c0_0 = arith.constant 0 : index
    %0 = vector.load %arg1[%c0, %c0_0] : memref<1x256xf32, #tpu.memory_space<vmem>>, vector<1x256xf32>
    %c0_1 = arith.constant 0 : index
    %c0_2 = arith.constant 0 : index
    %1 = vector.load %arg2[%c0_1, %c0_2] : memref<1x256xf32, #tpu.memory_space<vmem>>, vector<1x256xf32>
    %c0_3 = arith.constant 0 : index
    %c0_4 = arith.constant 0 : index
    %2 = vector.load %arg3[%c0_3, %c0_4] : memref<24x1xf32, #tpu.memory_space<vmem>>, vector<24x1xf32>
    %3 = vector.broadcast %2 : vector<24x1xf32> to vector<24x256xf32>
    %4 = vector.broadcast %0 : vector<1x256xf32> to vector<24x256xf32>
    %5 = arith.mulf %3, %4 : vector<24x256xf32>
    %c0_5 = arith.constant 0 : index
    %c0_6 = arith.constant 0 : index
    %6 = vector.load %arg4[%c0_5, %c0_6] : memref<24x1xf32, #tpu.memory_space<vmem>>, vector<24x1xf32>
    %7 = vector.broadcast %6 : vector<24x1xf32> to vector<24x256xf32>
    %8 = vector.broadcast %1 : vector<1x256xf32> to vector<24x256xf32>
    %9 = arith.mulf %7, %8 : vector<24x256xf32>
    %10 = arith.addf %5, %9 : vector<24x256xf32>
    %c0_7 = arith.constant 0 : index
    %c0_8 = arith.constant 0 : index
    %11 = vector.load %arg5[%c0_7, %c0_8] : memref<24x1xf32, #tpu.memory_space<vmem>>, vector<24x1xf32>
    %12 = vector.broadcast %11 : vector<24x1xf32> to vector<24x256xf32>
    %13 = arith.addf %10, %12 : vector<24x256xf32>
    %cst = arith.constant -9.000000e+00 : f32
    %14 = vector.broadcast %cst : f32 to vector<24x256xf32>
    %15 = arith.mulf %14, %13 : vector<24x256xf32>
    %16 = arith.mulf %15, %13 : vector<24x256xf32>
    %17 = math.exp %16 : vector<24x256xf32>
    %cst_9 = arith.constant 5.000000e+00 : f32
    %18 = vector.broadcast %cst_9 : f32 to vector<24x256xf32>
    %19 = arith.mulf %18, %13 : vector<24x256xf32>
    %20 = math.cos %19 : vector<24x256xf32>
    %21 = arith.mulf %17, %20 : vector<24x256xf32>
    %22 = math.sin %19 : vector<24x256xf32>
    %23 = arith.mulf %17, %22 : vector<24x256xf32>
    %c0_10 = arith.constant 0 : index
    %c0_11 = arith.constant 0 : index
    %c0_12 = arith.constant 0 : index
    %24 = vector.load %arg6[%c0_10, %c0_11, %c0_12] : memref<2x48x24xf32, #tpu.memory_space<vmem>>, vector<1x48x24xf32>
    %25 = vector.shape_cast %24 : vector<1x48x24xf32> to vector<48x24xf32>
    %cst_13 = arith.constant dense<0.000000e+00> : vector<48x256xf32>
    %26 = tpu.matmul %25, %21, %cst_13 {dimension_numbers = #tpu.dot_dimension_numbers<[1], [0], [0], [1], [0, 0, 1, 1], [], []>} : vector<48x24xf32>, vector<24x256xf32>, vector<48x256xf32> -> vector<48x256xf32>
    %c0_14 = arith.constant 0 : index
    %c0_15 = arith.constant 0 : index
    %c0_16 = arith.constant 0 : index
    %27 = vector.load %arg7[%c0_14, %c0_15, %c0_16] : memref<2x48x24xf32, #tpu.memory_space<vmem>>, vector<1x48x24xf32>
    %28 = vector.shape_cast %27 : vector<1x48x24xf32> to vector<48x24xf32>
    %cst_17 = arith.constant dense<0.000000e+00> : vector<48x256xf32>
    %29 = tpu.matmul %28, %23, %cst_17 {dimension_numbers = #tpu.dot_dimension_numbers<[1], [0], [0], [1], [0, 0, 1, 1], [], []>} : vector<48x24xf32>, vector<24x256xf32>, vector<48x256xf32> -> vector<48x256xf32>
    %30 = arith.addf %26, %29 : vector<48x256xf32>
    %c0_18 = arith.constant 0 : index
    %c0_19 = arith.constant 0 : index
    %c0_20 = arith.constant 0 : index
    %31 = vector.load %arg8[%c0_18, %c0_19, %c0_20] : memref<2x48x1xf32, #tpu.memory_space<vmem>>, vector<1x48x1xf32>
    %32 = vector.shape_cast %31 : vector<1x48x1xf32> to vector<48x1xf32>
    %33 = vector.broadcast %32 : vector<48x1xf32> to vector<48x256xf32>
    %34 = arith.addf %30, %33 : vector<48x256xf32>
    %35 = vector.extract_strided_slice %34 {offsets = [0, 0], sizes = [24, 256], strides = [1, 1]} : vector<48x256xf32> to vector<24x256xf32>
    %36 = vector.extract_strided_slice %34 {offsets = [24, 0], sizes = [24, 256], strides = [1, 1]} : vector<48x256xf32> to vector<24x256xf32>
    %cst_21 = arith.constant -5.000000e+00 : f32
    %37 = vector.broadcast %cst_21 : f32 to vector<24x256xf32>
    %38 = arith.mulf %37, %36 : vector<24x256xf32>
    %39 = arith.mulf %35, %35 : vector<24x256xf32>
    %40 = arith.mulf %36, %36 : vector<24x256xf32>
    %41 = arith.addf %39, %40 : vector<24x256xf32>
    %cst_22 = arith.constant 9.000000e+00 : f32
    %42 = vector.broadcast %cst_22 : f32 to vector<24x256xf32>
    %43 = arith.mulf %42, %41 : vector<24x256xf32>
    %44 = arith.subf %38, %43 : vector<24x256xf32>
    %45 = math.exp %44 : vector<24x256xf32>
    %cst_23 = arith.constant 5.000000e+00 : f32
    %46 = vector.broadcast %cst_23 : f32 to vector<24x256xf32>
    %47 = arith.mulf %46, %35 : vector<24x256xf32>
    %48 = math.cos %47 : vector<24x256xf32>
    %49 = arith.mulf %45, %48 : vector<24x256xf32>
    %50 = math.sin %47 : vector<24x256xf32>
    %51 = arith.mulf %45, %50 : vector<24x256xf32>
    %c1 = arith.constant 1 : index
    %c0_24 = arith.constant 0 : index
    %c0_25 = arith.constant 0 : index
    %52 = vector.load %arg6[%c1, %c0_24, %c0_25] : memref<2x48x24xf32, #tpu.memory_space<vmem>>, vector<1x48x24xf32>
    %53 = vector.shape_cast %52 : vector<1x48x24xf32> to vector<48x24xf32>
    %cst_26 = arith.constant dense<0.000000e+00> : vector<48x256xf32>
    %54 = tpu.matmul %53, %49, %cst_26 {dimension_numbers = #tpu.dot_dimension_numbers<[1], [0], [0], [1], [0, 0, 1, 1], [], []>} : vector<48x24xf32>, vector<24x256xf32>, vector<48x256xf32> -> vector<48x256xf32>
    %c1_27 = arith.constant 1 : index
    %c0_28 = arith.constant 0 : index
    %c0_29 = arith.constant 0 : index
    %55 = vector.load %arg7[%c1_27, %c0_28, %c0_29] : memref<2x48x24xf32, #tpu.memory_space<vmem>>, vector<1x48x24xf32>
    %56 = vector.shape_cast %55 : vector<1x48x24xf32> to vector<48x24xf32>
    %cst_30 = arith.constant dense<0.000000e+00> : vector<48x256xf32>
    %57 = tpu.matmul %56, %51, %cst_30 {dimension_numbers = #tpu.dot_dimension_numbers<[1], [0], [0], [1], [0, 0, 1, 1], [], []>} : vector<48x24xf32>, vector<24x256xf32>, vector<48x256xf32> -> vector<48x256xf32>
    %58 = arith.addf %54, %57 : vector<48x256xf32>
    %c1_31 = arith.constant 1 : index
    %c0_32 = arith.constant 0 : index
    %c0_33 = arith.constant 0 : index
    %59 = vector.load %arg8[%c1_31, %c0_32, %c0_33] : memref<2x48x1xf32, #tpu.memory_space<vmem>>, vector<1x48x1xf32>
    %60 = vector.shape_cast %59 : vector<1x48x1xf32> to vector<48x1xf32>
    %61 = vector.broadcast %60 : vector<48x1xf32> to vector<48x256xf32>
    %62 = arith.addf %58, %61 : vector<48x256xf32>
    %63 = vector.extract_strided_slice %62 {offsets = [0, 0], sizes = [24, 256], strides = [1, 1]} : vector<48x256xf32> to vector<24x256xf32>
    %64 = vector.extract_strided_slice %62 {offsets = [24, 0], sizes = [24, 256], strides = [1, 1]} : vector<48x256xf32> to vector<24x256xf32>
    %cst_34 = arith.constant -5.000000e+00 : f32
    %65 = vector.broadcast %cst_34 : f32 to vector<24x256xf32>
    %66 = arith.mulf %65, %64 : vector<24x256xf32>
    %67 = arith.mulf %63, %63 : vector<24x256xf32>
    %68 = arith.mulf %64, %64 : vector<24x256xf32>
    %69 = arith.addf %67, %68 : vector<24x256xf32>
    %cst_35 = arith.constant 9.000000e+00 : f32
    %70 = vector.broadcast %cst_35 : f32 to vector<24x256xf32>
    %71 = arith.mulf %70, %69 : vector<24x256xf32>
    %72 = arith.subf %66, %71 : vector<24x256xf32>
    %73 = math.exp %72 : vector<24x256xf32>
    %cst_36 = arith.constant 5.000000e+00 : f32
    %74 = vector.broadcast %cst_36 : f32 to vector<24x256xf32>
    %75 = arith.mulf %74, %63 : vector<24x256xf32>
    %76 = math.cos %75 : vector<24x256xf32>
    %77 = arith.mulf %73, %76 : vector<24x256xf32>
    %78 = math.sin %75 : vector<24x256xf32>
    %79 = arith.mulf %73, %78 : vector<24x256xf32>
    %c0_37 = arith.constant 0 : index
    %c0_38 = arith.constant 0 : index
    %80 = vector.load %arg9[%c0_37, %c0_38] : memref<8x24xf32, #tpu.memory_space<vmem>>, vector<8x24xf32>
    %cst_39 = arith.constant dense<0.000000e+00> : vector<8x256xf32>
    %81 = tpu.matmul %80, %77, %cst_39 {dimension_numbers = #tpu.dot_dimension_numbers<[1], [0], [0], [1], [0, 0, 1, 1], [], []>} : vector<8x24xf32>, vector<24x256xf32>, vector<8x256xf32> -> vector<8x256xf32>
    %c0_40 = arith.constant 0 : index
    %c0_41 = arith.constant 0 : index
    %82 = vector.load %arg10[%c0_40, %c0_41] : memref<8x24xf32, #tpu.memory_space<vmem>>, vector<8x24xf32>
    %cst_42 = arith.constant dense<0.000000e+00> : vector<8x256xf32>
    %83 = tpu.matmul %82, %79, %cst_42 {dimension_numbers = #tpu.dot_dimension_numbers<[1], [0], [0], [1], [0, 0, 1, 1], [], []>} : vector<8x24xf32>, vector<24x256xf32>, vector<8x256xf32> -> vector<8x256xf32>
    %84 = arith.addf %81, %83 : vector<8x256xf32>
    %c0_43 = arith.constant 0 : index
    %c0_44 = arith.constant 0 : index
    %85 = vector.load %arg11[%c0_43, %c0_44] : memref<8x1xf32, #tpu.memory_space<vmem>>, vector<8x1xf32>
    %86 = vector.broadcast %85 : vector<8x1xf32> to vector<8x256xf32>
    %87 = arith.addf %84, %86 : vector<8x256xf32>
    %c0_45 = arith.constant 0 : index
    %c0_46 = arith.constant 0 : index
    %88 = vector.load %arg12[%c0_45, %c0_46] : memref<8x256xf32, #tpu.memory_space<vmem>>, vector<8x256xf32>
    tpu.vector_store %arg12[%c0_45, %c0_46], %87 {strides = array<i32>} : memref<8x256xf32, #tpu.memory_space<vmem>>, vector<8x256xf32>,
    return
  }
  func.func @transform_0(%arg0: i32) -> (i32, i32) {
    %c0_i32 = arith.constant 0 : i32
    %c0_i32_0 = arith.constant 0 : i32
    return %c0_i32, %arg0 : i32, i32
  }
  func.func @transform_1(%arg0: i32) -> (i32, i32) {
    %c0_i32 = arith.constant 0 : i32
    %c0_i32_0 = arith.constant 0 : i32
    return %c0_i32, %arg0 : i32, i32
  }
  func.func @transform_2(%arg0: i32) -> (i32, i32) {
    %c0_i32 = arith.constant 0 : i32
    %c0_i32_0 = arith.constant 0 : i32
    %c0_i32_1 = arith.constant 0 : i32
    return %c0_i32, %c0_i32_0 : i32, i32
  }
  func.func @transform_3(%arg0: i32) -> (i32, i32) {
    %c0_i32 = arith.constant 0 : i32
    %c0_i32_0 = arith.constant 0 : i32
    %c0_i32_1 = arith.constant 0 : i32
    return %c0_i32, %c0_i32_0 : i32, i32
  }
  func.func @transform_4(%arg0: i32) -> (i32, i32) {
    %c0_i32 = arith.constant 0 : i32
    %c0_i32_0 = arith.constant 0 : i32
    %c0_i32_1 = arith.constant 0 : i32
    return %c0_i32, %c0_i32_0 : i32, i32
  }
  func.func @transform_5(%arg0: i32) -> (i32, i32, i32) {
    %c0_i32 = arith.constant 0 : i32
    %c0_i32_0 = arith.constant 0 : i32
    %c0_i32_1 = arith.constant 0 : i32
    %c0_i32_2 = arith.constant 0 : i32
    return %c0_i32, %c0_i32_0, %c0_i32_1 : i32, i32, i32
  }
  func.func @transform_6(%arg0: i32) -> (i32, i32, i32) {
    %c0_i32 = arith.constant 0 : i32
    %c0_i32_0 = arith.constant 0 : i32
    %c0_i32_1 = arith.constant 0 : i32
    %c0_i32_2 = arith.constant 0 : i32
    return %c0_i32, %c0_i32_0, %c0_i32_1 : i32, i32, i32
  }
  func.func @transform_7(%arg0: i32) -> (i32, i32, i32) {
    %c0_i32 = arith.constant 0 : i32
    %c0_i32_0 = arith.constant 0 : i32
    %c0_i32_1 = arith.constant 0 : i32
    %c0_i32_2 = arith.constant 0 : i32
    return %c0_i32, %c0_i32_0, %c0_i32_1 : i32, i32, i32
  }
  func.func @transform_8(%arg0: i32) -> (i32, i32) {
    %c0_i32 = arith.constant 0 : i32
    %c0_i32_0 = arith.constant 0 : i32
    %c0_i32_1 = arith.constant 0 : i32
    return %c0_i32, %c0_i32_0 : i32, i32
  }
  func.func @transform_9(%arg0: i32) -> (i32, i32) {
    %c0_i32 = arith.constant 0 : i32
    %c0_i32_0 = arith.constant 0 : i32
    %c0_i32_1 = arith.constant 0 : i32
    return %c0_i32, %c0_i32_0 : i32, i32
  }
  func.func @transform_10(%arg0: i32) -> (i32, i32) {
    %c0_i32 = arith.constant 0 : i32
    %c0_i32_0 = arith.constant 0 : i32
    %c0_i32_1 = arith.constant 0 : i32
    return %c0_i32, %c0_i32_0 : i32, i32
  }
  func.func @transform_11(%arg0: i32) -> (i32, i32) {
    %c0_i32 = arith.constant 0 : i32
    %c0_i32_0 = arith.constant 0 : i32
    return %c0_i32, %arg0 : i32, i32
  }
}

</mosaic_0001>

<bundles_post_ra>
// kernel: tpu_custom_call.1
= control target key start
LH: loop header
LB: loop body
LE: loop exit
PB: predicated region body
PF: predicated region fallthrough
CT: control target
= control target key end

     0   :  { %s8195_s0 = inlined_call_operand.vmem [shape: f32[1,512], index: 0, kind: input, shape index: {}]   ;;  %s8196_s1 = inlined_call_operand.vmem [shape: f32[1,512], index: 1, kind: input, shape index: {}]   ;;  %s8197_s2 = inlined_call_operand.vmem [shape: f32[24,1], index: 2, kind: input, shape index: {}]   ;;  %s8198_s3 = inlined_call_operand.vmem [shape: f32[24,1], index: 3, kind: input, shape index: {}]   ;;  %s8199_s4 = inlined_call_operand.vmem [shape: f32[24,1], index: 4, kind: input, shape index: {}]   ;;  %s8200_s5 = inlined_call_operand.vmem [shape: f32[2,48,24], index: 5, kind: input, shape index: {}]   ;;  %s8201_s6 = inlined_call_operand.vmem [shape: f32[2,48,24], index: 6, kind: input, shape index: {}]   ;;  %s8202_s7 = inlined_call_operand.vmem [shape: f32[2,48,1], index: 7, kind: input, shape index: {}]   ;;  %s8203_s8 = inlined_call_operand.vmem [shape: f32[8,24], index: 8, kind: input, shape index: {}]   ;;  %s8204_s9 = inlined_call_operand.vmem [shape: f32[8,24], index: 9, kind: input, shape index: {}]   ;;  %s8205_s10 = inlined_call_operand.vmem [shape: f32[8,1], index: 10, kind: input, shape index: {}]   ;;  %s8206_s11 = inlined_call_operand.hbm [shape: f32[8,512], index: 11, kind: output, shape index: {}]  }
   0x1   :  { %8237 = sst [smem:[#allocation7_spill]] %s8195_s0 }
   0x2   :  { %16 = vsyncpa [#allocation3], 0 }
   0x3   :  { %18 = vsyncpa [#allocation3 + $0x1], 0  ;;  %s5859_s17 = smov 0   ;;  %s5861_s18 = smov 0  }
   0x4   :  { %s5863_s19 = smov 0   ;;  %s5865_s20 = smov 0  }
   0x5 LB: > { %s5880_s21 = sadd.s32 4294967295, %s5788_s20   ;;  %s5246_s22 = sadd.s32 4294967294, %s5788_s20   ;;  %s5788_s20 = sphi %s5865_s20, %s8313_s20   ;;  %s5784_s19 = sphi %s5863_s19, %s8312_s19   ;;  %s5780_s18 = sphi %s5861_s18, %s8311_s18   ;;  %s5776_s17 = sphi %s5859_s17, %s8310_s17  }
   0x6   : > { %s5884_s23 = sadd.s32 1, %s5788_s20   ;;  %s272_s24 = sadd.s32 1, %s5784_s19 }
   0x7   : > { %s269_s25 = ssub.s32 %s5788_s20, %s5884_s23  ;;  %p282_p0 = scmp.ne.s32.totalorder %s5784_s19, %s5780_s18 }
   0x8   : > { %p270_p1 = scmp.eq.s32.totalorder %s269_s25, 0  ;;  %p283_p2 = scmp.eq.s32.totalorder %s5880_s21, 1 }
   0x9   : > { %p288_p3 = scmp.ne.s32.totalorder %s5780_s18, %s5776_s17  ;;  %p289_p4 = scmp.eq.s32.totalorder %s5246_s22, 1 }
   0xa   : > { %s5895_s26 = scalar_select %p270_p1, %s5784_s19, %s272_s24  }
   0xb   : > { %p5897_p5 = por %p283_p2, %p282_p0  ;;  %p5901_p6 = por %p289_p4, %p288_p3 }
   0xc   : > { %p5249_p7 = scmp.ge.s32.totalorder %s5788_s20, 1  ;;  %p350_p8 = scmp.lt.s32.totalorder %s5788_s20, 3 }
   0xe   : > { %p351_p9 = pnand %p5249_p7, %p350_p8 }
  0x10   : > { %354 = sbr.rel (%p351_p9) target bundleno = 1448 (0x5a8), region = 64 }
  0x17   : > { %v441_v0 = vld [vmem:[%s8198_s3] sm:$0xff]  ;;  %v5790_v2 = vmov 0   ;;  %v442_v3 = vld [vmem:[%s8198_s3 + $0x8] sm:$0xff]  ;;  %v443_v7 = vld [vmem:[%s8198_s3 + $0x10] sm:$0xff]  ;;  %s5251_s14 = sshll.u32 %s5880_s21, 1  ;;  %v425_v23 = vlaneseq  ;;  %s8240_s0 = sld [smem:[#allocation7_spill]] }
  0x18   : > { %v406_v1 = vld [vmem:[%s8197_s2] sm:$0xff]  ;;  %5617 = vset.pattern.permute.xlu1 %v5790_v2  ;;  %5616 = vset.pattern.permute.xlu0 %v5790_v2  ;;  %v407_v4 = vld [vmem:[%s8197_s2 + $0x8] sm:$0xff]  ;;  %v408_v8 = vld [vmem:[%s8197_s2 + $0x10] sm:$0xff]  ;;  %p394_p10 = scmp.lt.s32.totalorder %s5251_s14, 3  ;;  %s390_s13 = sand.u32 1, %s5780_s18  }
  0x19   : > { %446 = vperm.xlu1 %5617, %v441_v0   ;;  %411 = vperm.xlu0 %5616, %v406_v1   ;;  %v483_v5 = vld [vmem:[%s8199_s4 + $0x8] sm:$0xff]  ;;  %v482_v6 = vld [vmem:[%s8199_s4] sm:$0xff]  ;;  %v484_v10 = vld [vmem:[%s8199_s4 + $0x10] sm:$0xff]  ;;  %v426_v24 = vshrl.u32 %v425_v23, 7  ;;  %s5446_s15 = sshll.u32 %s5880_s21, 8  ;;  %s5167_s30 = scalar_lea.sflag [#allocation3], %s390_s13 }
  0x1a   : > { %v2041_v9 = vld [vmem:[%s8202_s7] sm:$0xff]  ;;  %v2043_v11 = vld [vmem:[%s8202_s7 + $0x10] sm:$0xff]  ;;  %v2042_v12 = vld [vmem:[%s8202_s7 + $0x8] sm:$0xff]  ;;  %s8315_s14 = smov (!%p394_p10, %s5251_s14), 3  ;;  %s5798_s12 = smov [#allocation2]  }
  0x1b   : > { %v2045_v13 = vld [vmem:[%s8202_s7 + $0x20] sm:$0xff]  ;;  %v2044_v14 = vld [vmem:[%s8202_s7 + $0x18] sm:$0xff]  ;;  %v5385_v15 = vld [vmem:[%s8202_s7 + $0x30] sm:$0xff]  ;;  %s401_s22 = scalar_lea.vmem %s8196_s1, %s8315_s14  ;;  %v431_v25 = vsub.s32 1, %v426_v24  ;;  %v427_v26 = vsub.s32 0, %v426_v24 }
  0x1c   : > { %v2046_v16 = vld [vmem:[%s8202_s7 + $0x28] sm:$0xff]  ;;  %v5387_v17 = vld [vmem:[%s8202_s7 + $0x40] sm:$0xff]  ;;  %v5386_v18 = vld [vmem:[%s8202_s7 + $0x38] sm:$0xff] }
  0x1d   : > { %451 = vperm.xlu1 %5617, %v442_v3   ;;  %416 = vperm.xlu0 %5616, %v407_v4   ;;  %v5389_v19 = vld [vmem:[%s8202_s7 + $0x50] sm:$0xff]  ;;  %v5388_v20 = vld [vmem:[%s8202_s7 + $0x48] sm:$0xff]  ;;  %v5156_v21 = vld [vmem:[%s8205_s10] sm:$0xff]  ;;  %s396_s29 = scalar_lea.vmem %s8240_s0, %s8315_s14  ;;  %s5250_s14 = sshll.u32 %s390_s13, 4 }
  0x1e   : > { %v5390_v22 = vld [vmem:[%s8202_s7 + $0x58] sm:$0xff]  ;;  %v405_v27 = vld [vmem:[%s401_s22] sm:$0x3]  ;;  %s392_s16 = scalar_lea.vmem [#allocation2], %s5250_s14  ;;  %s5730_s14 = sshll.u32 %s5798_s12, 4  ;;  %s5731_s14 = int_to_ptr.vmem [resolvable:$false] %s5730_s14 }
  0x1f   : > { %v404_v28 = vld [vmem:[%s396_s29] sm:$0x3]  ;;  %v467_v29 = vrot.slane %v405_v27, %v431_v25  ;;  %v463_v32 = vrot.slane %v405_v27, %v427_v26  ;;  %s5181_s22 = sshll.u32 %s392_s16, 4  ;;  %s8153_s29 = scalar_lea.hbm %s8206_s11, %s5446_s15  ;;  %s8155_s22 = int_to_ptr.vmem [resolvable:$true] %s5181_s22 }
  0x20   : > { %v432_v30 = vrot.slane %v404_v28, %v431_v25  ;;  %v428_v34 = vrot.slane %v404_v28, %v427_v26  ;;  %s5726_s21 = scalar_lea.vmem %s8155_s22, 256  ;;  %s5732_s0 = scalar_lea.vmem %s5731_s14, 512 }
  0x21   : > { %492 = vperm.xlu1 %5617, %v483_v5   ;;  %487 = vperm.xlu0 %5616, %v482_v6   ;;  %p5727_p11 = scmp.ne.s32.totalorder %s8155_s22, %s5726_s21  ;;  %p5733_p0 = scmp.lt.s32.totalorder %s8155_s22, %s5731_s14 }
  0x22   : > { %p5734_p1 = scmp.lt.s32.totalorder %s5732_s0, %s5726_s21 }
  0x23   : > { %p5728_p12 = pnand %p5727_p11, %p5897_p5 }
  0x24   : > { %p5735_p2 = por %p5734_p1, %p5733_p0 }
  0x25   : > { %456 = vperm.xlu1 %5617, %v443_v7   ;;  %421 = vperm.xlu0 %5616, %v408_v8   ;;  %p5729_p13 = pneg %p5728_p12 }
  0x27   : > { %p5736_p3 = pnand %p5735_p2, %p5729_p13 }
  0x29   : > { %2049 = vperm.xlu1 %5617, %v2041_v9   ;;  %497 = vperm.xlu0 %5616, %v484_v10  }
  0x2d   : > { %2059 = vperm.xlu1 %5617, %v2043_v11   ;;  %2054 = vperm.xlu0 %5616, %v2042_v12  }
  0x31   : > { %2069 = vperm.xlu1 %5617, %v2045_v13   ;;  %2064 = vperm.xlu0 %5616, %v2044_v14  }
  0x35   : > { %3658 = vperm.xlu1 %5617, %v5385_v15   ;;  %2074 = vperm.xlu0 %5616, %v2046_v16  }
  0x39   : > { %3668 = vperm.xlu1 %5617, %v5387_v17   ;;  %3663 = vperm.xlu0 %5616, %v5386_v18  }
  0x3d   : > { %3678 = vperm.xlu1 %5617, %v5389_v19   ;;  %3673 = vperm.xlu0 %5616, %v5388_v20  }
  0x41   : > { %5159 = vperm.xlu1 %5617, %v5156_v21   ;;  %3683 = vperm.xlu0 %5616, %v5390_v22  }
  0x98   : > { %v447_v31 = vpop.permute.xlu1 %446  ;;  %v412_v33 = vpop.permute.xlu0 %411 }
  0x99   : > { %v471_v35 = vmul.f32 %v467_v29, %v447_v31  ;;  %v436_v36 = vmul.f32 %v432_v30, %v412_v33  ;;  %v470_v37 = vmul.f32 %v463_v32, %v447_v31  ;;  %v435_v38 = vmul.f32 %v428_v34, %v412_v33 }
  0x9b   : > { %v477_v47 = vadd.f32 %v471_v35, %v436_v36  ;;  %v476_v52 = vadd.f32 %v470_v37, %v435_v38 }
  0x9c   : > { %v452_v39 = vpop.permute.xlu1 %451  ;;  %v417_v40 = vpop.permute.xlu0 %416 }
  0x9d   : > { %v472_v41 = vmul.f32 %v463_v32, %v452_v39  ;;  %v473_v42 = vmul.f32 %v467_v29, %v452_v39  ;;  %v437_v43 = vmul.f32 %v428_v34, %v417_v40  ;;  %v438_v44 = vmul.f32 %v432_v30, %v417_v40 }
  0x9f   : > { %v478_v45 = vadd.f32 %v472_v41, %v437_v43  ;;  %v479_v46 = vadd.f32 %v473_v42, %v438_v44 }
  0xa0   : > { %v493_v48 = vpop.permute.xlu1 %492  ;;  %v488_v49 = vpop.permute.xlu0 %487 }
  0xa1   : > { %v502_v50 = vadd.f32 %v493_v48, %v478_v45  ;;  %v503_v51 = vadd.f32 %v493_v48, %v479_v46  ;;  %v501_v53 = vadd.f32 %v488_v49, %v477_v47  ;;  %v500_v56 = vadd.f32 %v488_v49, %v476_v52 }
  0xa3   : > { %v5980_v54 = vmul.f32 5.0, %v502_v50  ;;  %v5982_v55 = vmul.f32 5.0, %v503_v51  ;;  %v5984_v57 = vmul.f32 5.0, %v501_v53  ;;  %v5989_v61 = vmul.f32 5.0, %v500_v56 }
  0xa4   : > { %v457_v62 = vpop.permute.xlu1 %456  ;;  %v422_v1 = vpop.permute.xlu0 %421  ;;  %v508_v15 = vmul.f32 -9.0, %v502_v50  ;;  %v509_v18 = vmul.f32 -9.0, %v503_v51  ;;  %v506_v21 = vmul.f32 -9.0, %v500_v56  ;;  %v507_v27 = vmul.f32 -9.0, %v501_v53 }
  0xa5   : > { %v745_v58 = vand.u32 2139095040, %v5980_v54  ;;  %v848_v59 = vand.u32 2139095040, %v5982_v55  ;;  %v642_v60 = vand.u32 2139095040, %v5984_v57  ;;  %v474_v4 = vmul.f32 %v463_v32, %v457_v62 }
  0xa6   : > { %v539_v5 = vand.u32 2139095040, %v5989_v61  ;;  %v439_v6 = vmul.f32 %v428_v34, %v422_v1  ;;  %v475_v8 = vmul.f32 %v467_v29, %v457_v62  ;;  %v440_v9 = vmul.f32 %v432_v30, %v422_v1 }
  0xa7   : > { %v746_v63 = vshrl.u32 %v745_v58, 23  ;;  %v643_v0 = vshrl.u32 %v642_v60, 23  ;;  %v849_v2 = vshrl.u32 %v848_v59, 23  ;;  %v514_v23 = vmul.f32 %v508_v15, %v502_v50 }
  0xa8   : > { %v480_v12 = vadd.f32 %v474_v4, %v439_v6  ;;  %v540_v13 = vshrl.u32 %v539_v5, 23  ;;  %v498_v14 = vpop.permute.xlu0 %497  ;;  %v481_v17 = vadd.f32 %v475_v8, %v440_v9  ;;  %v515_v26 = vmul.f32 %v509_v18, %v503_v51 }
  0xa9   : > { %v5257_v3 = vadd.s32 4294967169, %v643_v0  ;;  %v5261_v7 = vadd.s32 4294967169, %v746_v63  ;;  %v5265_v11 = vadd.s32 4294967169, %v849_v2  ;;  %v522_v32 = vmul.f32 1.442695, %v514_v23 }
  0xaa   : > { %v5992_v20 = vadd.f32 %v498_v14, %v480_v12  ;;  %v5253_v22 = vadd.s32 4294967169, %v540_v13  ;;  %v5994_v25 = vadd.f32 %v498_v14, %v481_v17  ;;  %v512_v33 = vmul.f32 %v506_v21, %v500_v56 }
  0xab   : > { %v649_v10 = vadd.s32 1, %v5257_v3  ;;  %v752_v16 = vadd.s32 1, %v5261_v7  ;;  %v855_v19 = vadd.s32 1, %v5265_v11  ;;  %v524_v35 = vmul.f32 1.442695, %v515_v26 }
  0xac   : > { %v5997_v28 = vmul.f32 5.0, %v5992_v20  ;;  %v546_v30 = vadd.s32 1, %v5253_v22  ;;  %v6000_v34 = vmul.f32 5.0, %v5994_v25  ;;  %v513_v37 = vmul.f32 %v507_v27, %v501_v53 }
  0xad   : > { %vm650_vm0 = vcmp.gt.s32.totalorder %v649_v10, 0  ;;  %vm753_vm1 = vcmp.gt.s32.totalorder %v752_v16, 0  ;;  %vm856_vm2 = vcmp.gt.s32.totalorder %v855_v19, 0  ;;  %5618 = vpow2.f32 %v522_v32 }
  0xae   : > { %v651_v24 = vsel %vm650_vm0, %v649_v10, 0  ;;  %v754_v29 = vsel %vm753_vm1, %v752_v16, 0  ;;  %v857_v36 = vsel %vm856_vm2, %v855_v19, 0  ;;  %v951_v39 = vand.u32 2139095040, %v5997_v28 }
  0xaf   : > { %v653_v31 = vand.u32 31, %v651_v24  ;;  %v6002_v38 = vand.u32 31, %v754_v29  ;;  %vm547_vm3 = vcmp.gt.s32.totalorder %v546_v30, 0  ;;  %v6005_v41 = vand.u32 31, %v857_v36 }
  0xb0   : > { %v6007_v42 = vmul.f32 1.442695, %v512_v33  ;;  %v1054_v43 = vand.u32 2139095040, %v6000_v34  ;;  %5620 = vpow2.f32 %v524_v35  ;;  %v6010_v44 = vshrl.u32 %v754_v29, 5 }
  0xb1   : > { %v654_v40 = vsub.s32 32, %v653_v31  ;;  %v6012_v45 = vmul.f32 1.442695, %v513_v37  ;;  %v639_v46 = vand.u32 2147483647, %v5984_v57  ;;  %v6016_v47 = vsub.s32 32, %v6002_v38 }
  0xb2   : > { %v6018_v48 = vshrl.u32 %v857_v36, 5  ;;  %v548_v49 = vsel %vm547_vm3, %v546_v30, 0  ;;  %v952_v50 = vshrl.u32 %v951_v39, 23  ;;  %v8209_v51 = vmov 2102212464  }
  0xb3   : > { %v768_v52 = vshll.u32 %v8209_v51, %v6002_v38  ;;  %v8213_v53 = vmov 2475754826   ;;  %v8211_v58 = vmov 2131351028   ;;  %v8217_v60 = vmov 920167782  }
  0xb4   : > { %v657_v56 = vshrl.u32 %v8213_v53, %v654_v40  ;;  %v660_v59 = vshrl.u32 %v8211_v58, %v654_v40  ;;  %v666_v62 = vshrl.u32 %v8217_v60, %v654_v40  ;;  %v6027_v63 = vshll.u32 %v8217_v60, %v6002_v38 }
  0xb5   : > { %v6030_v0 = vsub.s32 32, %v6005_v41  ;;  %v1055_v1 = vshrl.u32 %v1054_v43, 23  ;;  %v663_v2 = vshrl.u32 %v8209_v51, %v654_v40  ;;  %v6033_v3 = vand.u32 31, %v548_v49 }
  0xb6   : > { %v5795_v4 = vmov 683565275   ;;  %v659_v6 = vshll.u32 %v8213_v53, %v653_v31  ;;  %v665_v7 = vshll.u32 %v8209_v51, %v653_v31  ;;  %v652_v8 = vshrl.u32 %v651_v24, 5 }
  0xb7   : > { %v656_v5 = vshll.u32 %v5795_v4, %v653_v31  ;;  %v5269_v9 = vadd.s32 4294967169, %v952_v50  ;;  %v662_v10 = vshll.u32 %v8211_v58, %v653_v31  ;;  %v8215_v11 = vmov 1326507024   ;;  %v6056_v27 = vpop.eup %5618 }
  0xb8   : > { %v669_v12 = vshrl.u32 %v8215_v11, %v654_v40  ;;  %v646_v13 = vand.u32 8388607, %v639_v46  ;;  %v661_v15 = vor.u32 %v660_v59, %v659_v6  ;;  %v667_v16 = vor.u32 %v666_v62, %v665_v7 }
  0xb9   : > { %v658_v14 = vor.u32 %v657_v56, %v656_v5  ;;  %v6042_v17 = vshrl.u32 %v548_v49, 5  ;;  %v5273_v18 = vadd.s32 4294967169, %v1055_v1  ;;  %v664_v19 = vor.u32 %v663_v2, %v662_v10 }
  0xba   : > { %v668_v21 = vshll.u32 %v8217_v60, %v653_v31  ;;  %v769_v22 = vshrl.u32 %v8217_v60, %v6016_v47  ;;  %v6049_v23 = vshrl.u32 %v8215_v11, %v6016_v47  ;;  %v6052_v24 = vsub.s32 32, %v6033_v3  ;;  %v6058_v31 = vpop.eup %5620 }
  0xbb   : > { %v562_v26 = vshll.u32 %v8209_v51, %v6033_v3  ;;  %v958_v29 = vadd.s32 1, %v5269_v9  ;;  %vm671_vm4 = vcmp.lt.s32.totalorder %v652_v8, 1  ;;  %vm674_vm5 = vcmp.lt.s32.totalorder %v652_v8, 4 }
  0xbc   : > { %v670_v30 = vor.u32 %v669_v12, %v668_v21  ;;  %v647_v32 = vor.u32 8388608, %v646_v13  ;;  %vm673_vm6 = vcmp.lt.s32.totalorder %v652_v8, 3  ;;  %v679_v33 = vsel %vm671_vm4, %v658_v14, %v661_v15 }
  0xbd   : > { %v680_v35 = vsel %vm674_vm5, %v667_v16, 920167782  ;;  %v6064_v36 = vshll.u32 %v8217_v60, %v6033_v3  ;;  %v1061_v37 = vadd.s32 1, %v5273_v18  ;;  %v676_v39 = vsel %vm674_vm5, %v664_v19, 2102212464 }
  0xbe   : > { %v681_v43 = vsel %vm673_vm6, %v664_v19, %v680_v35  ;;  %v6068_v49 = vor.u32 %v769_v22, %v768_v52  ;;  %v655_v50 = vshrl.u32 %v5795_v4, %v654_v40  ;;  %vm672_vm7 = vcmp.lt.s32.totalorder %v652_v8, 2 }
  0xbf   : > { %v683_v56 = vsel %vm671_vm4, %v661_v15, %v664_v19  ;;  %v563_v59 = vshrl.u32 %v8217_v60, %v6052_v24  ;;  %vm959_vm8 = vcmp.gt.s32.totalorder %v958_v29, 0  ;;  %v682_v62 = vsel %vm672_vm7, %v679_v33, %v681_v43 }
  0xc0   : > { %v684_v1 = vsel %vm674_vm5, %v670_v30, 1326507024  ;;  %v675_v2 = vsel %vm671_vm4, %v655_v50, %v658_v14  ;;  %v677_v5 = vsel %vm673_vm6, %v661_v15, %v676_v39  ;;  %v687_v6 = vshll.u32 %v647_v32, 8 }
  0xc1   : > { %v685_v52 = vsel %vm673_vm6, %v667_v16, %v684_v1  ;;  %v773_v40 = vor.u32 %v6049_v23, %v6027_v63  ;;  %v6083_v7 = vshrl.u32 %v8215_v11, %v6052_v24  ;;  %vm1062_vm9 = vcmp.gt.s32.totalorder %v1061_v37, 0 }
  0xc2   : > { %v686_v9 = vsel %vm672_vm7, %v683_v56, %v685_v52  ;;  %v6089_v13 = vmul.u32.u64.low %v687_v6, %v682_v62  ;;  %v6090_v14 = vmul.u32.u64.high %v687_v6, %v682_v62, %v6089_v13  ;;  %v6093_v15 = vor.u32 %v563_v59, %v562_v26 }
  0xc3   : > { %v6086_v10 = vmul.u32.u64.low %v687_v6, %v686_v9  ;;  %v6087_v12 = vmul.u32.u64.high %v687_v6, %v686_v9, %v6086_v10  ;;  %v6095_v16 = vsel %vm959_vm8, %v958_v29, 0  ;;  %v678_v18 = vsel %vm672_vm7, %v675_v2, %v677_v5 }
  0xc4   : > { %v8208_v19 = vand.u32 2147483647, %v5982_v55  ;;  %v6099_v21 = vsel %vm1062_vm9, %v1061_v37, 0  ;;  %v862_v22 = vshll.u32 %v5795_v4, %v6005_v41  ;;  %v863_v30 = vshrl.u32 %v8213_v53, %v6030_v0 }
  0xc5   : > { %v866_v32 = vshrl.u32 %v8211_v58, %v6030_v0  ;;  %v865_v8 = vshll.u32 %v8213_v53, %v6005_v41  ;;  %v868_v29 = vshll.u32 %v8211_v58, %v6005_v41  ;;  %v869_v33 = vshrl.u32 %v8209_v51, %v6030_v0 }
  0xc6   : > { %v852_v26 = vand.u32 8388607, %v8208_v19  ;;  %v694_v35 = vmul.u32 %v687_v6, %v678_v18  ;;  %vm696_vm10 = vc.u32 %v6087_v12, %v6089_v13  ;;  %v697_v37 = vadd.s32 1, %v6090_v14 }
  0xc7   : > { %v864_v39 = vor.u32 %v863_v30, %v862_v22  ;;  %vm777_vm11 = vcmp.lt.s32.totalorder %v6010_v44, 4  ;;  %v867_v43 = vor.u32 %v866_v32, %v865_v8  ;;  %v870_v50 = vor.u32 %v869_v33, %v868_v29 }
  0xc8   : > { %v871_v56 = vshll.u32 %v8209_v51, %v6005_v41  ;;  %v872_v59 = vshrl.u32 %v8217_v60, %v6030_v0  ;;  %v698_v62 = vsel %vm696_vm10, %v697_v37, %v6090_v14  ;;  %v853_v1 = vor.u32 8388608, %v852_v26 }
  0xc9   : > { %v874_v2 = vshll.u32 %v8217_v60, %v6005_v41  ;;  %v875_v5 = vshrl.u32 %v8215_v11, %v6030_v0  ;;  %v699_v52 = vadd.s32 %v698_v62, %v694_v35  ;;  %v861_v6 = vshrl.u32 %v5795_v4, %v6030_v0 }
  0xca   : > { %v873_v9 = vor.u32 %v872_v59, %v871_v56  ;;  %vm877_vm12 = vcmp.lt.s32.totalorder %v6018_v48, 1  ;;  %vm879_vm13 = vcmp.lt.s32.totalorder %v6018_v48, 3  ;;  %vm880_vm14 = vcmp.lt.s32.totalorder %v6018_v48, 4 }
  0xcb   : > { %v876_v10 = vor.u32 %v875_v5, %v874_v2  ;;  %v885_v14 = vsel %vm877_vm12, %v864_v39, %v867_v43  ;;  %v700_v18 = vadd.s32 536870912, %v699_v52  ;;  %v882_v22 = vsel %vm880_vm14, %v870_v50, 2102212464 }
  0xcc   : > { %v886_v30 = vsel %vm880_vm14, %v873_v9, 920167782  ;;  %v889_v41 = vsel %vm877_vm12, %v867_v43, %v870_v50  ;;  %vm878_vm15 = vcmp.lt.s32.totalorder %v6018_v48, 2  ;;  %v893_v8 = vshll.u32 %v853_v1, 8 }
  0xcd   : > { %v887_v32 = vsel %vm879_vm13, %v870_v50, %v886_v30  ;;  %v890_v26 = vsel %vm880_vm14, %v876_v10, 1326507024  ;;  %v6134_v29 = vshrl.u32 %v700_v18, 30  ;;  %v881_v0 = vsel %vm877_vm12, %v861_v6, %v864_v39 }
  0xce   : > { %v888_v33 = vsel %vm878_vm15, %v885_v14, %v887_v32  ;;  %v891_v35 = vsel %vm879_vm13, %v873_v9, %v890_v26  ;;  %v883_v37 = vsel %vm879_vm13, %v867_v43, %v882_v22  ;;  %v567_v50 = vor.u32 %v6083_v7, %v6064_v36 }
  0xcf   : > { %v892_v56 = vsel %vm878_vm15, %v889_v41, %v891_v35  ;;  %v6140_v59 = vmul.u32.u64.low %v893_v8, %v888_v33  ;;  %v6141_v62 = vmul.u32.u64.high %v893_v8, %v888_v33, %v6140_v59  ;;  %v702_v1 = vshll.u32 %v6134_v29, 30 }
  0xd0   : > { %v6147_v2 = vmul.u32.u64.low %v893_v8, %v892_v56  ;;  %v6148_v5 = vmul.u32.u64.high %v893_v8, %v892_v56, %v6147_v2  ;;  %v6153_v39 = vsel %vm777_vm11, %v6068_v49, 920167782  ;;  %5622 = vpow2.f32 %v6007_v42 }
  0xd1   : > { %vm571_vm0 = vcmp.lt.s32.totalorder %v6042_v17, 4  ;;  %v6158_v43 = vand.u32 31, %v6095_v16  ;;  %v6165_v36 = vsel %vm777_vm11, %v773_v40, 1326507024  ;;  %v6168_v7 = vand.u32 31, %v6099_v21 }
  0xd2   : > { %v6170_v6 = vsub.s32 %v699_v52, %v702_v1  ;;  %v884_v42 = vsel %vm878_vm15, %v881_v0, %v883_v37  ;;  %5624 = vpow2.f32 %v6012_v45  ;;  %v577_v9 = vsel %vm571_vm0, %v6093_v15, 920167782 }
  0xd3   : > { %v903_v63 = vadd.s32 1, %v6141_v62  ;;  %v8207_v23 = vand.u32 2147483647, %v5989_v61  ;;  %v581_v40 = vsel %vm571_vm0, %v567_v50, 1326507024  ;;  %v6183_v10 = vshrl.u32 %v6095_v16, 5 }
  0xd4   : > { %v705_v52 = vsub.s32 0, %v6170_v6  ;;  %vm902_vm1 = vc.u32 %v6148_v5, %v6140_v59  ;;  %v6189_v45 = vsub.s32 32, %v6158_v43  ;;  %v6192_v48 = vshrl.u32 %v6099_v21, 5 }
  0xd5   : > { %v900_v14 = vmul.u32 %v893_v8, %v884_v42  ;;  %v904_v18 = vsel %vm902_vm1, %v903_v63, %v6141_v62  ;;  %v6197_v22 = vshll.u32 %v8209_v51, %v6158_v43  ;;  %v6200_v16 = vsub.s32 32, %v6168_v7 }
  0xd6   : > { %v5258_v30 = vmin.u32 %v705_v52, %v6170_v6  ;;  %v554_v41 = vshrl.u32 %v8213_v53, %v6052_v24  ;;  %v543_v21 = vand.u32 8388607, %v8207_v23  ;;  %v553_v26 = vshll.u32 %v5795_v4, %v6033_v3 }
  0xd7   : > { %v905_v32 = vadd.s32 %v904_v18, %v900_v14  ;;  %v557_v8 = vshrl.u32 %v8211_v58, %v6052_v24  ;;  %vm641_vm2 = vcmp.lt.s32.totalorder %v5984_v57, 0  ;;  %v556_v33 = vshll.u32 %v8213_v53, %v6033_v3 }
  0xd8   : > { %v707_v0 = vclz %v5258_v30  ;;  %v559_v35 = vshll.u32 %v8211_v58, %v6033_v3  ;;  %v560_v37 = vshrl.u32 %v8209_v51, %v6052_v24  ;;  %v975_v56 = vshrl.u32 %v8217_v60, %v6189_v45 }
  0xd9   : > { %v6222_v62 = vshll.u32 %v8217_v60, %v6158_v43  ;;  %v1077_v50 = vshll.u32 %v8209_v51, %v6168_v7  ;;  %v906_v1 = vadd.s32 536870912, %v905_v32  ;;  %v555_v42 = vor.u32 %v554_v41, %v553_v26 }
  0xda   : > { %v5259_v2 = vadd.s32 4294967294, %v707_v0  ;;  %v558_v63 = vor.u32 %v557_v8, %v556_v33  ;;  %v561_v52 = vor.u32 %v560_v37, %v559_v35  ;;  %v6226_v14 = vpop.eup %5622  ;;  %v1078_v3 = vshrl.u32 %v8217_v60, %v6200_v16 }
  0xdb   : > { %vm6232_vm3 = vcmp.le.f32.partialorder %v639_v46, 0.7853982  ;;  %v695_v30 = vadd.s32 %v6089_v13, %v6087_v12  ;;  %v6238_v23 = vshrl.u32 %v906_v1, 30  ;;  %v544_v0 = vor.u32 8388608, %v543_v21 }
  0xdc   : > { %vm5260_vm4 = vcmp.lt.s32.totalorder %v5259_v2, 0  ;;  %v725_v41 = vsub.s32 4, %v6134_v29  ;;  %v552_v26 = vshrl.u32 %v5795_v4, %v6052_v24  ;;  %vm568_vm5 = vcmp.lt.s32.totalorder %v6042_v17, 1  ;;  %v6244_v8 = vpop.eup %5624 }
  0xdd   : > { %v710_v46 = vsel %vm5260_vm4, 0, %v5259_v2  ;;  %v908_v33 = vshll.u32 %v6238_v23, 30  ;;  %vm569_vm6 = vcmp.lt.s32.totalorder %v6042_v17, 2  ;;  %vm570_vm7 = vcmp.lt.s32.totalorder %v6042_v17, 3 }
  0xde   : > { %v711_v12 = vsub.s32 32, %v710_v46  ;;  %v715_v13 = vsub.s32 4294967266, %v710_v46  ;;  %v576_v21 = vsel %vm568_vm5, %v555_v42, %v558_v63  ;;  %v578_v35 = vsel %vm570_vm7, %v561_v52, %v577_v9 }
  0xdf   : > { %v6253_v24 = vsub.s32 %v905_v32, %v908_v33  ;;  %v573_v37 = vsel %vm571_vm0, %v561_v52, 2102212464  ;;  %v580_v1 = vsel %vm568_vm5, %v558_v63, %v561_v52  ;;  %v584_v2 = vshll.u32 %v544_v0, 8 }
  0xe0   : > { %v712_v19 = vshll.u32 %v6170_v6, %v710_v46  ;;  %v713_v51 = vshrl.u32 %v695_v30, %v711_v12  ;;  %v716_v58 = vadd.s32 127, %v715_v13  ;;  %v582_v53 = vsel %vm570_vm7, %v6093_v15, %v581_v40 }
  0xe1   : > { %v726_v9 = vsel %vm641_vm2, %v725_v41, %v6134_v29  ;;  %v911_v32 = vsub.s32 0, %v6253_v24  ;;  %v579_v33 = vsel %vm569_vm6, %v576_v21, %v578_v35  ;;  %v583_v52 = vsel %vm569_vm6, %v580_v1, %v582_v53 }
  0xe2   : > { %v714_v0 = vor.u32 %v713_v51, %v712_v19  ;;  %v717_v6 = vshll.u32 %v716_v58, 23  ;;  %v6271_v30 = vmul.u32.u64.low %v584_v2, %v583_v52  ;;  %v6272_v46 = vmul.u32.u64.high %v584_v2, %v583_v52, %v6271_v30 }
  0xe3   : > { %v6276_v15 = vshrl.u32 %v8215_v11, %v6200_v16  ;;  %v5266_v40 = vmin.u32 %v911_v32, %v6253_v24  ;;  %v572_v29 = vsel %vm568_vm5, %v552_v26, %v555_v42  ;;  %v574_v41 = vsel %vm570_vm7, %v558_v63, %v573_v37 }
  0xe4   : > { %v6285_v53 = vshrl.u32 %v8215_v11, %v6189_v45  ;;  %v6289_v51 = vshll.u32 %v8217_v60, %v6168_v7  ;;  %v718_v58 = vor.u32 4788187, %v717_v6  ;;  %v728_v19 = vsel %vm6232_vm3, 0, %v726_v9 }
  0xe5   : > { %v6294_v12 = vor.u32 %v975_v56, %v6197_v22  ;;  %v913_v13 = vclz %v5266_v40  ;;  %v6296_v42 = vmul.u32.u64.low %v584_v2, %v579_v33  ;;  %v6297_v26 = vmul.u32.u64.high %v584_v2, %v579_v33, %v6296_v42 }
  0xe6   : > { %v6300_v63 = vor.u32 %v1078_v3, %v1077_v50  ;;  %v719_v21 = vand.u32 2147483647, %v718_v58  ;;  %v721_v35 = vcvt.s32.f32 %v714_v0  ;;  %v575_v37 = vsel %vm569_vm6, %v572_v29, %v574_v41 }
  0xe7   : > { %v1082_v1 = vor.u32 %v6276_v15, %v6289_v51  ;;  %v6306_v32 = vand.u32 3, %v728_v19  ;;  %v5267_v9 = vadd.s32 4294967294, %v913_v13  ;;  %v742_v22 = vand.u32 2147483647, %v5980_v54 }
  0xe8   : > { %v722_v56 = vmul.f32 %v721_v35, %v719_v21  ;;  %v901_v33 = vadd.s32 %v6140_v59, %v6148_v5  ;;  %v1357_v52 = vadd.s32 3, %v728_v19  ;;  %vm593_vm8 = vc.u32 %v6272_v46, %v6296_v42 }
  0xe9   : > { %vm5268_vm9 = vcmp.lt.s32.totalorder %v5267_v9, 0  ;;  %v591_v50 = vmul.u32 %v584_v2, %v575_v37  ;;  %v594_v17 = vadd.s32 1, %v6297_v26  ;;  %v759_v3 = vshll.u32 %v5795_v4, %v6002_v38 }
  0xea   : > { %v723_v0 = vxor.u32 2147483648, %v722_v56  ;;  %v916_v6 = vsel %vm5268_vm9, 0, %v5267_v9  ;;  %v749_v30 = vand.u32 8388607, %v742_v22  ;;  %v8243_v40 = vmov 2475754826  }
  0xeb   : > { %v760_v29 = vshrl.u32 %v8243_v40, %v6016_v47  ;;  %v917_v59 = vsub.s32 32, %v916_v6  ;;  %v921_v5 = vsub.s32 4294967266, %v916_v6  ;;  %v595_v41 = vsel %vm593_vm8, %v594_v17, %v6297_v26 }
  0xec   : > { %v762_v2 = vshll.u32 %v8243_v40, %v6002_v38  ;;  %v724_v58 = vsel %vm641_vm2, %v723_v0, %v722_v56  ;;  %v918_v19 = vshll.u32 %v6253_v24, %v916_v6  ;;  %v596_v13 = vadd.s32 %v595_v41, %v591_v50 }
  0xed   : > { %v761_v21 = vor.u32 %v760_v29, %v759_v3  ;;  %v727_v35 = vsel %vm6232_vm3, %v5984_v57, %v724_v58  ;;  %v919_v37 = vshrl.u32 %v901_v33, %v917_v59  ;;  %v922_v9 = vadd.s32 127, %v921_v5 }
  0xee   : > { %v8244_v11 = vmov 2131351028   ;;  %5626 = vcosq.f32 %v727_v35  ;;  %v597_v26 = vadd.s32 536870912, %v596_v13  ;;  %v8245_v56 = vmov 2102212464  }
  0xef   : > { %v763_v60 = vshrl.u32 %v8244_v11, %v6016_v47  ;;  %v765_v17 = vshll.u32 %v8244_v11, %v6002_v38  ;;  %v766_v0 = vshrl.u32 %v8245_v56, %v6016_v47  ;;  %5628 = vsinq.f32 %v727_v35 }
  0xf0   : > { %v920_v24 = vor.u32 %v919_v37, %v918_v19  ;;  %v923_v50 = vshll.u32 %v922_v9, 23  ;;  %v931_v18 = vsub.s32 4, %v6238_v23  ;;  %v6336_v6 = vand.u32 3, %v1357_v52 }
  0xf1   : > { %v764_v3 = vor.u32 %v763_v60, %v762_v2  ;;  %v6338_v33 = vshrl.u32 %v597_v26, 30  ;;  %v767_v29 = vor.u32 %v766_v0, %v765_v17  ;;  %v8246_v59 = vand.u32 2147483647, %v5982_v55 }
  0xf2   : > { %vm847_vm12 = vcmp.lt.s32.totalorder %v5982_v55, 0  ;;  %v924_v38 = vor.u32 4788187, %v923_v50  ;;  %v750_v41 = vor.u32 8388608, %v749_v30  ;;  %vm737_vm13 = vcmp.eq.s32.totalorder %v6306_v32, 2 }
  0xf3   : > { %vm6342_vm10 = vcmp.le.f32.partialorder %v8246_v59, 0.7853982  ;;  %v927_v60 = vcvt.s32.f32 %v920_v24  ;;  %v599_v2 = vshll.u32 %v6338_v33, 30  ;;  %vm774_vm14 = vcmp.lt.s32.totalorder %v6010_v44, 1 }
  0xf4   : > { %vm776_vm15 = vcmp.lt.s32.totalorder %v6010_v44, 3  ;;  %vm734_vm0 = vcmp.eq.s32.totalorder %v6306_v32, 0  ;;  %v925_v52 = vand.u32 2147483647, %v924_v38  ;;  %v782_v58 = vsel %vm774_vm14, %v761_v21, %v764_v3 }
  0xf5   : > { %v784_v19 = vsel %vm776_vm15, %v767_v29, %v6153_v39  ;;  %v786_v30 = vsel %vm774_vm14, %v764_v3, %v767_v29  ;;  %vm733_vm1 = vcmp.lt.s32.totalorder %v6306_v32, 2  ;;  %v932_v35 = vsel %vm847_vm12, %v931_v18, %v6238_v23 }
  0xf6   : > { %vm1360_vm2 = vcmp.eq.s32.totalorder %v6336_v6, 0  ;;  %v6364_v37 = vsub.s32 %v596_v13, %v599_v2  ;;  %vm775_vm3 = vcmp.lt.s32.totalorder %v6010_v44, 2  ;;  %vm731_vm4 = vweird.f32 %v5984_v57 }
  0xf7   : > { %v928_v9 = vmul.f32 %v927_v60, %v925_v52  ;;  %v779_v39 = vsel %vm777_vm11, %v767_v29, 2102212464  ;;  %v788_v26 = vsel %vm776_vm15, %v6068_v49, %v6165_v36  ;;  %v790_v17 = vshll.u32 %v750_v41, 8 }
  0xf8   : > { %v602_v23 = vsub.s32 0, %v6364_v37  ;;  %v758_v13 = vshrl.u32 %v5795_v4, %v6016_v47  ;;  %v785_v0 = vsel %vm775_vm3, %v782_v58, %v784_v19  ;;  %v789_v24 = vsel %vm775_vm3, %v786_v30, %v788_v26  ;;  %v5627_v49 = vpop.eup %5626 }
  0xf9   : > { %v929_v50 = vxor.u32 2147483648, %v928_v9  ;;  %v934_v18 = vsel %vm6342_vm10, 0, %v932_v35  ;;  %v6383_v29 = vmul.u32.u64.low %v790_v17, %v789_v24  ;;  %v6384_v59 = vmul.u32.u64.high %v790_v17, %v789_v24, %v6383_v29  ;;  %v5629_v41 = vpop.eup %5628 }
  0xfa   : > { %vm1086_vm11 = vcmp.lt.s32.totalorder %v6192_v48, 4  ;;  %vm1363_vm5 = vcmp.eq.s32.totalorder %v6336_v6, 2  ;;  %vm538_vm6 = vcmp.lt.s32.totalorder %v5989_v61, 0  ;;  %v5254_v47 = vmin.u32 %v602_v23, %v6364_v37 }
  0xfb   : > { %v778_v36 = vsel %vm774_vm14, %v758_v13, %v761_v21  ;;  %v780_v38 = vsel %vm776_vm15, %v764_v3, %v779_v39  ;;  %v738_v60 = vxor.u32 2147483648, %v5627_v49  ;;  %v930_v2 = vsel %vm847_vm12, %v929_v50, %v928_v9 }
  0xfc   : > { %v6396_v52 = vmul.u32.u64.low %v790_v17, %v785_v0  ;;  %v6397_v58 = vmul.u32.u64.high %v790_v17, %v785_v0, %v6396_v52  ;;  %v735_v19 = vxor.u32 2147483648, %v5629_v41  ;;  %v933_v30 = vsel %vm6342_vm10, %v5982_v55, %v930_v2 }
  0xfd   : > { %v1565_v35 = vadd.s32 3, %v934_v18  ;;  %v604_v26 = vclz %v5254_v47  ;;  %v739_v21 = vsel %vm737_vm13, %v738_v60, %v5629_v41  ;;  %5630 = vcosq.f32 %v933_v30 }
  0xfe   : > { %v622_v3 = vsub.s32 4, %v6338_v33  ;;  %v781_v9 = vsel %vm775_vm3, %v778_v36, %v780_v38  ;;  %v736_v39 = vsel %vm734_vm0, %v5627_v49, %v735_v19  ;;  %5632 = vsinq.f32 %v933_v30 }
  0xff   : > { %v1365_v23 = vsel %vm1363_vm5, %v738_v60, %v5629_v41  ;;  %v5255_v5 = vadd.s32 4294967294, %v604_v26  ;;  %v740_v13 = vsel %vm733_vm1, %v736_v39, %v739_v21  ;;  %v1362_v0 = vsel %vm1360_vm2, %v5627_v49, %v735_v19 }
 0x100   : > { %vm799_vm7 = vc.u32 %v6384_v59, %v6396_v52  ;;  %v800_v44 = vadd.s32 1, %v6397_v58  ;;  %v6421_v24 = vsel %vm731_vm4, nan, %v740_v13  ;;  %vm1359_vm8 = vcmp.lt.s32.totalorder %v6336_v6, 2 }
 0x101   : > { %vm5256_vm9 = vcmp.lt.s32.totalorder %v5255_v5, 0  ;;  %v797_v50 = vmul.u32 %v790_v17, %v781_v9  ;;  %v938_v29 = vand.u32 3, %v934_v18  ;;  %v592_v32 = vadd.s32 %v6296_v42, %v6272_v46 }
 0x102   : > { %v607_v47 = vsel %vm5256_vm9, 0, %v5255_v5  ;;  %v801_v49 = vsel %vm799_vm7, %v800_v44, %v6397_v58  ;;  %v1366_v36 = vsel %vm1359_vm8, %v1362_v0, %v1365_v23  ;;  %v6430_v2 = vsel %vm1086_vm11, %v6300_v63, 920167782 }
 0x103   : > { %v608_v38 = vsub.s32 32, %v607_v47  ;;  %v612_v41 = vsub.s32 4294967266, %v607_v47  ;;  %v802_v60 = vadd.s32 %v801_v49, %v797_v50  ;;  %v6437_v6 = vsel %vm1086_vm11, %v1082_v1, 1326507024 }
 0x104   : > { %v1566_v46 = vand.u32 3, %v1565_v35  ;;  %v623_v42 = vsel %vm538_vm6, %v622_v3, %v6338_v33  ;;  %vm937_vm10 = vweird.f32 %v5982_v55  ;;  %v609_v17 = vshll.u32 %v6364_v37, %v607_v47 }
 0x105   : > { %v610_v18 = vshrl.u32 %v592_v32, %v608_v38  ;;  %v613_v58 = vadd.s32 127, %v612_v41  ;;  %v803_v19 = vadd.s32 536870912, %v802_v60  ;;  %vm939_vm12 = vcmp.lt.s32.totalorder %v938_v29, 2 }
 0x106   : > { %vm940_vm13 = vcmp.eq.s32.totalorder %v938_v29, 0  ;;  %v1367_v15 = vsel %vm731_vm4, nan, %v1366_v36  ;;  %v8249_v51 = vand.u32 2147483647, %v5989_v61  ;;  %vm943_vm15 = vcmp.eq.s32.totalorder %v938_v29, 2 }
 0x107   : > { %v611_v33 = vor.u32 %v610_v18, %v609_v17  ;;  %v614_v30 = vshll.u32 %v613_v58, 23  ;;  %v804_v35 = vshrl.u32 %v803_v19, 30  ;;  %v5631_v26 = vpop.eup %5630  ;;  %vm1567_vm0 = vcmp.lt.s32.totalorder %v1566_v46, 2 }
 0x108   : > { %vm6448_vm14 = vcmp.le.f32.partialorder %v8249_v51, 0.7853982  ;;  %vm1568_vm1 = vcmp.eq.s32.totalorder %v1566_v46, 0  ;;  %vm1571_vm2 = vcmp.eq.s32.totalorder %v1566_v46, 2  ;;  %v5633_v57 = vpop.eup %5632  ;;  %v944_v21 = vxor.u32 2147483648, %v5631_v26 }
 0x109   : > { %v6454_v37 = vsel %vm6448_vm14, 0, %v623_v42  ;;  %v1785_v3 = vmul.f32 %v6244_v8, %v1367_v15  ;;  %v615_v9 = vor.u32 4788187, %v614_v30  ;;  %v805_v39 = vshll.u32 %v804_v35, 30 }
 0x10a   : > { %v941_v23 = vxor.u32 2147483648, %v5633_v57  ;;  %v618_v5 = vcvt.s32.f32 %v611_v33  ;;  %v1051_v13 = vand.u32 2147483647, %v6000_v34  ;;  %v1069_v0 = vshrl.u32 %v8243_v40, %v6200_v16 }
 0x10b   : > { %v945_v44 = vsel %vm943_vm15, %v944_v21, %v5633_v57  ;;  %v1573_v50 = vsel %vm1571_vm2, %v944_v21, %v5633_v57  ;;  %v616_v32 = vand.u32 2147483647, %v615_v9  ;;  %v6461_v47 = vsub.s32 %v802_v60, %v805_v39 }
 0x10c   : > { %v942_v49 = vsel %vm940_vm13, %v5631_v26, %v941_v23  ;;  %v1570_v36 = vsel %vm1568_vm1, %v5631_v26, %v941_v23  ;;  %v1072_v38 = vshrl.u32 %v8244_v11, %v6200_v16  ;;  %v1075_v41 = vshrl.u32 %v8245_v56, %v6200_v16 }
 0x10d   : > { %v946_v42 = vsel %vm939_vm12, %v942_v49, %v945_v44  ;;  %v1574_v17 = vsel %vm1567_vm0, %v1570_v36, %v1573_v50  ;;  %v619_v18 = vmul.f32 %v618_v5, %v616_v32  ;;  %v808_v58 = vsub.s32 0, %v6461_v47 }
 0x10e   : > { %v6474_v60 = vsel %vm937_vm10, nan, %v946_v42  ;;  %v1575_v19 = vsel %vm937_vm10, nan, %v1574_v17  ;;  %v1068_v15 = vshll.u32 %v5795_v4, %v6168_v7  ;;  %v1071_v51 = vshll.u32 %v8243_v40, %v6168_v7 }
 0x10f   : > { %v1787_v29 = vmul.f32 %v6058_v31, %v1575_v19  ;;  %v620_v46 = vxor.u32 2147483648, %v619_v18  ;;  %v5262_v33 = vmin.u32 %v808_v58, %v6461_v47  ;;  %v1074_v30 = vshll.u32 %v8244_v11, %v6168_v7 }
 0x110   : > { %v828_v26 = vsub.s32 4, %v804_v35  ;;  %v1058_v57 = vand.u32 8388607, %v1051_v13  ;;  %v1070_v55 = vor.u32 %v1069_v0, %v1068_v15  ;;  %v1073_v21 = vor.u32 %v1072_v38, %v1071_v51 }
 0x111   : > { %v5447_v9 = vpack.c.bf16 %v1787_v29, %v1785_v3  ;;  %v621_v39 = vsel %vm538_vm6, %v620_v46, %v619_v18  ;;  %v810_v23 = vclz %v5262_v33  ;;  %v1076_v5 = vor.u32 %v1075_v41, %v1074_v30 }
 0x112   : > { %vm6492_vm3 = vcmp.le.f32.partialorder %v742_v22, 0.7853982  ;;  %vm744_vm4 = vcmp.lt.s32.totalorder %v5980_v54, 0  ;;  %v798_v7 = vadd.s32 %v6396_v52, %v6384_v59  ;;  %v1253_v0 = vadd.s32 3, %v6454_v37 }
 0x113   : > { %5448 = vmatprep.subr.bf16.mxu0 %v5447_v9  ;;  %v624_v3 = vsel %vm6448_vm14, %v5989_v61, %v621_v39  ;;  %v5263_v50 = vadd.s32 4294967294, %v810_v23  ;;  %v1067_v32 = vshrl.u32 %v5795_v4, %v6200_v16  ;;  %vm1083_vm5 = vcmp.lt.s32.totalorder %v6192_v48, 1 }
 0x114   : > { %v829_v22 = vsel %vm744_vm4, %v828_v26, %v804_v35  ;;  %v1059_v49 = vor.u32 8388608, %v1058_v57  ;;  %vm1085_vm6 = vcmp.lt.s32.totalorder %v6192_v48, 3  ;;  %v1091_v59 = vsel %vm1083_vm5, %v1070_v55, %v1073_v21 }
 0x115   : > { %vm5264_vm7 = vcmp.lt.s32.totalorder %v5263_v50, 0  ;;  %vm1084_vm8 = vcmp.lt.s32.totalorder %v6192_v48, 2  ;;  %v1093_v52 = vsel %vm1085_vm6, %v1076_v5, %v6430_v2  ;;  %v1095_v16 = vsel %vm1083_vm5, %v1073_v21, %v1076_v5 }
 0x116   : > { %5634 = vcosq.f32 %v624_v3  ;;  %v813_v1 = vsel %vm5264_vm7, 0, %v5263_v50  ;;  %v1088_v35 = vsel %vm1086_vm11, %v1076_v5, 2102212464  ;;  %v1097_v36 = vsel %vm1085_vm6, %v6300_v63, %v6437_v6 }
 0x117   : > { %v814_v38 = vsub.s32 32, %v813_v1  ;;  %v818_v41 = vsub.s32 4294967266, %v813_v1  ;;  %v1094_v42 = vsel %vm1084_vm8, %v1091_v59, %v1093_v52  ;;  %v1098_v2 = vsel %vm1084_vm8, %v1095_v16, %v1097_v36 }
 0x118   : > { %5636 = vsinq.f32 %v624_v3  ;;  %v831_v17 = vsel %vm6492_vm3, 0, %v829_v22  ;;  %v1087_v18 = vsel %vm1083_vm5, %v1067_v32, %v1070_v55  ;;  %v1099_v58 = vshll.u32 %v1059_v49, 8 }
 0x119   : > { %v815_v19 = vshll.u32 %v6461_v47, %v813_v1  ;;  %v816_v15 = vshrl.u32 %v798_v7, %v814_v38  ;;  %v819_v63 = vadd.s32 127, %v818_v41  ;;  %v1089_v6 = vsel %vm1085_vm6, %v1073_v21, %v1088_v35 }
 0x11a   : > { %v6534_v51 = vmul.u32.u64.low %v1099_v58, %v1098_v2  ;;  %v6535_v29 = vmul.u32.u64.high %v1099_v58, %v1098_v2, %v6534_v51  ;;  %v6537_v46 = vmul.u32.u64.low %v1099_v58, %v1094_v42  ;;  %v6538_v33 = vmul.u32.u64.high %v1099_v58, %v1094_v42, %v6537_v46 }
 0x11b   : > { %v979_v30 = vor.u32 %v6285_v53, %v6222_v62  ;;  %vm983_vm11 = vcmp.lt.s32.totalorder %v6183_v10, 4  ;;  %v817_v26 = vor.u32 %v816_v15, %v815_v19  ;;  %v820_v57 = vshll.u32 %v819_v63, 23 }
 0x11c   : > { %v989_v47 = vsel %vm983_vm11, %v6294_v12, 920167782  ;;  %v6548_v55 = vand.u32 3, %v6454_v37  ;;  %v1090_v21 = vsel %vm1084_vm8, %v1087_v18, %v1089_v6  ;;  %v948_v9 = vand.u32 2147483647, %v5997_v28 }
 0x11d   : > { %v821_v39 = vor.u32 4788187, %v820_v57  ;;  %v6553_v23 = vand.u32 3, %v1253_v0  ;;  %v1461_v62 = vadd.s32 3, %v831_v17  ;;  %v966_v53 = vshrl.u32 %v8243_v40, %v6189_v45 }
 0x11e   : > { %vm1108_vm9 = vc.u32 %v6535_v29, %v6537_v46  ;;  %v1109_v5 = vadd.s32 1, %v6538_v33  ;;  %v969_v37 = vshrl.u32 %v8244_v11, %v6189_v45  ;;  %v972_v48 = vshrl.u32 %v8245_v56, %v6189_v45 }
 0x11f   : > { %v822_v7 = vand.u32 2147483647, %v821_v39  ;;  %v824_v3 = vcvt.s32.f32 %v817_v26  ;;  %v1106_v50 = vmul.u32 %v1099_v58, %v1090_v21  ;;  %v965_v0 = vshll.u32 %v5795_v4, %v6158_v43 }
 0x120   : > { %v5635_v32 = vpop.eup %5634  ;;  %v1110_v22 = vsel %vm1108_vm9, %v1109_v5, %v6538_v33  ;;  %v955_v49 = vand.u32 8388607, %v948_v9  ;;  %v968_v59 = vshll.u32 %v8243_v40, %v6158_v43  ;;  %v971_v52 = vshll.u32 %v8244_v11, %v6158_v43 }
 0x121   : > { %v993_v16 = vsel %vm983_vm11, %v979_v30, 1326507024  ;;  %vm631_vm10 = vcmp.eq.s32.totalorder %v6548_v55, 0  ;;  %v825_v1 = vmul.f32 %v824_v3, %v822_v7  ;;  %v1111_v35 = vadd.s32 %v1110_v22, %v1106_v50 }
 0x122   : > { %v5637_v36 = vpop.eup %5636  ;;  %vm634_vm12 = vcmp.eq.s32.totalorder %v6548_v55, 2  ;;  %v967_v38 = vor.u32 %v966_v53, %v965_v0  ;;  %v970_v41 = vor.u32 %v969_v37, %v968_v59  ;;  %v973_v42 = vor.u32 %v972_v48, %v971_v52 }
 0x123   : > { %v635_v2 = vxor.u32 2147483648, %v5635_v32  ;;  %v826_v18 = vxor.u32 2147483648, %v825_v1  ;;  %vm1256_vm13 = vcmp.eq.s32.totalorder %v6553_v23, 0  ;;  %vm1259_vm14 = vcmp.eq.s32.totalorder %v6553_v23, 2 }
 0x124   : > { %v1112_v43 = vadd.s32 536870912, %v1111_v35  ;;  %v6579_v58 = vand.u32 3, %v831_v17  ;;  %v6581_v19 = vand.u32 3, %v1461_v62  ;;  %v956_v15 = vor.u32 8388608, %v955_v49 }
 0x125   : > { %v964_v63 = vshrl.u32 %v5795_v4, %v6189_v45  ;;  %v827_v6 = vsel %vm744_vm4, %v826_v18, %v825_v1  ;;  %vm980_vm15 = vcmp.lt.s32.totalorder %v6183_v10, 1  ;;  %vm982_vm0 = vcmp.lt.s32.totalorder %v6183_v10, 3 }
 0x126   : > { %v6587_v51 = vshrl.u32 %v1112_v43, 30  ;;  %v632_v33 = vxor.u32 2147483648, %v5637_v36  ;;  %v830_v17 = vsel %vm6492_vm3, %v5980_v54, %v827_v6  ;;  %v988_v30 = vsel %vm980_vm15, %v967_v38, %v970_v41 }
 0x127   : > { %v990_v45 = vsel %vm982_vm0, %v973_v42, %v989_v47  ;;  %v636_v26 = vsel %vm634_vm12, %v635_v2, %v5637_v36  ;;  %5638 = vcosq.f32 %v830_v17  ;;  %vm981_vm1 = vcmp.lt.s32.totalorder %v6183_v10, 2 }
 0x128   : > { %v1114_v57 = vshll.u32 %v6587_v51, 30  ;;  %5640 = vsinq.f32 %v830_v17  ;;  %v985_v21 = vsel %vm983_vm11, %v973_v42, 2102212464  ;;  %v992_v44 = vsel %vm980_vm15, %v970_v41, %v973_v42 }
 0x129   : > { %v994_v39 = vsel %vm982_vm0, %v6294_v12, %v993_v16  ;;  %v991_v62 = vsel %vm981_vm1, %v988_v30, %v990_v45  ;;  %v996_v5 = vshll.u32 %v956_v15, 8  ;;  %v633_v37 = vsel %vm631_vm10, %v5635_v32, %v632_v33 }
 0x12a   : > { %v6609_v47 = vsub.s32 %v1111_v35, %v1114_v57  ;;  %v995_v53 = vsel %vm981_vm1, %v992_v44, %v994_v39  ;;  %v1261_v48 = vsel %vm1259_vm14, %v635_v2, %v5637_v36  ;;  %v984_v7 = vsel %vm980_vm15, %v964_v63, %v967_v38 }
 0x12b   : > { %v986_v3 = vsel %vm982_vm0, %v970_v41, %v985_v21  ;;  %v6624_v50 = vmul.u32.u64.low %v996_v5, %v995_v53  ;;  %v6625_v0 = vmul.u32.u64.high %v996_v5, %v995_v53, %v6624_v50  ;;  %v8219_v22 = vmov 0.0  }
 0x12c   : > { %v1117_v12 = vsub.s32 0, %v6609_v47  ;;  %1885 = vmatprep.mubr.f32.mxu0 %v8219_v22  ;;  %3493 = vmatprep.mubr.f32.mxu1 %v8219_v22  ;;  %v1258_v49 = vsel %vm1256_vm13, %v5635_v32, %v632_v33  ;;  %v6631_v59 = vmul.u32.u64.low %v996_v5, %v991_v62  ;;  %v6632_v52 = vmul.u32.u64.high %v996_v5, %v991_v62, %v6631_v59 }
 0x12d   : > { %v6637_v16 = vmul.f32 %v6244_v8, %v6421_v24  ;;  %vm628_vm2 = vweird.f32 %v5989_v61  ;;  %vm630_vm3 = vcmp.lt.s32.totalorder %v6548_v55, 2  ;;  %v6644_v35 = vmul.f32 %v6058_v31, %v6474_v60 }
 0x12e   : > { %v5274_v1 = vmin.u32 %v1117_v12, %v6609_v47  ;;  %v637_v36 = vsel %vm630_vm3, %v633_v37, %v636_v26  ;;  %vm834_vm4 = vweird.f32 %v5980_v54  ;;  %vm836_vm5 = vcmp.lt.s32.totalorder %v6579_v58, 2 }
 0x12f   : > { %vm1255_vm6 = vcmp.lt.s32.totalorder %v6553_v23, 2  ;;  %v987_v8 = vsel %vm981_vm1, %v984_v7, %v986_v3  ;;  %vm837_vm7 = vcmp.eq.s32.totalorder %v6579_v58, 0  ;;  %vm840_vm8 = vcmp.eq.s32.totalorder %v6579_v58, 2 }
 0x130   : > { %v1262_v24 = vsel %vm1255_vm6, %v1258_v49, %v1261_v48  ;;  %v1119_v55 = vclz %v5274_v1  ;;  %vm1463_vm11 = vcmp.lt.s32.totalorder %v6581_v19, 2  ;;  %vm1005_vm9 = vc.u32 %v6625_v0, %v6631_v59 }
 0x131   : > { %v1006_v31 = vadd.s32 1, %v6632_v52  ;;  %v5451_v60 = vpack.c.bf16 %v6644_v35, %v6637_v16  ;;  %v5639_v23 = vpop.eup %5638  ;;  %v638_v10 = vsel %vm628_vm2, nan, %v637_v36  ;;  %vm1464_vm10 = vcmp.eq.s32.totalorder %v6581_v19, 0  ;;  %v1798_v16 = vld [vmem:[%s8201_s6 + $0x10] sm:$0xff]  ;;  %v1799_v35 = vld [vmem:[%s8201_s6 + $0x18] sm:$0xff] }
 0x132   : > { %v5275_v32 = vadd.s32 4294967294, %v1119_v55  ;;  %v1003_v38 = vmul.u32 %v996_v5, %v987_v8  ;;  %v5641_v41 = vpop.eup %5640  ;;  %v841_v42 = vxor.u32 2147483648, %v5639_v23  ;;  %v1263_v2 = vsel %vm628_vm2, nan, %v1262_v24 }
 0x133   : > { %vm1467_vm12 = vcmp.eq.s32.totalorder %v6581_v19, 2  ;;  %v1007_v18 = vsel %vm1005_vm9, %v1006_v31, %v6632_v52  ;;  %v838_v43 = vxor.u32 2147483648, %v5641_v41  ;;  %v1107_v15 = vadd.s32 %v6537_v46, %v6535_v29 }
 0x134   : > { %vm5276_vm13 = vcmp.lt.s32.totalorder %v5275_v32, 0  ;;  %v1008_v63 = vadd.s32 %v1007_v18, %v1003_v38  ;;  %v842_v6 = vsel %vm840_vm8, %v841_v42, %v5641_v41  ;;  %v6671_v33 = vmul.f32 %v6226_v14, %v638_v10 }
 0x135   : > { %v1469_v17 = vsel %vm1467_vm12, %v841_v42, %v5641_v41  ;;  %v1122_v30 = vsel %vm5276_vm13, 0, %v5275_v32  ;;  %v839_v61 = vsel %vm837_vm7, %v5639_v23, %v838_v43  ;;  %v1466_v45 = vsel %vm1464_vm10, %v5639_v23, %v838_v43 }
 0x136   : > { %v1784_v26 = vmul.f32 %v6226_v14, %v1263_v2  ;;  %v1123_v57 = vsub.s32 32, %v1122_v30  ;;  %v843_v29 = vsel %vm836_vm5, %v839_v61, %v842_v6  ;;  %v1470_v46 = vsel %vm1463_vm11, %v1466_v45, %v1469_v17 }
 0x137   : > { %v1127_v21 = vsub.s32 4294967266, %v1122_v30  ;;  %v1009_v44 = vadd.s32 536870912, %v1008_v63  ;;  %v844_v39 = vsel %vm834_vm4, nan, %v843_v29  ;;  %v1471_v62 = vsel %vm834_vm4, nan, %v1470_v46 }
 0x138   : > { %v1124_v53 = vshll.u32 %v6609_v47, %v1122_v30  ;;  %v1125_v5 = vshrl.u32 %v1107_v15, %v1123_v57  ;;  %v6688_v14 = vmul.f32 %v6056_v27, %v844_v39  ;;  %v1786_v58 = vmul.f32 %v6056_v27, %v1471_v62 }
 0x139   : > { %v1128_v37 = vadd.s32 127, %v1127_v21  ;;  %v6691_v48 = vshrl.u32 %v1009_v44, 30  ;;  %v511_v36 = vmul.f32 -9.0, %v5994_v25  ;;  %v1137_v8 = vsub.s32 4, %v6587_v51 }
 0x13a   : > { %v5449_v19 = vpack.c.bf16 %v1786_v58, %v1784_v26  ;;  %v1126_v7 = vor.u32 %v1125_v5, %v1124_v53  ;;  %v5453_v54 = vpack.c.bf16 %v6688_v14, %v6671_v33  ;;  %vm1053_vm14 = vcmp.lt.s32.totalorder %v6000_v34, 0  ;;  %v1801_v33 = vld [vmem:[%s8201_s6 + $0x28] sm:$0xff]  ;;  %v1790_v14 = vld [vmem:[%s8200_s5] sm:$0xff] }
 0x13b   : > { %v1129_v12 = vshll.u32 %v1128_v37, 23  ;;  %v1011_v3 = vshll.u32 %v6691_v48, 30  ;;  %v517_v23 = vmul.f32 %v511_v36, %v5994_v25  ;;  %vm1052_vm15 = vcmp.le.f32.partialorder %v1051_v13, 0.7853982 }
 0x13c   : > { %5450 = vmatpush1.bf16.msra.mxu0 %v5449_v19  ;;  %v1133_v52 = vcvt.s32.f32 %v1126_v7  ;;  %v1138_v32 = vsel %vm1053_vm14, %v1137_v8, %v6587_v51  ;;  %v1004_v25 = vadd.s32 %v6631_v59, %v6625_v0  ;;  %v510_v21 = vmul.f32 -9.0, %v5992_v20 }
 0x13d   : > { %v1130_v50 = vor.u32 4788187, %v1129_v12  ;;  %v1012_v47 = vsub.s32 %v1008_v63, %v1011_v3  ;;  %v1140_v42 = vsel %vm1052_vm15, 0, %v1138_v32  ;;  %v528_v18 = vmul.f32 1.442695, %v517_v23 }
 0x13e   : > { %v1773_v63 = vadd.s32 3, %v1140_v42  ;;  %v1034_v59 = vsub.s32 4, %v6691_v48  ;;  %v516_v58 = vmul.f32 %v510_v21, %v5992_v20  ;;  %vm1143_vm4 = vweird.f32 %v6000_v34 }
 0x13f   : > { %v1131_v49 = vand.u32 2147483647, %v1130_v50  ;;  %v1014_v1 = vsub.s32 0, %v1012_v47  ;;  %vm950_vm5 = vcmp.lt.s32.totalorder %v5997_v28, 0  ;;  %vm949_vm6 = vcmp.le.f32.partialorder %v948_v9, 0.7853982 }
 0x140   : > { %v1774_v61 = vand.u32 3, %v1773_v63  ;;  %v1035_v3 = vsel %vm950_vm5, %v1034_v59, %v6691_v48 }
 0x141   : > { %v1134_v27 = vmul.f32 %v1133_v52, %v1131_v49  ;;  %v5270_v24 = vmin.u32 %v1014_v1, %v1012_v47  ;;  %v1037_v20 = vsel %vm949_vm6, 0, %v1035_v3  ;;  %v526_v49 = vmul.f32 1.442695, %v516_v58 }
 0x142   : > { %vm1779_vm1 = vcmp.eq.s32.totalorder %v1774_v61, 2  ;;  %vm1776_vm2 = vcmp.eq.s32.totalorder %v1774_v61, 0  ;;  %vm1775_vm3 = vcmp.lt.s32.totalorder %v1774_v61, 2  ;;  %v1669_v52 = vadd.s32 3, %v1037_v20  ;;  %v1795_v61 = vld [vmem:[%s8200_s5 + $0x28] sm:$0xff] }
 0x143   : > { %v1135_v55 = vxor.u32 2147483648, %v1134_v27  ;;  %v1016_v31 = vclz %v5270_v24  ;;  %v1144_v1 = vand.u32 3, %v1140_v42  ;;  %v1041_v36 = vand.u32 3, %v1037_v20 }
 0x145   : > { %v1136_v10 = vsel %vm1053_vm14, %v1135_v55, %v1134_v27  ;;  %v5271_v38 = vadd.s32 4294967294, %v1016_v31  ;;  %v1670_v27 = vand.u32 3, %v1669_v52  ;;  %vm1146_vm7 = vcmp.eq.s32.totalorder %v1144_v1, 0 }
 0x146   : > { %v1139_v41 = vsel %vm1052_vm15, %v6000_v34, %v1136_v10  ;;  %vm1149_vm8 = vcmp.eq.s32.totalorder %v1144_v1, 2  ;;  %vm1043_vm11 = vcmp.eq.s32.totalorder %v1041_v36, 0  ;;  %vm1145_vm10 = vcmp.lt.s32.totalorder %v1144_v1, 2  ;;  %v1797_v34 = vld [vmem:[%s8201_s6 + $0x8] sm:$0xff] }
 0x147   : > { %5642 = vcosq.f32 %v1139_v41  ;;  %vm5272_vm0 = vcmp.lt.s32.totalorder %v5271_v38, 0  ;;  %vm1675_vm9 = vcmp.eq.s32.totalorder %v1670_v27, 2  ;;  %vm1046_vm12 = vcmp.eq.s32.totalorder %v1041_v36, 2 }
 0x148   : > { %5644 = vsinq.f32 %v1139_v41  ;;  %v1019_v2 = vsel %vm5272_vm0, 0, %v5271_v38  ;;  %vm1671_vm13 = vcmp.lt.s32.totalorder %v1670_v27, 2  ;;  %vm1672_vm14 = vcmp.eq.s32.totalorder %v1670_v27, 0 }
 0x149   : > { %v1020_v43 = vsub.s32 32, %v1019_v2  ;;  %v1024_v15 = vsub.s32 4294967266, %v1019_v2  ;;  %v1021_v6 = vshll.u32 %v1012_v47, %v1019_v2  ;;  %5646 = vpow2.f32 %v528_v18 }
 0x14a   : > { %vm1040_vm15 = vweird.f32 %v5997_v28  ;;  %vm1042_vm0 = vcmp.lt.s32.totalorder %v1041_v36, 2 }
 0x14b   : > { %v1022_v13 = vshrl.u32 %v1004_v25, %v1020_v43  ;;  %v1025_v17 = vadd.s32 127, %v1024_v15  ;;  %v1796_v15 = vld [vmem:[%s8201_s6] sm:$0xff] }
 0x14d   : > { %v1023_v51 = vor.u32 %v1022_v13, %v1021_v6  ;;  %v1026_v30 = vshll.u32 %v1025_v17, 23  ;;  %v1792_v17 = vld [vmem:[%s8200_s5 + $0x10] sm:$0xff] }
 0x14f   : > { %v1027_v45 = vor.u32 4788187, %v1026_v30  ;;  %v1030_v29 = vcvt.s32.f32 %v1023_v51  ;;  %v1793_v51 = vld [vmem:[%s8200_s5 + $0x18] sm:$0xff]  ;;  %v1794_v30 = vld [vmem:[%s8200_s5 + $0x20] sm:$0xff] }
 0x151   : > { %v5643_v26 = vpop.eup %5642  ;;  %v1028_v57 = vand.u32 2147483647, %v1027_v45  ;;  %v2050_v45 = vpop.permute.xlu1 %2049 }
 0x152   : > { %v5645_v46 = vpop.eup %5644  ;;  %v1150_v44 = vxor.u32 2147483648, %v5643_v26 }
 0x153   : > { %v1147_v39 = vxor.u32 2147483648, %v5645_v46  ;;  %v1031_v0 = vmul.f32 %v1030_v29, %v1028_v57  ;;  %v5647_v19 = vpop.eup %5646 }
 0x154   : > { %v1781_v62 = vsel %vm1779_vm1, %v1150_v44, %v5645_v46  ;;  %v1151_v48 = vsel %vm1149_vm8, %v1150_v44, %v5645_v46  ;;  %vm8231_vm1 = vcmask 195584   ;;  %v2055_v44 = vpop.permute.xlu0 %2054 }
 0x155   : > { %v1778_v53 = vsel %vm1776_vm2, %v5643_v26, %v1147_v39  ;;  %v1032_v5 = vxor.u32 2147483648, %v1031_v0  ;;  %v1148_v55 = vsel %vm1146_vm7, %v5643_v26, %v1147_v39 }
 0x156   : > { %v1782_v37 = vsel %vm1775_vm3, %v1778_v53, %v1781_v62  ;;  %v1152_v41 = vsel %vm1145_vm10, %v1148_v55, %v1151_v48 }
 0x157   : > { %v1783_v7 = vsel %vm1143_vm4, nan, %v1782_v37  ;;  %v1033_v12 = vsel %vm950_vm5, %v1032_v5, %v1031_v0  ;;  %v1153_v63 = vsel %vm1143_vm4, nan, %v1152_v41 }
 0x158   : > { %v1789_v50 = vmul.f32 %v5647_v19, %v1783_v7  ;;  %v1036_v47 = vsel %vm949_vm6, %v5997_v28, %v1033_v12  ;;  %v1159_v28 = vmul.f32 %v5647_v19, %v1153_v63 }
 0x159   : > { %5648 = vcosq.f32 %v1036_v47 }
 0x15a   : > { %1825 = vmatprep.subr.mxu0 %v1789_v50  ;;  %5650 = vsinq.f32 %v1036_v47 }
 0x15b   : > { %5652 = vpow2.f32 %v526_v49 }
 0x163   : > { %v5649_v8 = vpop.eup %5648 }
 0x164   : > { %v5651_v9 = vpop.eup %5650  ;;  %v1047_v24 = vxor.u32 2147483648, %v5649_v8 }
 0x165   : > { %v1044_v31 = vxor.u32 2147483648, %v5651_v9  ;;  %v5653_v2 = vpop.eup %5652 }
 0x166   : > { %v1677_v23 = vsel %vm1675_vm9, %v1047_v24, %v5651_v9  ;;  %v1048_v32 = vsel %vm1046_vm12, %v1047_v24, %v5651_v9 }
 0x167   : > { %v1045_v10 = vsel %vm1043_vm11, %v5649_v8, %v1044_v31  ;;  %v1674_v38 = vsel %vm1672_vm14, %v5649_v8, %v1044_v31 }
 0x168   : > { %v1678_v42 = vsel %vm1671_vm13, %v1674_v38, %v1677_v23  ;;  %v1049_v25 = vsel %vm1042_vm0, %v1045_v10, %v1048_v32 }
 0x169   : > { %v1679_v18 = vsel %vm1040_vm15, nan, %v1678_v42  ;;  %v1050_v6 = vsel %vm1040_vm15, nan, %v1049_v25 }
 0x16a   : > { %v1788_v43 = vmul.f32 %v5653_v2, %v1679_v18  ;;  %v1158_v13 = vmul.f32 %v5653_v2, %v1050_v6 }
 0x16c   : > { %1826 = vmatpush1.msra.mxu0 %v1788_v43 }
 0x16d   : > { %5301 = vmatmul.mubr.msk.f32.vlgmr.msra.gmra.mrb[0].mxu0 %vm8231_vm1, %v1796_v15  ;;  %5452 = vmatprep.subr.bf16.mxu0 %v5451_v60  ;;  %v1800_v60 = vld [vmem:[%s8201_s6 + $0x20] sm:$0xff] }
 0x16e   : > { %5454 = vmatpush1.bf16.msra.mxu0 %v5453_v54  ;;  %1891 = vmatprep.mubr.f32.mxu0 %v8219_v22  ;;  %v1791_v54 = vld [vmem:[%s8200_s5 + $0x8] sm:$0xff] }
 0x16f   : > { %1944 = vmatprep.subr.mxu0 %v1159_v28 }
 0x171   : > { %5302 = vmatmul.mubr.msk.f32.gmra.mrb[2].mxu0 %vm8231_vm1, %v1797_v34 }
 0x172   : > { %1945 = vmatpush1.msra.mxu0 %v1158_v13  ;;  %1897 = vmatprep.mubr.f32.mxu0 %v8219_v22 }
 0x175   : > { %5303 = vmatmul.mubr.msk.f32.gmra.mrb[4].mxu0 %vm8231_vm1, %v1798_v16 }
 0x176   : > { %1903 = vmatprep.mubr.f32.mxu0 %v8219_v22 }
 0x179   : > { %5304 = vmatmul.mubr.msk.f32.gmra.mrb[6].mxu0 %vm8231_vm1, %v1799_v35 }
 0x17a   : > { %1909 = vmatprep.mubr.f32.mxu0 %v8219_v22 }
 0x17d   : > { %5305 = vmatmul.mubr.msk.f32.gmra.mrb[8].mxu0 %vm8231_vm1, %v1800_v60 }
 0x17e   : > { %1915 = vmatprep.mubr.f32.mxu0 %v8219_v22 }
 0x181   : > { %5306 = vmatmul.mubr.msk.f32.gmra.mrb[10].mxu0 %vm8231_vm1, %v1801_v33 }
 0x182   : > { %2004 = vmatprep.mubr.f32.mxu0 %v8219_v22 }
 0x185   : > { %5307 = vmatmul.mubr.msk.f32.vlgmr.msra.gmra.mrb[0].mxu0 %vm8231_vm1, %v1790_v14 }
 0x186   : > { %2010 = vmatprep.mubr.f32.mxu0 %v8219_v22 }
 0x189   : > { %5308 = vmatmul.mubr.msk.f32.gmra.mrb[2].mxu0 %vm8231_vm1, %v1791_v54 }
 0x18a   : > { %2016 = vmatprep.mubr.f32.mxu0 %v8219_v22 }
 0x18d   : > { %5309 = vmatmul.mubr.msk.f32.gmra.mrb[4].mxu0 %vm8231_vm1, %v1792_v17 }
 0x18e   : > { %2022 = vmatprep.mubr.f32.mxu0 %v8219_v22 }
 0x191   : > { %5310 = vmatmul.mubr.msk.f32.gmra.mrb[6].mxu0 %vm8231_vm1, %v1793_v51  ;;  %v8254_v51 = vmov 920167782  }
 0x192   : > { %2028 = vmatprep.mubr.f32.mxu0 %v8219_v22 }
 0x195   : > { %5311 = vmatmul.mubr.msk.f32.gmra.mrb[8].mxu0 %vm8231_vm1, %v1794_v30 }
 0x196   : > { %2034 = vmatprep.mubr.f32.mxu0 %v8219_v22 }
 0x199   : > { %5312 = vmatmul.mubr.msk.f32.gmra.mrb[10].mxu0 %vm8231_vm1, %v1795_v61 }
 0x19a   : > { %5149 = vmatprep.mubr.f32.mxu0 %v8219_v22 }
 0x258   : > { %v2006_v26 = vpop.f32.mrb[0].mxu0 }
 0x259   : > { %v6786_v57 = vadd.f32 %v2050_v45, %v2006_v26  ;;  %v2008_v29 = vpop.f32.mrb[1].mxu0 }
 0x25a   : > { %v6788_v46 = vadd.f32 %v2050_v45, %v2008_v29 }
 0x25b   : > { %v6791_v21 = vmul.f32 5.0, %v6786_v57 }
 0x25c   : > { %v6794_v39 = vmul.f32 5.0, %v6788_v46  ;;  %v2012_v0 = vpop.f32.mrb[2].mxu0 }
 0x25d   : > { %v8223_v59 = vand.u32 2147483647, %v6791_v21  ;;  %v2146_v62 = vand.u32 2139095040, %v6791_v21  ;;  %v6798_v53 = vadd.f32 %v2055_v44, %v2012_v0  ;;  %v2014_v5 = vpop.f32.mrb[3].mxu0  ;;  %v8255_v0 = vmov 1326507024  }
 0x25e   : > { %v8226_v58 = vand.u32 2147483647, %v6794_v39  ;;  %v2249_v37 = vand.u32 2139095040, %v6794_v39  ;;  %v6802_v19 = vadd.f32 %v2055_v44, %v2014_v5 }
 0x25f   : > { %v2147_v7 = vshrl.u32 %v2146_v62, 23  ;;  %v2150_v12 = vand.u32 8388607, %v8223_v59  ;;  %v6807_v3 = vmul.f32 5.0, %v6798_v53 }
 0x260   : > { %v2250_v50 = vshrl.u32 %v2249_v37, 23  ;;  %v2253_v47 = vand.u32 8388607, %v8226_v58  ;;  %v6811_v20 = vpop.f32.mrb[4].mxu0  ;;  %v6815_v1 = vmul.f32 5.0, %v6802_v19 }
 0x261   : > { %v5313_v49 = vadd.s32 4294967169, %v2147_v7  ;;  %v8221_v52 = vand.u32 2147483647, %v6807_v3  ;;  %v6817_v36 = vpop.f32.mrb[5].mxu0  ;;  %v2151_v27 = vor.u32 8388608, %v2150_v12  ;;  %v2352_v9 = vand.u32 2139095040, %v6807_v3 }
 0x262   : > { %v5317_v8 = vadd.s32 4294967169, %v2250_v50  ;;  %v2254_v55 = vor.u32 8388608, %v2253_v47  ;;  %v8225_v32 = vand.u32 2147483647, %v6815_v1  ;;  %v2455_v34 = vand.u32 2139095040, %v6815_v1 }
 0x263   : > { %v2153_v24 = vadd.s32 1, %v5313_v49  ;;  %v2353_v31 = vshrl.u32 %v2352_v9, 23  ;;  %v6822_v23 = vand.u32 8388607, %v8221_v52  ;;  %v6829_v42 = vshll.u32 %v2151_v27, 8 }
 0x264   : > { %v2256_v48 = vadd.s32 1, %v5317_v8  ;;  %v6824_v10 = vpop.f32.mrb[6].mxu0  ;;  %v6831_v15 = vshll.u32 %v2254_v55, 8 }
 0x265   : > { %vm2154_vm2 = vcmp.gt.s32.totalorder %v2153_v24, 0  ;;  %v6827_v38 = vpop.f32.mrb[7].mxu0  ;;  %v5321_v2 = vadd.s32 4294967169, %v2353_v31  ;;  %v2357_v28 = vor.u32 8388608, %v6822_v23 }
 0x266   : > { %v2155_v41 = vsel %vm2154_vm2, %v2153_v24, 0  ;;  %vm2257_vm3 = vcmp.gt.s32.totalorder %v2256_v48, 0 }
 0x267   : > { %v2156_v18 = vshrl.u32 %v2155_v41, 5  ;;  %v2157_v25 = vand.u32 31, %v2155_v41  ;;  %v2258_v43 = vsel %vm2257_vm3, %v2256_v48, 0  ;;  %v6841_v33 = vadd.s32 1, %v5321_v2 }
 0x268   : > { %v6833_v63 = vshrl.u32 %v2258_v43, 5  ;;  %v2260_v6 = vand.u32 31, %v2258_v43  ;;  %v6837_v13 = vpop.f32.mrb[8].mxu0 }
 0x269   : > { %v2158_v16 = vsub.s32 32, %v2157_v25  ;;  %v2160_v35 = vshll.u32 %v5795_v4, %v2157_v25  ;;  %v2163_v60 = vshll.u32 %v8243_v40, %v2157_v25  ;;  %v6843_v14 = vpop.f32.mrb[9].mxu0  ;;  %v2166_v54 = vshll.u32 %v8244_v11, %v2157_v25 }
 0x26a   : > { %v2169_v17 = vshll.u32 %v8245_v56, %v2157_v25  ;;  %v2172_v30 = vshll.u32 %v8254_v51, %v2157_v25  ;;  %vm2175_vm4 = vcmp.lt.s32.totalorder %v2156_v18, 1  ;;  %vm2176_vm5 = vcmp.lt.s32.totalorder %v2156_v18, 2 }
 0x26b   : > { %v2161_v61 = vshrl.u32 %v8243_v40, %v2158_v16  ;;  %v2164_v45 = vshrl.u32 %v8244_v11, %v2158_v16  ;;  %v2167_v26 = vshrl.u32 %v8245_v56, %v2158_v16  ;;  %v2159_v29 = vshrl.u32 %v5795_v4, %v2158_v16 }
 0x26c   : > { %v2170_v44 = vshrl.u32 %v8254_v51, %v2158_v16  ;;  %v2173_v62 = vshrl.u32 %v8255_v0, %v2158_v16  ;;  %vm2177_vm6 = vcmp.lt.s32.totalorder %v2156_v18, 3  ;;  %v6854_v5 = vpop.f32.mrb[10].mxu0  ;;  %v2261_v50 = vsub.s32 32, %v2260_v6 }
 0x26d   : > { %v2162_v37 = vor.u32 %v2161_v61, %v2160_v35  ;;  %v2165_v7 = vor.u32 %v2164_v45, %v2163_v60  ;;  %v2168_v12 = vor.u32 %v2167_v26, %v2166_v54  ;;  %v6856_v47 = vpop.f32.mrb[11].mxu0  ;;  %vm2178_vm7 = vcmp.lt.s32.totalorder %v2156_v18, 4 }
 0x26e   : > { %v2171_v49 = vor.u32 %v2170_v44, %v2169_v17  ;;  %v2174_v27 = vor.u32 %v2173_v62, %v2172_v30  ;;  %v2263_v8 = vshll.u32 %v5795_v4, %v2260_v6  ;;  %v2266_v25 = vshll.u32 %v8243_v40, %v2260_v6 }
 0x26f   : > { %v2179_v9 = vsel %vm2175_vm4, %v2159_v29, %v2162_v37  ;;  %v2180_v24 = vsel %vm2178_vm7, %v2168_v12, 2102212464  ;;  %v2183_v55 = vsel %vm2175_vm4, %v2162_v37, %v2165_v7  ;;  %v2187_v48 = vsel %vm2175_vm4, %v2165_v7, %v2168_v12 }
 0x270   : > { %v2181_v31 = vsel %vm2177_vm6, %v2165_v7, %v2180_v24  ;;  %v2184_v41 = vsel %vm2178_vm7, %v2171_v49, 920167782  ;;  %v2188_v2 = vsel %vm2178_vm7, %v2174_v27, 1326507024  ;;  %v2262_v35 = vshrl.u32 %v5795_v4, %v2261_v50 }
 0x271   : > { %v2185_v43 = vsel %vm2177_vm6, %v2168_v12, %v2184_v41  ;;  %v2189_v16 = vsel %vm2177_vm6, %v2171_v49, %v2188_v2  ;;  %v2264_v60 = vshrl.u32 %v8243_v40, %v2261_v50  ;;  %v2182_v54 = vsel %vm2176_vm5, %v2179_v9, %v2181_v31 }
 0x272   : > { %v2186_v17 = vsel %vm2176_vm5, %v2183_v55, %v2185_v43  ;;  %v2190_v30 = vsel %vm2176_vm5, %v2187_v48, %v2189_v16  ;;  %v2267_v61 = vshrl.u32 %v8244_v11, %v2261_v50  ;;  %v2269_v7 = vshll.u32 %v8244_v11, %v2260_v6 }
 0x273   : > { %v6873_v45 = vmul.u32.u64.low %v6829_v42, %v2190_v30  ;;  %v6874_v26 = vmul.u32.u64.high %v6829_v42, %v2190_v30, %v6873_v45  ;;  %v6877_v29 = vmul.u32.u64.low %v6829_v42, %v2186_v17  ;;  %v6878_v44 = vmul.u32.u64.high %v6829_v42, %v2186_v17, %v6877_v29 }
 0x274   : > { %v2265_v62 = vor.u32 %v2264_v60, %v2263_v8  ;;  %v2268_v37 = vor.u32 %v2267_v61, %v2266_v25  ;;  %v2270_v12 = vshrl.u32 %v8245_v56, %v2261_v50  ;;  %v2198_v18 = vmul.u32 %v6829_v42, %v2182_v54 }
 0x275   : > { %v2272_v49 = vshll.u32 %v8245_v56, %v2260_v6  ;;  %v2273_v27 = vshrl.u32 %v8254_v51, %v2261_v50  ;;  %v2276_v9 = vshrl.u32 %v8255_v0, %v2261_v50  ;;  %v2275_v55 = vshll.u32 %v8254_v51, %v2260_v6 }
 0x276   : > { %v2271_v24 = vor.u32 %v2270_v12, %v2269_v7  ;;  %vm2278_vm8 = vcmp.lt.s32.totalorder %v6833_v63, 1  ;;  %vm2279_vm11 = vcmp.lt.s32.totalorder %v6833_v63, 2  ;;  %vm2200_vm9 = vc.u32 %v6874_v26, %v6877_v29 }
 0x277   : > { %v2201_v8 = vadd.s32 1, %v6878_v44  ;;  %v2274_v48 = vor.u32 %v2273_v27, %v2272_v49  ;;  %vm2280_vm10 = vcmp.lt.s32.totalorder %v6833_v63, 3  ;;  %v2277_v42 = vor.u32 %v2276_v9, %v2275_v55 }
 0x278   : > { %vm2281_vm12 = vcmp.lt.s32.totalorder %v6833_v63, 4  ;;  %v2282_v31 = vsel %vm2278_vm8, %v2262_v35, %v2265_v62  ;;  %v2286_v50 = vsel %vm2278_vm8, %v2265_v62, %v2268_v37  ;;  %v2290_v25 = vsel %vm2278_vm8, %v2268_v37, %v2271_v24 }
 0x279   : > { %v2202_v41 = vsel %vm2200_vm9, %v2201_v8, %v6878_v44  ;;  %v2283_v6 = vsel %vm2281_vm12, %v2271_v24, 2102212464  ;;  %v2287_v2 = vsel %vm2281_vm12, %v2274_v48, 920167782  ;;  %v2291_v54 = vsel %vm2281_vm12, %v2277_v42, 1326507024 }
 0x27a   : > { %v2203_v43 = vadd.s32 %v2202_v41, %v2198_v18  ;;  %v2284_v16 = vsel %vm2280_vm10, %v2268_v37, %v2283_v6  ;;  %v2288_v60 = vsel %vm2280_vm10, %v2271_v24, %v2287_v2  ;;  %v2292_v30 = vsel %vm2280_vm10, %v2274_v48, %v2291_v54 }
 0x27b   : > { %v2289_v17 = vsel %vm2279_vm11, %v2286_v50, %v2288_v60  ;;  %vm2360_vm13 = vcmp.gt.s32.totalorder %v6841_v33, 0  ;;  %v2456_v61 = vshrl.u32 %v2455_v34, 23  ;;  %v2293_v45 = vsel %vm2279_vm11, %v2290_v25, %v2292_v30 }
 0x27c   : > { %v2204_v35 = vadd.s32 536870912, %v2203_v43  ;;  %v6904_v44 = vmul.u32.u64.low %v6831_v15, %v2289_v17  ;;  %v6905_v62 = vmul.u32.u64.high %v6831_v15, %v2289_v17, %v6904_v44  ;;  %v2285_v37 = vsel %vm2279_vm11, %v2282_v31, %v2284_v16 }
 0x27d   : > { %v6911_v7 = vmul.u32.u64.low %v6831_v15, %v2293_v45  ;;  %v6912_v12 = vmul.u32.u64.high %v6831_v15, %v2293_v45, %v6911_v7  ;;  %v2361_v18 = vsel %vm2360_vm13, %v6841_v33, 0  ;;  %v6919_v27 = vmul.f32 %v6786_v57, %v6786_v57 }
 0x27e   : > { %v6915_v49 = vshrl.u32 %v2204_v35, 30  ;;  %v2363_v34 = vand.u32 31, %v2361_v18  ;;  %v6923_v9 = vshll.u32 %v2357_v28, 8  ;;  %v5325_v24 = vadd.s32 4294967169, %v2456_v61 }
 0x27f   : > { %v6927_v63 = vand.u32 8388607, %v8225_v32  ;;  %v2301_v33 = vmul.u32 %v6831_v15, %v2285_v37  ;;  %v2304_v8 = vadd.s32 1, %v6905_v62  ;;  %vm2303_vm14 = vc.u32 %v6912_v12, %v6904_v44 }
 0x280   : > { %8256 = vst [vmem:[#allocation5_spill] sm:$0xff] %v6915_v49  ;;  %v2206_v55 = vshll.u32 %v6915_v49, 30  ;;  %v2364_v48 = vsub.s32 32, %v2363_v34  ;;  %v2362_v57 = vshrl.u32 %v2361_v18, 5  ;;  %v2366_v23 = vshll.u32 %v5795_v4, %v2363_v34 }
 0x281   : > { %v2369_v28 = vshll.u32 %v8243_v40, %v2363_v34  ;;  %v2305_v31 = vsel %vm2303_vm14, %v2304_v8, %v6905_v62  ;;  %v2372_v41 = vshll.u32 %v8244_v11, %v2363_v34  ;;  %v2375_v25 = vshll.u32 %v8245_v56, %v2363_v34 }
 0x282   : > { %v6936_v42 = vsub.s32 %v2203_v43, %v2206_v55  ;;  %v2367_v50 = vshrl.u32 %v8243_v40, %v2364_v48  ;;  %v2306_v15 = vadd.s32 %v2305_v31, %v2301_v33  ;;  %v2370_v6 = vshrl.u32 %v8244_v11, %v2364_v48 }
 0x283   : > { %v2373_v2 = vshrl.u32 %v8245_v56, %v2364_v48  ;;  %v2376_v54 = vshrl.u32 %v8254_v51, %v2364_v48  ;;  %v2378_v43 = vshll.u32 %v8254_v51, %v2363_v34  ;;  %v2379_v35 = vshrl.u32 %v8255_v0, %v2364_v48 }
 0x284   : > { %v2209_v16 = vsub.s32 0, %v6936_v42  ;;  %v2368_v60 = vor.u32 %v2367_v50, %v2366_v23  ;;  %v2307_v17 = vadd.s32 536870912, %v2306_v15  ;;  %v2371_v30 = vor.u32 %v2370_v6, %v2369_v28 }
 0x285   : > { %v2374_v61 = vor.u32 %v2373_v2, %v2372_v41  ;;  %v2365_v62 = vshrl.u32 %v5795_v4, %v2364_v48  ;;  %v2377_v37 = vor.u32 %v2376_v54, %v2375_v25  ;;  %v2462_v7 = vadd.s32 1, %v5325_v24 }
 0x286   : > { %v5314_v45 = vmin.u32 %v2209_v16, %v6936_v42  ;;  %v6950_v18 = vshrl.u32 %v2307_v17, 30  ;;  %v2380_v55 = vor.u32 %v2379_v35, %v2378_v43  ;;  %vm2381_vm15 = vcmp.lt.s32.totalorder %v2362_v57, 1  ;;  %v2060_v35 = vpop.permute.xlu1 %2059 }
 0x287   : > { %vm2384_vm0 = vcmp.lt.s32.totalorder %v2362_v57, 4  ;;  %vm2382_vm2 = vcmp.lt.s32.totalorder %v2362_v57, 2  ;;  %v2389_v34 = vsel %vm2381_vm15, %v2368_v60, %v2371_v30  ;;  %vm2383_vm3 = vcmp.lt.s32.totalorder %v2362_v57, 3 }
 0x288   : > { %v2211_v33 = vclz %v5314_v45  ;;  %v2386_v8 = vsel %vm2384_vm0, %v2374_v61, 2102212464  ;;  %v2309_v23 = vshll.u32 %v6950_v18, 30  ;;  %v2390_v28 = vsel %vm2384_vm0, %v2377_v37, 920167782 }
 0x289   : > { %v2393_v31 = vsel %vm2381_vm15, %v2371_v30, %v2374_v61  ;;  %v2385_v41 = vsel %vm2381_vm15, %v2365_v62, %v2368_v60  ;;  %v2391_v6 = vsel %vm2383_vm3, %v2374_v61, %v2390_v28  ;;  %v2394_v48 = vsel %vm2384_vm0, %v2380_v55, 1326507024 }
 0x28a   : > { %v5315_v50 = vadd.s32 4294967294, %v2211_v33  ;;  %v6953_v2 = vsub.s32 %v2306_v15, %v2309_v23  ;;  %v2387_v24 = vsel %vm2383_vm3, %v2371_v30, %v2386_v8  ;;  %v2392_v25 = vsel %vm2382_vm2, %v2389_v34, %v2391_v6 }
 0x28b   : > { %v2395_v16 = vsel %vm2383_vm3, %v2377_v37, %v2394_v48  ;;  %v6958_v43 = vmul.u32.u64.low %v6923_v9, %v2392_v25  ;;  %v6959_v17 = vmul.u32.u64.high %v6923_v9, %v2392_v25, %v6958_v43  ;;  %v2388_v62 = vsel %vm2382_vm2, %v2385_v41, %v2387_v24 }
 0x28c   : > { %vm5316_vm4 = vcmp.lt.s32.totalorder %v5315_v50, 0  ;;  %v2396_v54 = vsel %vm2382_vm2, %v2393_v31, %v2395_v16  ;;  %v2312_v60 = vsub.s32 0, %v6953_v2  ;;  %vm2463_vm5 = vcmp.gt.s32.totalorder %v2462_v7, 0 }
 0x28d   : > { %v2214_v45 = vsel %vm5316_vm4, 0, %v5315_v50  ;;  %v6964_v61 = vmul.u32.u64.low %v6923_v9, %v2396_v54  ;;  %v6965_v15 = vmul.u32.u64.high %v6923_v9, %v2396_v54, %v6964_v61  ;;  %v6969_v37 = vadd.f32 %v2060_v35, %v6811_v20 }
 0x28e   : > { %v2219_v30 = vsub.s32 4294967266, %v2214_v45  ;;  %v6973_v55 = vmul.f32 %v6788_v46, %v6788_v46  ;;  %v5318_v33 = vmin.u32 %v2312_v60, %v6953_v2  ;;  %v6978_v8 = vmul.f32 %v6798_v53, %v6798_v53 }
 0x28f   : > { %v2464_v34 = vsel %vm2463_vm5, %v2462_v7, 0  ;;  %v2215_v23 = vsub.s32 32, %v2214_v45  ;;  %v2407_v57 = vadd.s32 1, %v6959_v17  ;;  %v2460_v31 = vor.u32 8388608, %v6927_v63 }
 0x290   : > { %v2220_v28 = vadd.s32 127, %v2219_v30  ;;  %v2314_v50 = vclz %v5318_v33  ;;  %v2404_v20 = vmul.u32 %v6923_v9, %v2388_v62  ;;  %vm2406_vm6 = vc.u32 %v6965_v15, %v6958_v43 }
 0x291   : > { %v2466_v46 = vand.u32 31, %v2464_v34  ;;  %v2199_v41 = vadd.s32 %v6877_v29, %v6874_v26  ;;  %v2408_v53 = vsel %vm2406_vm6, %v2407_v57, %v6959_v17  ;;  %v6989_v7 = vmul.f32 5.0, %v6969_v37 }
 0x292   : > { %v6992_v6 = vadd.f32 %v2060_v35, %v6817_v36  ;;  %v2302_v63 = vadd.s32 %v6904_v44, %v6912_v12  ;;  %v5319_v48 = vadd.s32 4294967294, %v2314_v50  ;;  %v2409_v9 = vadd.s32 %v2408_v53, %v2404_v20 }
 0x293   : > { %v2467_v24 = vsub.s32 32, %v2466_v46  ;;  %v2216_v25 = vshll.u32 %v6936_v42, %v2214_v45  ;;  %v2217_v16 = vshrl.u32 %v2199_v41, %v2215_v23  ;;  %v2221_v54 = vshll.u32 %v2220_v28, 23 }
 0x294   : > { %v6997_v60 = vshll.u32 %v2460_v31, 8  ;;  %vm5320_vm7 = vcmp.lt.s32.totalorder %v5319_v48, 0  ;;  %v2410_v26 = vadd.s32 536870912, %v2409_v9  ;;  %v2465_v29 = vshrl.u32 %v2464_v34, 5 }
 0x295   : > { %v2470_v17 = vshrl.u32 %v8243_v40, %v2467_v24  ;;  %v2317_v61 = vsel %vm5320_vm7, 0, %v5319_v48  ;;  %v2469_v36 = vshll.u32 %v5795_v4, %v2466_v46  ;;  %v2473_v35 = vshrl.u32 %v8244_v11, %v2467_v24 }
 0x296   : > { %v2476_v44 = vshrl.u32 %v8245_v56, %v2467_v24  ;;  %v2322_v12 = vsub.s32 4294967266, %v2317_v61  ;;  %v7003_v30 = vshrl.u32 %v2410_v26, 30  ;;  %v2472_v42 = vshll.u32 %v8243_v40, %v2466_v46 }
 0x297   : > { %v2475_v45 = vshll.u32 %v8244_v11, %v2466_v46  ;;  %v2222_v62 = vor.u32 4788187, %v2221_v54  ;;  %v2318_v33 = vsub.s32 32, %v2317_v61  ;;  %v2471_v23 = vor.u32 %v2470_v17, %v2469_v36 }
 0x298   : > { %8257 = vst [vmem:[#allocation6_spill] sm:$0xff] %v7003_v30  ;;  %v8224_v34 = vand.u32 2147483647, %v6989_v7  ;;  %v2323_v28 = vadd.s32 127, %v2322_v12  ;;  %v2412_v57 = vshll.u32 %v7003_v30, 30  ;;  %v2474_v31 = vor.u32 %v2473_v35, %v2472_v42 }
 0x299   : > { %v2477_v50 = vor.u32 %v2476_v44, %v2475_v45  ;;  %v2478_v20 = vshll.u32 %v8245_v56, %v2466_v46  ;;  %v2479_v41 = vshrl.u32 %v8254_v51, %v2467_v24  ;;  %v2481_v53 = vshll.u32 %v8254_v51, %v2466_v46 }
 0x29a   : > { %v2482_v48 = vshrl.u32 %v8255_v0, %v2467_v24  ;;  %v2218_v26 = vor.u32 %v2217_v16, %v2216_v25  ;;  %v2324_v22 = vshll.u32 %v2323_v28, 23  ;;  %v7013_v54 = vsub.s32 %v2409_v9, %v2412_v57 }
 0x29b   : > { %vm2484_vm8 = vcmp.lt.s32.totalorder %v2465_v29, 1  ;;  %v2320_v17 = vshrl.u32 %v2302_v63, %v2318_v33  ;;  %v2468_v36 = vshrl.u32 %v5795_v4, %v2467_v24  ;;  %v2480_v12 = vor.u32 %v2479_v41, %v2478_v20 }
 0x29c   : > { %v2483_v52 = vor.u32 %v2482_v48, %v2481_v53  ;;  %v2223_v35 = vand.u32 2147483647, %v2222_v62  ;;  %v2319_v44 = vshll.u32 %v6953_v2, %v2317_v61  ;;  %v2415_v42 = vsub.s32 0, %v7013_v54 }
 0x29d   : > { %vm2487_vm11 = vcmp.lt.s32.totalorder %v2465_v29, 4  ;;  %vm2486_vm9 = vcmp.lt.s32.totalorder %v2465_v29, 3  ;;  %v2492_v45 = vsel %vm2484_vm8, %v2471_v23, %v2474_v31  ;;  %v2325_v16 = vor.u32 4788187, %v2324_v22 }
 0x29e   : > { %v2489_v46 = vsel %vm2487_vm11, %v2477_v50, 2102212464  ;;  %v2493_v25 = vsel %vm2487_vm11, %v2480_v12, 920167782  ;;  %v5322_v9 = vmin.u32 %v2415_v42, %v7013_v54  ;;  %vm2485_vm10 = vcmp.lt.s32.totalorder %v2465_v29, 2 }
 0x29f   : > { %v2494_v63 = vsel %vm2486_vm9, %v2477_v50, %v2493_v25  ;;  %v2321_v33 = vor.u32 %v2320_v17, %v2319_v44  ;;  %v2496_v62 = vsel %vm2484_vm8, %v2474_v31, %v2477_v50  ;;  %v2497_v28 = vsel %vm2487_vm11, %v2483_v52, 1326507024 }
 0x2a0   : > { %v2495_v24 = vsel %vm2485_vm10, %v2492_v45, %v2494_v63  ;;  %v2417_v2 = vclz %v5322_v9  ;;  %v2488_v61 = vsel %vm2484_vm8, %v2468_v36, %v2471_v23  ;;  %v2490_v57 = vsel %vm2486_vm9, %v2474_v31, %v2489_v46 }
 0x2a1   : > { %v2498_v20 = vsel %vm2486_vm9, %v2480_v12, %v2497_v28  ;;  %v2225_v41 = vcvt.s32.f32 %v2218_v26  ;;  %v7025_v22 = vmul.u32.u64.low %v6997_v60, %v2495_v24  ;;  %v7026_v48 = vmul.u32.u64.high %v6997_v60, %v2495_v24, %v7025_v22 }
 0x2a2   : > { %v2499_v53 = vsel %vm2485_vm10, %v2496_v62, %v2498_v20  ;;  %v2326_v42 = vand.u32 2147483647, %v2325_v16  ;;  %v5323_v25 = vadd.s32 4294967294, %v2417_v2  ;;  %v7034_v52 = vmul.f32 %v6802_v19, %v6802_v19  ;;  %v7050_v16 = vpop.permute.xlu0 %2064 }
 0x2a3   : > { %v7029_v17 = vmul.u32.u64.low %v6997_v60, %v2499_v53  ;;  %v7030_v44 = vmul.u32.u64.high %v6997_v60, %v2499_v53, %v7029_v17  ;;  %v2491_v23 = vsel %vm2485_vm10, %v2488_v61, %v2490_v57  ;;  %v7039_v31 = vmul.f32 %v6969_v37, %v6969_v37 }
 0x2a4   : > { %v2558_v50 = vand.u32 2139095040, %v6989_v7  ;;  %v7042_v26 = vmul.f32 %v2225_v41, %v2223_v35  ;;  %v2328_v36 = vcvt.s32.f32 %v2321_v33  ;;  %vm5324_vm12 = vcmp.lt.s32.totalorder %v5323_v25, 0 }
 0x2a5   : > { %v7045_v12 = vmul.f32 5.0, %v6992_v6  ;;  %v2420_v46 = vsel %vm5324_vm12, 0, %v5323_v25  ;;  %v2510_v45 = vadd.s32 1, %v7026_v48  ;;  %v2562_v29 = vand.u32 8388607, %v8224_v34 }
 0x2a6   : > { %v2559_v19 = vshrl.u32 %v2558_v50, 23  ;;  %v7052_v37 = vmul.f32 %v2328_v36, %v2326_v42  ;;  %v2421_v9 = vsub.s32 32, %v2420_v46  ;;  %v2425_v63 = vsub.s32 4294967266, %v2420_v46 }
 0x2a7   : > { %v2507_v35 = vmul.u32 %v6997_v60, %v2491_v23  ;;  %vm2509_vm13 = vc.u32 %v7030_v44, %v7025_v22  ;;  %v8222_v24 = vand.u32 2147483647, %v7045_v12  ;;  %v2083_v62 = vadd.f32 %v7050_v16, %v6824_v10 }
 0x2a8   : > { %v5329_v33 = vadd.s32 4294967169, %v2559_v19  ;;  %v2405_v2 = vadd.s32 %v6958_v43, %v6965_v15  ;;  %v2426_v61 = vadd.s32 127, %v2425_v63  ;;  %v2511_v57 = vsel %vm2509_vm13, %v2510_v45, %v7026_v48 }
 0x2a9   : > { %v2512_v20 = vadd.s32 %v2511_v57, %v2507_v35  ;;  %v2563_v41 = vor.u32 8388608, %v2562_v29  ;;  %v2661_v60 = vand.u32 2139095040, %v7045_v12  ;;  %v2665_v10 = vand.u32 8388607, %v8222_v24 }
 0x2aa   : > { %v2565_v53 = vadd.s32 1, %v5329_v33  ;;  %v2423_v25 = vshrl.u32 %v2405_v2, %v2421_v9  ;;  %v2427_v17 = vshll.u32 %v2426_v61, 23  ;;  %v2101_v36 = vmul.f32 %v2083_v62, %v2083_v62 }
 0x2ab   : > { %v2513_v23 = vadd.s32 536870912, %v2512_v20  ;;  %v2662_v50 = vshrl.u32 %v2661_v60, 23  ;;  %v2422_v43 = vshll.u32 %v7013_v54, %v2420_v46  ;;  %v7072_v45 = vmul.f32 %v6992_v6, %v6992_v6 }
 0x2ac   : > { %vm2566_vm14 = vcmp.gt.s32.totalorder %v2565_v53, 0  ;;  %v7068_v15 = vor.u32 4788187, %v2427_v17  ;;  %v7075_v19 = vadd.s32 %v7025_v22, %v7030_v44  ;;  %v7079_v63 = vshll.u32 %v2563_v41, 8 }
 0x2ad   : > { %v2567_v48 = vsel %vm2566_vm14, %v2565_v53, 0  ;;  %v7077_v29 = vshrl.u32 %v2513_v23, 30  ;;  %v7081_v35 = vor.u32 %v2423_v25, %v2422_v43  ;;  %v2666_v33 = vor.u32 8388608, %v2665_v10 }
 0x2ae   : > { %v2569_v9 = vand.u32 31, %v2567_v48  ;;  %v7083_v2 = vmul.f32 -5.0, %v2083_v62  ;;  %v2107_v54 = vadd.f32 %v2101_v36, %v6919_v27  ;;  %v2568_v61 = vshrl.u32 %v2567_v48, 5 }
 0x2af   : > { %v2515_v46 = vshll.u32 %v7077_v29, 30  ;;  %v5333_v57 = vadd.s32 4294967169, %v2662_v50  ;;  %vm2248_vm7 = vcmp.lt.s32.totalorder %v6794_v39, 0  ;;  %vm2145_vm14 = vcmp.lt.s32.totalorder %v6791_v21, 0 }
 0x2b0   : > { %v2570_v6 = vsub.s32 32, %v2569_v9  ;;  %v2572_v44 = vshll.u32 %v5795_v4, %v2569_v9  ;;  %v2575_v53 = vshll.u32 %v8243_v40, %v2569_v9  ;;  %v2578_v41 = vshll.u32 %v8244_v11, %v2569_v9 }
 0x2b1   : > { %v7091_v60 = vsub.s32 %v2512_v20, %v2515_v46  ;;  %v2581_v27 = vshll.u32 %v8245_v56, %v2569_v9  ;;  %v2584_v23 = vshll.u32 %v8254_v51, %v2569_v9  ;;  %vm2587_vm15 = vcmp.lt.s32.totalorder %v2568_v61, 1 }
 0x2b2   : > { %v2573_v62 = vshrl.u32 %v8243_v40, %v2570_v6  ;;  %v2576_v25 = vshrl.u32 %v8244_v11, %v2570_v6  ;;  %v2579_v17 = vshrl.u32 %v8245_v56, %v2570_v6  ;;  %v2582_v10 = vshrl.u32 %v8254_v51, %v2570_v6 }
 0x2b3   : > { %v2585_v50 = vshrl.u32 %v8255_v0, %v2570_v6  ;;  %v2518_v36 = vsub.s32 0, %v7091_v60  ;;  %v2571_v43 = vshrl.u32 %v5795_v4, %v2570_v6  ;;  %vm2588_vm0 = vcmp.lt.s32.totalorder %v2568_v61, 2 }
 0x2b4   : > { %v2574_v20 = vor.u32 %v2573_v62, %v2572_v44  ;;  %v2577_v48 = vor.u32 %v2576_v25, %v2575_v53  ;;  %v2580_v46 = vor.u32 %v2579_v17, %v2578_v41  ;;  %v2583_v24 = vor.u32 %v2582_v10, %v2581_v27 }
 0x2b5   : > { %v2586_v59 = vor.u32 %v2585_v50, %v2584_v23  ;;  %v5326_v34 = vmin.u32 %v2518_v36, %v7091_v60  ;;  %vm2589_vm2 = vcmp.lt.s32.totalorder %v2568_v61, 3  ;;  %vm2590_vm3 = vcmp.lt.s32.totalorder %v2568_v61, 4 }
 0x2b6   : > { %v2591_v32 = vsel %vm2587_vm15, %v2571_v43, %v2574_v20  ;;  %v2592_v28 = vsel %vm2590_vm3, %v2580_v46, 2102212464  ;;  %v2595_v9 = vsel %vm2587_vm15, %v2574_v20, %v2577_v48  ;;  %v2596_v58 = vsel %vm2590_vm3, %v2583_v24, 920167782 }
 0x2b7   : > { %v2520_v22 = vclz %v5326_v34  ;;  %v2593_v42 = vsel %vm2589_vm2, %v2577_v48, %v2592_v28  ;;  %v2597_v30 = vsel %vm2589_vm2, %v2580_v46, %v2596_v58  ;;  %v2599_v49 = vsel %vm2587_vm15, %v2577_v48, %v2580_v46 }
 0x2b8   : > { %v2598_v6 = vsel %vm2588_vm0, %v2595_v9, %v2597_v30  ;;  %v2600_v44 = vsel %vm2590_vm3, %v2586_v59, 1326507024  ;;  %v2668_v53 = vadd.s32 1, %v5333_v57  ;;  %v7104_v41 = vshll.u32 %v2666_v33, 8 }
 0x2b9   : > { %v5327_v62 = vadd.s32 4294967294, %v2520_v22  ;;  %v2601_v25 = vsel %vm2589_vm2, %v2583_v24, %v2600_v44  ;;  %v7107_v27 = vmul.u32.u64.low %v7079_v63, %v2598_v6  ;;  %v7108_v17 = vmul.u32.u64.high %v7079_v63, %v2598_v6, %v7107_v27 }
 0x2ba   : > { %v2594_v10 = vsel %vm2588_vm0, %v2591_v32, %v2593_v42  ;;  %v2602_v34 = vsel %vm2588_vm0, %v2599_v49, %v2601_v25  ;;  %vm2669_vm4 = vcmp.gt.s32.totalorder %v2668_v53, 0  ;;  %v7113_v58 = vmul.f32 9.0, %v2107_v54 }
 0x2bb   : > { %vm5328_vm5 = vcmp.lt.s32.totalorder %v5327_v62, 0  ;;  %v7116_v59 = vmul.u32.u64.low %v7079_v63, %v2602_v34  ;;  %v7117_v30 = vmul.u32.u64.high %v7079_v63, %v2602_v34, %v7116_v59  ;;  %v2670_v28 = vsel %vm2669_vm4, %v2668_v53, 0 }
 0x2bc   : > { %v2523_v33 = vsel %vm5328_vm5, 0, %v5327_v62  ;;  %v2672_v24 = vand.u32 31, %v2670_v28  ;;  %v2119_v57 = vsub.f32 %v7083_v2, %v7113_v58  ;;  %v7123_v22 = vadd.f32 %v7050_v16, %v6827_v38 }
 0x2bd   : > { %v2524_v32 = vsub.s32 32, %v2523_v33  ;;  %v2528_v49 = vsub.s32 4294967266, %v2523_v33  ;;  %v2610_v42 = vmul.u32 %v7079_v63, %v2594_v10  ;;  %v2613_v54 = vadd.s32 1, %v7108_v17 }
 0x2be   : > { %v2525_v61 = vshll.u32 %v7091_v60, %v2523_v33  ;;  %v2671_v23 = vshrl.u32 %v2670_v28, 5  ;;  %v2673_v50 = vsub.s32 32, %v2672_v24  ;;  %v2675_v36 = vshll.u32 %v5795_v4, %v2672_v24 }
 0x2bf   : > { %v2526_v43 = vshrl.u32 %v7075_v19, %v2524_v32  ;;  %v2529_v20 = vadd.s32 127, %v2528_v49  ;;  %vm2612_vm6 = vc.u32 %v7117_v30, %v7107_v27  ;;  %v2678_v38 = vshll.u32 %v8243_v40, %v2672_v24 }
 0x2c0   : > { %v2614_v16 = vsel %vm2612_vm6, %v2613_v54, %v7108_v17  ;;  %v2676_v63 = vshrl.u32 %v8243_v40, %v2673_v50  ;;  %v2679_v48 = vshrl.u32 %v8244_v11, %v2673_v50  ;;  %v2681_v60 = vshll.u32 %v8244_v11, %v2672_v24 }
 0x2c1   : > { %v2527_v46 = vor.u32 %v2526_v43, %v2525_v61  ;;  %v2530_v9 = vshll.u32 %v2529_v20, 23  ;;  %v2615_v6 = vadd.s32 %v2614_v16, %v2610_v42  ;;  %v2682_v19 = vshrl.u32 %v8245_v56, %v2673_v50 }
 0x2c2   : > { %v2677_v44 = vor.u32 %v2676_v63, %v2675_v36  ;;  %v2680_v53 = vor.u32 %v2679_v48, %v2678_v38  ;;  %v2684_v62 = vshll.u32 %v8245_v56, %v2672_v24  ;;  %v2685_v25 = vshrl.u32 %v8254_v51, %v2673_v50 }
 0x2c3   : > { %v2531_v17 = vor.u32 4788187, %v2530_v9  ;;  %v2616_v10 = vadd.s32 536870912, %v2615_v6  ;;  %v2674_v34 = vshrl.u32 %v5795_v4, %v2673_v50  ;;  %v2683_v59 = vor.u32 %v2682_v19, %v2681_v60 }
 0x2c4   : > { %v2534_v28 = vcvt.s32.f32 %v2527_v46  ;;  %v2686_v33 = vor.u32 %v2685_v25, %v2684_v62  ;;  %v2687_v32 = vshll.u32 %v8254_v51, %v2672_v24  ;;  %v2688_v49 = vshrl.u32 %v8255_v0, %v2673_v50 }
 0x2c5   : > { %v2532_v42 = vand.u32 2147483647, %v2531_v17  ;;  %v7144_v54 = vshrl.u32 %v2616_v10, 30  ;;  %vm2690_vm8 = vcmp.lt.s32.totalorder %v2671_v23, 1  ;;  %vm2691_vm11 = vcmp.lt.s32.totalorder %v2671_v23, 2 }
 0x2c6   : > { %v2689_v61 = vor.u32 %v2688_v49, %v2687_v32  ;;  %vm2692_vm9 = vcmp.lt.s32.totalorder %v2671_v23, 3  ;;  %vm2693_vm10 = vcmp.lt.s32.totalorder %v2671_v23, 4  ;;  %v2698_v36 = vsel %vm2690_vm8, %v2677_v44, %v2680_v53 }
 0x2c7   : > { %v2618_v43 = vshll.u32 %v7144_v54, 30  ;;  %v2694_v20 = vsel %vm2690_vm8, %v2674_v34, %v2677_v44  ;;  %v2695_v38 = vsel %vm2693_vm10, %v2683_v59, 2102212464  ;;  %v2699_v16 = vsel %vm2693_vm10, %v2686_v33, 920167782 }
 0x2c8   : > { %v2696_v63 = vsel %vm2692_vm9, %v2680_v53, %v2695_v38  ;;  %v2700_v24 = vsel %vm2692_vm9, %v2683_v59, %v2699_v16  ;;  %v2702_v48 = vsel %vm2690_vm8, %v2680_v53, %v2683_v59  ;;  %v2703_v50 = vsel %vm2693_vm10, %v2689_v61, 1326507024 }
 0x2c9   : > { %v2431_v60 = vcvt.s32.f32 %v7081_v35  ;;  %v7150_v46 = vmul.f32 %v2534_v28, %v2532_v42  ;;  %v7152_v9 = vsub.s32 %v2615_v6, %v2618_v43  ;;  %v2701_v19 = vsel %vm2691_vm11, %v2698_v36, %v2700_v24  ;;  %v2070_v28 = vpop.permute.xlu1 %2069 }
 0x2ca   : > { %v8258_v62 = vxor.u32 2147483648, %v7052_v37  ;;  %v2704_v25 = vsel %vm2692_vm9, %v2686_v33, %v2703_v50  ;;  %v7164_v53 = vmul.u32.u64.low %v7104_v41, %v2701_v19  ;;  %v7165_v17 = vmul.u32.u64.high %v7104_v41, %v2701_v19, %v7164_v53 }
 0x2cb   : > { %v8259_v35 = vand.u32 2147483647, %v7068_v15  ;;  %v2621_v10 = vsub.s32 0, %v7152_v9  ;;  %v2697_v34 = vsel %vm2691_vm11, %v2694_v20, %v2696_v63  ;;  %v2705_v59 = vsel %vm2691_vm11, %v2702_v48, %v2704_v25  ;;  %v2075_v15 = vpop.permute.xlu0 %2074 }
 0x2cc   : > { %v7160_v44 = vsel %vm2248_vm7, %v8258_v62, %v7052_v37  ;;  %v2611_v37 = vadd.s32 %v7107_v27, %v7117_v30  ;;  %v7178_v33 = vmul.u32.u64.low %v7104_v41, %v2705_v59  ;;  %v7179_v32 = vmul.u32.u64.high %v7104_v41, %v2705_v59, %v7178_v33 }
 0x2cd   : > { %v7170_v6 = vmul.f32 %v2431_v60, %v8259_v35  ;;  %v2102_v49 = vmul.f32 %v7123_v22, %v7123_v22  ;;  %v2536_v42 = vxor.u32 2147483648, %v7150_v46  ;;  %v5330_v61 = vmin.u32 %v2621_v10, %v7152_v9 }
 0x2ce   : > { %v2085_v36 = vadd.f32 %v2070_v28, %v6837_v13  ;;  %v2086_v23 = vadd.f32 %v2070_v28, %v6843_v14  ;;  %v2713_v43 = vmul.u32 %v7104_v41, %v2697_v34  ;;  %v2716_v27 = vadd.s32 1, %v7165_v17 }
 0x2cf   : > { %v2108_v30 = vadd.f32 %v2102_v49, %v6973_v55  ;;  %v2087_v20 = vadd.f32 %v2075_v15, %v6854_v5  ;;  %v2623_v38 = vclz %v5330_v61  ;;  %v2125_v16 = vmul.f32 1.442695, %v2119_v57 }
 0x2d0   : > { %v2103_v63 = vmul.f32 %v2085_v36, %v2085_v36  ;;  %v2088_v24 = vadd.f32 %v2075_v15, %v6856_v47  ;;  %vm2715_vm12 = vc.u32 %v7179_v32, %v7164_v53  ;;  %v2090_v13 = vmul.f32 -5.0, %v7123_v22 }
 0x2d1   : > { %v2114_v14 = vmul.f32 9.0, %v2108_v30  ;;  %v2104_v41 = vmul.f32 %v2086_v23, %v2086_v23  ;;  %v5331_v48 = vadd.s32 4294967294, %v2623_v38  ;;  %v2717_v55 = vsel %vm2715_vm12, %v2716_v27, %v7165_v17 }
 0x2d2   : > { %v2091_v50 = vmul.f32 -5.0, %v2085_v36  ;;  %v2109_v5 = vadd.f32 %v2103_v63, %v6978_v8  ;;  %v2718_v60 = vadd.s32 %v2717_v55, %v2713_v43  ;;  %v2105_v58 = vmul.f32 %v2087_v20, %v2087_v20 }
 0x2d3   : > { %v2120_v19 = vsub.f32 %v2090_v13, %v2114_v14  ;;  %v2110_v2 = vadd.f32 %v2104_v41, %v7034_v52  ;;  %vm5332_vm13 = vcmp.lt.s32.totalorder %v5331_v48, 0  ;;  %v2092_v57 = vmul.f32 -5.0, %v2086_v23 }
 0x2d4   : > { %v2115_v47 = vmul.f32 9.0, %v2109_v5  ;;  %v2106_v62 = vmul.f32 %v2088_v24, %v2088_v24  ;;  %v2626_v22 = vsel %vm5332_vm13, 0, %v5331_v48  ;;  %v2719_v25 = vadd.s32 536870912, %v2718_v60 }
 0x2d5   : > { %v2127_v35 = vmul.f32 1.442695, %v2120_v19  ;;  %v2116_v10 = vmul.f32 9.0, %v2110_v2  ;;  %v2627_v34 = vsub.s32 32, %v2626_v22  ;;  %v2631_v17 = vsub.s32 4294967266, %v2626_v22 }
 0x2d6   : > { %5654 = vpow2.f32 %v2125_v16  ;;  %v2121_v59 = vsub.f32 %v2091_v50, %v2115_v47  ;;  %v7202_v8 = vshrl.u32 %v2719_v25, 30  ;;  %v2093_v33 = vmul.f32 -5.0, %v2087_v20 }
 0x2d7   : > { %v2122_v28 = vsub.f32 %v2092_v57, %v2116_v10  ;;  %v2111_v52 = vadd.f32 %v2105_v58, %v7039_v31  ;;  %v2628_v49 = vshll.u32 %v7152_v9, %v2626_v22  ;;  %v2629_v15 = vshrl.u32 %v2611_v37, %v2627_v34 }
 0x2d8   : > { %v2632_v61 = vadd.s32 127, %v2631_v17  ;;  %v2112_v36 = vadd.f32 %v2106_v62, %v7072_v45  ;;  %v2721_v23 = vshll.u32 %v7202_v8, 30  ;;  %5656 = vpow2.f32 %v2127_v35 }
 0x2d9   : > { %v2117_v43 = vmul.f32 9.0, %v2111_v52  ;;  %v2094_v27 = vmul.f32 -5.0, %v2088_v24  ;;  %v2630_v30 = vor.u32 %v2629_v15, %v2628_v49  ;;  %v2129_v16 = vmul.f32 1.442695, %v2121_v59 }
 0x2da   : > { %v2633_v38 = vshll.u32 %v2632_v61, 23  ;;  %v2118_v63 = vmul.f32 9.0, %v2112_v36  ;;  %vm8233_vm15 = vcmp.lt.s32.totalorder %v6807_v3, 0  ;;  %v7209_v20 = vsub.s32 %v2718_v60, %v2721_v23 }
 0x2db   : > { %v2123_v31 = vsub.f32 %v2093_v33, %v2117_v43  ;;  %v8260_v9 = vand.u32 2147483647, %v6794_v39  ;;  %v2332_v45 = vsub.s32 4, %v6950_v18  ;;  %v2131_v14 = vmul.f32 1.442695, %v2122_v28 }
 0x2dc   : > { %v2634_v13 = vor.u32 4788187, %v2633_v38  ;;  %v2124_v24 = vsub.f32 %v2094_v27, %v2118_v63  ;;  %vm2454_vm2 = vcmp.lt.s32.totalorder %v6815_v1, 0  ;;  %v2724_v48 = vsub.s32 0, %v7209_v20 }
 0x2dd   : > { %vm7213_vm0 = vcmp.le.f32.partialorder %v8260_v9, 0.7853982  ;;  %v2333_v55 = vsel %vm2248_vm7, %v2332_v45, %v6950_v18  ;;  %v8263_v50 = vxor.u32 2147483648, %v7042_v26  ;;  %v2637_v19 = vcvt.s32.f32 %v2630_v30 }
 0x2de   : > { %v2334_v41 = vsel %vm7213_vm0, %v6794_v39, %v7160_v44  ;;  %v2635_v60 = vand.u32 2147483647, %v2634_v13  ;;  %v2537_v44 = vsel %vm2454_vm2, %v2536_v42, %v7150_v46  ;;  %v5334_v2 = vmin.u32 %v2724_v48, %v7209_v20 }
 0x2df   : > { %5658 = vcosq.f32 %v2334_v41  ;;  %v7232_v5 = vsel %vm2145_vm14, %v8263_v50, %v7042_v26  ;;  %v2335_v18 = vsel %vm7213_vm0, 0, %v2333_v55  ;;  %v2433_v26 = vxor.u32 2147483648, %v7170_v6 }
 0x2e0   : > { %5660 = vsinq.f32 %v2334_v41  ;;  %v7242_v58 = vpop.eup %5654  ;;  %v2638_v47 = vmul.f32 %v2637_v19, %v2635_v60  ;;  %v2538_v57 = vsub.s32 4, %v7077_v29  ;;  %v2726_v62 = vclz %v5334_v2 }
 0x2e1   : > { %5662 = vpow2.f32 %v2129_v16  ;;  %v2133_v22 = vmul.f32 1.442695, %v2123_v31  ;;  %v2135_v25 = vmul.f32 1.442695, %v2124_v24  ;;  %v8264_v35 = vand.u32 2147483647, %v6815_v1 }
 0x2e2   : > { %5664 = vpow2.f32 %v2131_v14  ;;  %v2639_v46 = vxor.u32 2147483648, %v2638_v47  ;;  %v7248_v42 = vand.u32 3, %v2335_v18  ;;  %v2539_v10 = vsel %vm2454_vm2, %v2538_v57, %v7077_v29  ;;  %v7254_v17 = vpop.eup %5656 }
 0x2e3   : > { %vm2453_vm3 = vcmp.le.f32.partialorder %v8264_v35, 0.7853982  ;;  %v5335_v59 = vadd.s32 4294967294, %v2726_v62  ;;  %v2964_v33 = vadd.s32 3, %v2335_v18  ;;  %v7259_v52 = vsel %vm8233_vm15, %v2433_v26, %v7170_v6 }
 0x2e4   : > { %v2540_v34 = vsel %vm2453_vm3, %v6815_v1, %v2537_v44  ;;  %v2541_v28 = vsel %vm2453_vm3, 0, %v2539_v10  ;;  %v8265_v49 = vand.u32 2147483647, %v6989_v7  ;;  %vm8232_vm5 = vcmp.lt.s32.totalorder %v6989_v7, 0 }
 0x2e5   : > { %5666 = vcosq.f32 %v2540_v34  ;;  %v2640_v29 = vsel %vm8232_vm5, %v2639_v46, %v2638_v47  ;;  %vm5336_vm6 = vcmp.lt.s32.totalorder %v5335_v59, 0  ;;  %v2965_v61 = vand.u32 3, %v2964_v33  ;;  %v8274_v47 = vld [vmem:[#allocation5_spill] sm:$0xff] }
 0x2e6   : > { %vm7263_vm4 = vcmp.le.f32.partialorder %v8265_v49, 0.7853982  ;;  %5668 = vsinq.f32 %v2540_v34  ;;  %v2714_v36 = vadd.s32 %v7164_v53, %v7179_v32  ;;  %v2729_v6 = vsel %vm5336_vm6, 0, %v5335_v59 }
 0x2e7   : > { %5670 = vpow2.f32 %v2133_v22  ;;  %v3172_v23 = vadd.s32 3, %v2541_v28  ;;  %v2730_v27 = vsub.s32 32, %v2729_v6  ;;  %v2734_v30 = vsub.s32 4294967266, %v2729_v6 }
 0x2e8   : > { %5672 = vpow2.f32 %v2135_v25  ;;  %vm2338_vm7 = vweird.f32 %v6794_v39  ;;  %vm2341_vm8 = vcmp.eq.s32.totalorder %v7248_v42, 0  ;;  %vm2344_vm11 = vcmp.eq.s32.totalorder %v7248_v42, 2 }
 0x2e9   : > { %v5659_v43 = vpop.eup %5658  ;;  %v2643_v16 = vsel %vm7263_vm4, %v6989_v7, %v2640_v29  ;;  %v2731_v63 = vshll.u32 %v7209_v20, %v2729_v6  ;;  %v7279_v32 = vand.u32 3, %v2541_v28  ;;  %v2732_v9 = vshrl.u32 %v2714_v36, %v2730_v27 }
 0x2ea   : > { %v5661_v38 = vpop.eup %5660  ;;  %v2345_v53 = vxor.u32 2147483648, %v5659_v43  ;;  %v2735_v37 = vadd.s32 127, %v2734_v30  ;;  %vm2970_vm9 = vcmp.eq.s32.totalorder %v2965_v61, 2  ;;  %vm2340_vm10 = vcmp.lt.s32.totalorder %v7248_v42, 2 }
 0x2eb   : > { %v7281_v31 = vpop.eup %5662  ;;  %v2342_v45 = vxor.u32 2147483648, %v5661_v38  ;;  %vm2544_vm12 = vweird.f32 %v6815_v1  ;;  %vm2967_vm13 = vcmp.eq.s32.totalorder %v2965_v61, 0  ;;  %v3173_v24 = vand.u32 3, %v3172_v23 }
 0x2ec   : > { %v7283_v13 = vpop.eup %5664  ;;  %v2972_v14 = vsel %vm2970_vm9, %v2345_v53, %v5661_v38  ;;  %v8268_v20 = vand.u32 2147483647, %v6791_v21  ;;  %5674 = vcosq.f32 %v2643_v16  ;;  %v2733_v48 = vor.u32 %v2732_v9, %v2731_v63 }
 0x2ed   : > { %v2736_v55 = vshll.u32 %v2735_v37, 23  ;;  %v2969_v50 = vsel %vm2967_vm13, %v5659_v43, %v2342_v45  ;;  %vm2660_vm2 = vcmp.lt.s32.totalorder %v7045_v12, 0  ;;  %vm2546_vm3 = vcmp.lt.s32.totalorder %v7279_v32, 2 }
 0x2ee   : > { %vm7289_vm0 = vcmp.le.f32.partialorder %v8268_v20, 0.7853982  ;;  %vm2547_vm6 = vcmp.eq.s32.totalorder %v7279_v32, 0  ;;  %vm2550_vm1 = vcmp.eq.s32.totalorder %v7279_v32, 2  ;;  %vm2966_vm9 = vcmp.lt.s32.totalorder %v2965_v61, 2 }
 0x2ef   : > { %v5667_v60 = vpop.eup %5666  ;;  %v8271_v19 = vand.u32 2147483647, %v7045_v12  ;;  %v2737_v2 = vor.u32 4788187, %v2736_v55  ;;  %v2346_v18 = vsel %vm2344_vm11, %v2345_v53, %v5661_v38  ;;  %v2973_v26 = vsel %vm2966_vm9, %v2969_v50, %v2972_v14  ;;  %v8275_v38 = vld [vmem:[#allocation6_spill] sm:$0xff] }
 0x2f0   : > { %v2229_v57 = vsub.s32 4, %v8274_v47  ;;  %v5669_v62 = vpop.eup %5668  ;;  %v2740_v22 = vcvt.s32.f32 %v2733_v48  ;;  %v2343_v25 = vsel %vm2341_vm8, %v5659_v43, %v2342_v45  ;;  %v2551_v35 = vxor.u32 2147483648, %v5667_v60 }
 0x2f1   : > { %vm7299_vm5 = vcmp.le.f32.partialorder %v8271_v19, 0.7853982  ;;  %vm3174_vm13 = vcmp.lt.s32.totalorder %v3173_v24, 2  ;;  %v7308_v46 = vpop.eup %5670  ;;  %v2738_v10 = vand.u32 2147483647, %v2737_v2  ;;  %v2548_v34 = vxor.u32 2147483648, %v5669_v62 }
 0x2f2   : > { %vm3178_vm15 = vcmp.eq.s32.totalorder %v3173_v24, 2  ;;  %v2231_v59 = vsel %vm7289_vm0, %v6791_v21, %v7232_v5  ;;  %v7314_v28 = vpop.eup %5672  ;;  %v2974_v33 = vsel %vm2338_vm7, nan, %v2973_v26  ;;  %vm3175_vm11 = vcmp.eq.s32.totalorder %v3173_v24, 0 }
 0x2f3   : > { %v3180_v49 = vsel %vm3178_vm15, %v2551_v35, %v5669_v62  ;;  %5676 = vcosq.f32 %v2231_v59  ;;  %v2741_v29 = vmul.f32 %v2740_v22, %v2738_v10  ;;  %v3177_v61 = vsel %vm3175_vm11, %v5667_v60, %v2548_v34 }
 0x2f4   : > { %v2230_v36 = vsel %vm2145_vm14, %v2229_v57, %v8274_v47  ;;  %5678 = vsinq.f32 %v2231_v59  ;;  %v2549_v6 = vsel %vm2547_vm6, %v5667_v60, %v2548_v34  ;;  %v2552_v5 = vsel %vm2550_vm1, %v2551_v35, %v5669_v62 }
 0x2f5   : > { %5680 = vsinq.f32 %v2643_v16  ;;  %v3181_v23 = vsel %vm3174_vm13, %v3177_v61, %v3180_v49  ;;  %v2742_v43 = vxor.u32 2147483648, %v2741_v29  ;;  %v2347_v27 = vsel %vm2340_vm10, %v2343_v25, %v2346_v18 }
 0x2f6   : > { %v3182_v30 = vsel %vm2544_vm12, nan, %v3181_v23  ;;  %v2435_v63 = vsub.s32 4, %v8275_v38  ;;  %v3392_v53 = vmul.f32 %v7254_v17, %v2974_v33  ;;  %v2232_v9 = vsel %vm7289_vm0, 0, %v2230_v36  ;;  %v7337_v45 = vpop.eup %5674 }
 0x2f7   : > { %v3394_v16 = vmul.f32 %v7283_v13, %v3182_v30  ;;  %v8276_v37 = vand.u32 2147483647, %v6807_v3  ;;  %v2743_v42 = vsel %vm2660_vm2, %v2742_v43, %v2741_v29  ;;  %v2553_v14 = vsel %vm2546_vm3, %v2549_v6, %v2552_v5 }
 0x2f8   : > { %vm8277_vm14 = vcmp.lt.s32.totalorder %v6807_v3, 0  ;;  %v2746_v41 = vsel %vm7299_vm5, %v7045_v12, %v2743_v42  ;;  %v2236_v50 = vand.u32 3, %v2232_v9  ;;  %v2860_v60 = vadd.s32 3, %v2232_v9 }
 0x2f9   : > { %vm2350_vm1 = vcmp.le.f32.partialorder %v8276_v37, 0.7853982  ;;  %v2436_v24 = vsel %vm8277_vm14, %v2435_v63, %v8275_v38  ;;  %v5455_v48 = vpack.c.bf16 %v3394_v16, %v3392_v53  ;;  %v2744_v19 = vsub.s32 4, %v7202_v8 }
 0x2fa   : > { %v2437_v20 = vsel %vm2350_vm1, %v6807_v3, %v7259_v52  ;;  %v2438_v55 = vsel %vm2350_vm1, 0, %v2436_v24  ;;  %v2641_v2 = vsub.s32 4, %v7144_v54  ;;  %v7355_v52 = vsel %vm2338_vm7, nan, %v2347_v27 }
 0x2fb   : > { %5682 = vcosq.f32 %v2437_v20  ;;  %5456 = vmatprep.subr.bf16.mxu1 %v5455_v48  ;;  %v3068_v32 = vadd.s32 3, %v2438_v55  ;;  %v7359_v18 = vsel %vm2544_vm12, nan, %v2553_v14  ;;  %vm2235_vm15 = vweird.f32 %v6791_v21 }
 0x2fc   : > { %5684 = vcosq.f32 %v2746_v41  ;;  %v7362_v47 = vand.u32 3, %v2438_v55  ;;  %v2861_v57 = vand.u32 3, %v2860_v60  ;;  %v2745_v62 = vsel %vm2660_vm2, %v2744_v19, %v7202_v8 }
 0x2fd   : > { %5686 = vsinq.f32 %v2746_v41  ;;  %v5677_v26 = vpop.eup %5676  ;;  %vm8278_vm8 = vcmp.lt.s32.totalorder %v6989_v7, 0  ;;  %vm2237_vm7 = vcmp.lt.s32.totalorder %v2236_v50, 2  ;;  %vm2238_vm10 = vcmp.eq.s32.totalorder %v2236_v50, 0 }
 0x2fe   : > { %5688 = vsinq.f32 %v2437_v20  ;;  %v2642_v39 = vsel %vm8278_vm8, %v2641_v2, %v7144_v54  ;;  %v5679_v22 = vpop.eup %5678  ;;  %v2242_v1 = vxor.u32 2147483648, %v5677_v26  ;;  %v7372_v25 = vsel %vm7299_vm5, 0, %v2745_v62 }
 0x2ff   : > { %v7374_v35 = vpop.eup %5680  ;;  %v2239_v10 = vxor.u32 2147483648, %v5679_v22  ;;  %vm2241_vm12 = vcmp.eq.s32.totalorder %v2236_v50, 2  ;;  %vm2866_vm0 = vcmp.eq.s32.totalorder %v2861_v57, 2  ;;  %v3069_v34 = vand.u32 3, %v3068_v32 }
 0x300   : > { %v2243_v59 = vsel %vm2241_vm12, %v2242_v1, %v5679_v22  ;;  %vm2863_vm2 = vcmp.eq.s32.totalorder %v2861_v57, 0  ;;  %v2868_v8 = vsel %vm2866_vm0, %v2242_v1, %v5679_v22  ;;  %v2644_v54 = vsel %vm7263_vm4, 0, %v2642_v39 }
 0x301   : > { %v2240_v33 = vsel %vm2238_vm10, %v5677_v26, %v2239_v10  ;;  %vm2443_vm3 = vcmp.lt.s32.totalorder %v7362_v47, 2  ;;  %vm2862_vm6 = vcmp.lt.s32.totalorder %v2861_v57, 2  ;;  %v2865_v49 = vsel %vm2863_vm2, %v5677_v26, %v2239_v10 }
 0x302   : > { %vm2750_vm5 = vweird.f32 %v7045_v12  ;;  %v3380_v44 = vadd.s32 3, %v7372_v25  ;;  %v2244_v29 = vsel %vm2237_vm7, %v2240_v33, %v2243_v59  ;;  %vm2441_vm9 = vweird.f32 %v6807_v3 }
 0x303   : > { %vm2444_vm13 = vcmp.eq.s32.totalorder %v7362_v47, 0  ;;  %vm2447_vm11 = vcmp.eq.s32.totalorder %v7362_v47, 2  ;;  %v2869_v61 = vsel %vm2862_vm6, %v2865_v49, %v2868_v8  ;;  %v2245_v36 = vsel %vm2235_vm15, nan, %v2244_v29 }
 0x304   : > { %vm3070_vm4 = vcmp.lt.s32.totalorder %v3069_v34, 2  ;;  %vm3071_vm1 = vcmp.eq.s32.totalorder %v3069_v34, 0  ;;  %v3381_v6 = vand.u32 3, %v3380_v44  ;;  %vm3074_vm14 = vcmp.eq.s32.totalorder %v3069_v34, 2 }
 0x305   : > { %v5683_v15 = vpop.eup %5682  ;;  %v2648_v43 = vand.u32 3, %v2644_v54  ;;  %v2651_v27 = vxor.u32 2147483648, %v7374_v35  ;;  %v7389_v38 = vmul.f32 %v7242_v58, %v2245_v36  ;;  %v2870_v63 = vsel %vm2235_vm15, nan, %v2869_v61  ;;  %v5368_v36 = vld [vmem:[%s8201_s6 + $0x38] sm:$0xff] }
 0x306   : > { %v5685_v5 = vpop.eup %5684  ;;  %v2448_v23 = vxor.u32 2147483648, %v5683_v15  ;;  %v2654_v16 = vxor.u32 2147483648, %v7337_v45  ;;  %vm3383_vm8 = vcmp.eq.s32.totalorder %v3381_v6, 0  ;;  %vm3386_vm7 = vcmp.eq.s32.totalorder %v3381_v6, 2 }
 0x307   : > { %v5687_v30 = vpop.eup %5686  ;;  %v2757_v53 = vxor.u32 2147483648, %v5685_v5  ;;  %vm2647_vm10 = vweird.f32 %v6989_v7  ;;  %v3276_v42 = vadd.s32 3, %v2644_v54  ;;  %v3391_v21 = vmul.f32 %v7242_v58, %v2870_v63  ;;  %v5369_v7 = vld [vmem:[%s8201_s6 + $0x40] sm:$0xff]  ;;  %v3659_v63 = vpop.permute.xlu1 %3658 }
 0x308   : > { %v5689_v9 = vpop.eup %5688  ;;  %v2754_v37 = vxor.u32 2147483648, %v5687_v30  ;;  %vm3382_vm15 = vcmp.lt.s32.totalorder %v3381_v6, 2  ;;  %vm2650_vm12 = vcmp.eq.s32.totalorder %v2648_v43, 0  ;;  %vm2653_vm0 = vcmp.eq.s32.totalorder %v2648_v43, 2  ;;  %v5372_v6 = vld [vmem:[%s8201_s6 + $0x58] sm:$0xff] }
 0x309   : > { %v2445_v14 = vxor.u32 2147483648, %v5689_v9  ;;  %v2449_v24 = vsel %vm2447_vm11, %v2448_v23, %v5689_v9  ;;  %v3076_v20 = vsel %vm3074_vm14, %v2448_v23, %v5689_v9  ;;  %v3388_v41 = vsel %vm3386_vm7, %v2757_v53, %v5687_v30  ;;  %v5362_v23 = vld [vmem:[%s8200_s5 + $0x38] sm:$0xff] }
 0x30a   : > { %v3385_v48 = vsel %vm3383_vm8, %v5685_v5, %v2754_v37  ;;  %v3277_v55 = vand.u32 3, %v3276_v42  ;;  %v2762_v10 = vmul.f32 %v7254_v17, %v7355_v52  ;;  %v2764_v3 = vmul.f32 %v7283_v13, %v7359_v18 }
 0x30b   : > { %v2446_v50 = vsel %vm2444_vm13, %v5683_v15, %v2445_v14  ;;  %v3073_v60 = vsel %vm3071_vm1, %v5683_v15, %v2445_v14  ;;  %v3389_v32 = vsel %vm3382_vm15, %v3385_v48, %v3388_v41  ;;  %v2751_v54 = vand.u32 3, %v7372_v25  ;;  %v3664_v14 = vpop.permute.xlu0 %3663 }
 0x30c   : > { %v2450_v19 = vsel %vm2443_vm3, %v2446_v50, %v2449_v24  ;;  %v3077_v2 = vsel %vm3070_vm4, %v3073_v60, %v3076_v20  ;;  %v3390_v26 = vsel %vm2750_vm5, nan, %v3389_v32  ;;  %vm3278_vm2 = vcmp.lt.s32.totalorder %v3277_v55, 2 }
 0x30d   : > { %v2451_v58 = vsel %vm2441_vm9, nan, %v2450_v19  ;;  %v3078_v57 = vsel %vm2441_vm9, nan, %v3077_v2  ;;  %v3396_v62 = vmul.f32 %v7314_v28, %v3390_v26  ;;  %vm3279_vm3 = vcmp.eq.s32.totalorder %v3277_v55, 0 }
 0x30e   : > { %v2763_v39 = vmul.f32 %v7281_v31, %v2451_v58  ;;  %v3393_v47 = vmul.f32 %v7281_v31, %v3078_v57  ;;  %vm3282_vm6 = vcmp.eq.s32.totalorder %v3277_v55, 2  ;;  %v3281_v22 = vsel %vm3279_vm3, %v7337_v45, %v2651_v27 }
 0x30f   : > { %v3284_v1 = vsel %vm3282_vm6, %v2654_v16, %v7374_v35  ;;  %v2652_v31 = vsel %vm2650_vm12, %v7337_v45, %v2651_v27  ;;  %v2655_v33 = vsel %vm2653_vm0, %v2654_v16, %v7374_v35  ;;  %v5459_v44 = vpack.c.bf16 %v2764_v3, %v2762_v10  ;;  %v5367_v45 = vld [vmem:[%s8201_s6 + $0x30] sm:$0xff]  ;;  %v5364_v27 = vld [vmem:[%s8200_s5 + $0x48] sm:$0xff] }
 0x310   : > { %v5457_v34 = vpack.c.bf16 %v3393_v47, %v3391_v21  ;;  %v3285_v59 = vsel %vm3278_vm2, %v3281_v22, %v3284_v1  ;;  %v5461_v8 = vpack.c.bf16 %v2763_v39, %v7389_v38  ;;  %vm2753_vm9 = vcmp.eq.s32.totalorder %v2751_v54, 0  ;;  %v5366_v38 = vld [vmem:[%s8200_s5 + $0x58] sm:$0xff] }
 0x311   : > { %v3286_v49 = vsel %vm2647_vm10, nan, %v3285_v59  ;;  %vm2756_vm13 = vcmp.eq.s32.totalorder %v2751_v54, 2  ;;  %vm2649_vm11 = vcmp.lt.s32.totalorder %v2648_v43, 2  ;;  %vm2752_vm4 = vcmp.lt.s32.totalorder %v2751_v54, 2  ;;  %v5363_v43 = vld [vmem:[%s8200_s5 + $0x40] sm:$0xff] }
 0x312   : > { %5458 = vmatpush1.bf16.msra.mxu1 %v5457_v34  ;;  %v2755_v17 = vsel %vm2753_vm9, %v5685_v5, %v2754_v37  ;;  %v2758_v13 = vsel %vm2756_vm13, %v2757_v53, %v5687_v30  ;;  %v2656_v52 = vsel %vm2649_vm11, %v2652_v31, %v2655_v33  ;;  %v3395_v18 = vmul.f32 %v7308_v46, %v3286_v49  ;;  %v5361_v5 = vld [vmem:[%s8200_s5 + $0x30] sm:$0xff] }
 0x313   : > { %3433 = vmatprep.subr.mxu1 %v3396_v62  ;;  %v2759_v25 = vsel %vm2752_vm4, %v2755_v17, %v2758_v13  ;;  %v2657_v29 = vsel %vm2647_vm10, nan, %v2656_v52  ;;  %vm8279_vm1 = vcmask 195584   ;;  %v8280_v15 = vmov 0.0   ;;  %v5365_v30 = vld [vmem:[%s8200_s5 + $0x50] sm:$0xff] }
 0x314   : > { %v2760_v35 = vsel %vm2750_vm5, nan, %v2759_v25  ;;  %v2765_v12 = vmul.f32 %v7308_v46, %v2657_v29  ;;  %vm8281_vm5 = vmmov %vm8279_vm1  ;;  %v5371_v46 = vld [vmem:[%s8201_s6 + $0x50] sm:$0xff] }
 0x315   : > { %v2766_v61 = vmul.f32 %v7314_v28, %v2760_v35  ;;  %vm8282_vm14 = vmmov %vm8279_vm1  ;;  %v5370_v28 = vld [vmem:[%s8201_s6 + $0x48] sm:$0xff] }
 0x316   : > { %3434 = vmatpush1.msra.mxu1 %v3395_v18  ;;  %vm8283_vm8 = vmmov %vm8279_vm1 }
 0x317   : > { %5373 = vmatmul.mubr.msk.f32.vlgmr.msra.gmra.mrb[0].mxu1 %vm8279_vm1, %v5367_v45  ;;  %5460 = vmatprep.subr.bf16.mxu1 %v5459_v44  ;;  %vm8284_vm7 = vmmov %vm8279_vm1 }
 0x318   : > { %5462 = vmatpush1.bf16.msra.mxu1 %v5461_v8  ;;  %3499 = vmatprep.mubr.f32.mxu1 %v8280_v15  ;;  %vm8285_vm10 = vmmov %vm8279_vm1 }
 0x319   : > { %3552 = vmatprep.subr.mxu1 %v2766_v61  ;;  %vm8286_vm15 = vmmov %vm8279_vm1 }
 0x31a   : > { %vm8287_vm12 = vmmov %vm8279_vm1 }
 0x31b   : > { %5374 = vmatmul.mubr.msk.f32.gmra.mrb[2].mxu1 %vm8281_vm5, %v5368_v36  ;;  %vm8288_vm0 = vmmov %vm8279_vm1 }
 0x31c   : > { %3553 = vmatpush1.msra.mxu1 %v2765_v12  ;;  %3505 = vmatprep.mubr.f32.mxu1 %v8280_v15  ;;  %vm8289_vm2 = vmmov %vm8288_vm0 }
 0x31d   : > { %vm8290_vm3 = vmmov %vm8288_vm0 }
 0x31e   : > { %vm8291_vm6 = vmmov %vm8288_vm0 }
 0x31f   : > { %5375 = vmatmul.mubr.msk.f32.gmra.mrb[4].mxu1 %vm8282_vm14, %v5369_v7 }
 0x320   : > { %3511 = vmatprep.mubr.f32.mxu1 %v8280_v15 }
 0x323   : > { %5376 = vmatmul.mubr.msk.f32.gmra.mrb[6].mxu1 %vm8283_vm8, %v5370_v28 }
 0x324   : > { %3517 = vmatprep.mubr.f32.mxu1 %v8280_v15 }
 0x327   : > { %5377 = vmatmul.mubr.msk.f32.gmra.mrb[8].mxu1 %vm8284_vm7, %v5371_v46 }
 0x328   : > { %3523 = vmatprep.mubr.f32.mxu1 %v8280_v15 }
 0x32b   : > { %5378 = vmatmul.mubr.msk.f32.gmra.mrb[10].mxu1 %vm8285_vm10, %v5372_v6 }
 0x32c   : > { %3612 = vmatprep.mubr.f32.mxu1 %v8280_v15 }
 0x32f   : > { %5379 = vmatmul.mubr.msk.f32.vlgmr.msra.gmra.mrb[0].mxu1 %vm8286_vm15, %v5361_v5 }
 0x330   : > { %3618 = vmatprep.mubr.f32.mxu1 %v8280_v15 }
 0x333   : > { %5380 = vmatmul.mubr.msk.f32.gmra.mrb[2].mxu1 %vm8287_vm12, %v5362_v23 }
 0x334   : > { %3624 = vmatprep.mubr.f32.mxu1 %v8280_v15 }
 0x337   : > { %5381 = vmatmul.mubr.msk.f32.gmra.mrb[4].mxu1 %vm8288_vm0, %v5363_v43 }
 0x338   : > { %3630 = vmatprep.mubr.f32.mxu1 %v8280_v15 }
 0x33b   : > { %5382 = vmatmul.mubr.msk.f32.gmra.mrb[6].mxu1 %vm8289_vm2, %v5364_v27 }
 0x33c   : > { %3636 = vmatprep.mubr.f32.mxu1 %v8280_v15 }
 0x33f   : > { %5383 = vmatmul.mubr.msk.f32.gmra.mrb[8].mxu1 %vm8290_vm3, %v5365_v30 }
 0x340   : > { %3642 = vmatprep.mubr.f32.mxu1 %v8280_v15 }
 0x343   : > { %5384 = vmatmul.mubr.msk.f32.gmra.mrb[10].mxu1 %vm8291_vm6, %v5366_v38 }
 0x344   : > { %5075 = vmatprep.mubr.f32.mxu1 %v8280_v15 }
 0x402   : > { %v3614_v53 = vpop.f32.mrb[0].mxu1 }
 0x403   : > { %v7495_v16 = vadd.f32 %v3659_v63, %v3614_v53  ;;  %v3616_v9 = vpop.f32.mrb[1].mxu1 }
 0x404   : > { %v7497_v37 = vadd.f32 %v3659_v63, %v3616_v9 }
 0x405   : > { %v7500_v42 = vmul.f32 5.0, %v7495_v16 }
 0x406   : > { %v7503_v24 = vmul.f32 5.0, %v7497_v37  ;;  %v3620_v20 = vpop.f32.mrb[2].mxu1 }
 0x407   : > { %v3752_v41 = vand.u32 2147483647, %v7500_v42  ;;  %v3755_v21 = vand.u32 2139095040, %v7500_v42  ;;  %v7507_v48 = vadd.f32 %v3664_v14, %v3620_v20  ;;  %v3622_v55 = vpop.f32.mrb[3].mxu1 }
 0x408   : > { %v3855_v50 = vand.u32 2147483647, %v7503_v24  ;;  %v3858_v60 = vand.u32 2139095040, %v7503_v24  ;;  %v7518_v57 = vadd.f32 %v3664_v14, %v3622_v55 }
 0x409   : > { %v3756_v32 = vshrl.u32 %v3755_v21, 23  ;;  %v3759_v19 = vand.u32 8388607, %v3752_v41  ;;  %v7516_v58 = vmul.f32 5.0, %v7507_v48 }
 0x40a   : > { %v3859_v2 = vshrl.u32 %v3858_v60, 23  ;;  %v3862_v26 = vand.u32 8388607, %v3855_v50  ;;  %v7520_v39 = vpop.f32.mrb[4].mxu1  ;;  %v7531_v31 = vmul.f32 5.0, %v7518_v57 }
 0x40b   : > { %v5391_v62 = vadd.s32 4294967169, %v3756_v32  ;;  %v3958_v22 = vand.u32 2147483647, %v7516_v58  ;;  %v7523_v1 = vpop.f32.mrb[5].mxu1  ;;  %v3760_v10 = vor.u32 8388608, %v3759_v19  ;;  %v3961_v34 = vand.u32 2139095040, %v7516_v58 }
 0x40c   : > { %v5395_v47 = vadd.s32 4294967169, %v3859_v2  ;;  %v3863_v59 = vor.u32 8388608, %v3862_v26  ;;  %v4064_v61 = vand.u32 2139095040, %v7531_v31 }
 0x40d   : > { %v3762_v3 = vadd.s32 1, %v5391_v62  ;;  %v7528_v54 = vand.u32 8388607, %v3958_v22  ;;  %v3962_v33 = vshrl.u32 %v3961_v34, 23  ;;  %v7537_v18 = vshll.u32 %v3760_v10, 8 }
 0x40e   : > { %v3865_v8 = vadd.s32 1, %v5395_v47  ;;  %v7533_v49 = vpop.f32.mrb[6].mxu1  ;;  %v7539_v25 = vshll.u32 %v3863_v59, 8 }
 0x40f   : > { %vm3763_vm9 = vcmp.gt.s32.totalorder %v3762_v3, 0  ;;  %v7535_v17 = vpop.f32.mrb[7].mxu1  ;;  %v7541_v35 = vadd.s32 4294967169, %v3962_v33  ;;  %v3966_v29 = vor.u32 8388608, %v7528_v54 }
 0x410   : > { %v3764_v44 = vsel %vm3763_vm9, %v3762_v3, 0  ;;  %vm3866_vm13 = vcmp.gt.s32.totalorder %v3865_v8, 0 }
 0x411   : > { %v3765_v13 = vshrl.u32 %v3764_v44, 5  ;;  %v3766_v52 = vand.u32 31, %v3764_v44  ;;  %v3867_v45 = vsel %vm3866_vm13, %v3865_v8, 0  ;;  %vm3754_vm13 = vcmp.lt.s32.totalorder %v7500_v42, 0 }
 0x412   : > { %v7545_v15 = vpop.f32.mrb[8].mxu1  ;;  %v7548_v7 = vshrl.u32 %v3867_v45, 5  ;;  %v3869_v28 = vand.u32 31, %v3867_v45 }
 0x413   : > { %v3767_v36 = vsub.s32 32, %v3766_v52  ;;  %v3769_v12 = vshll.u32 %v5795_v4, %v3766_v52  ;;  %v7550_v46 = vpop.f32.mrb[9].mxu1  ;;  %v3772_v6 = vshll.u32 %v8243_v40, %v3766_v52  ;;  %v3775_v5 = vshll.u32 %v8244_v11, %v3766_v52 }
 0x414   : > { %v3778_v23 = vshll.u32 %v8245_v56, %v3766_v52  ;;  %v3781_v43 = vshll.u32 %v8254_v51, %v3766_v52  ;;  %vm3784_vm11 = vcmp.lt.s32.totalorder %v3765_v13, 1  ;;  %vm3785_vm4 = vcmp.lt.s32.totalorder %v3765_v13, 2 }
 0x415   : > { %v3770_v27 = vshrl.u32 %v8243_v40, %v3767_v36  ;;  %v3773_v30 = vshrl.u32 %v8244_v11, %v3767_v36  ;;  %v3776_v38 = vshrl.u32 %v8245_v56, %v3767_v36  ;;  %v3768_v63 = vshrl.u32 %v5795_v4, %v3767_v36 }
 0x416   : > { %v3779_v53 = vshrl.u32 %v8254_v51, %v3767_v36  ;;  %v3782_v9 = vshrl.u32 %v8255_v0, %v3767_v36  ;;  %v7562_v14 = vpop.f32.mrb[10].mxu1  ;;  %v3870_v60 = vsub.s32 32, %v3869_v28  ;;  %vm3786_vm1 = vcmp.lt.s32.totalorder %v3765_v13, 3 }
 0x417   : > { %v3771_v20 = vor.u32 %v3770_v27, %v3769_v12  ;;  %v3774_v21 = vor.u32 %v3773_v30, %v3772_v6  ;;  %v3777_v55 = vor.u32 %v3776_v38, %v3775_v5  ;;  %v7564_v32 = vpop.f32.mrb[11].mxu1  ;;  %vm3787_vm5 = vcmp.lt.s32.totalorder %v3765_v13, 4 }
 0x418   : > { %v3780_v19 = vor.u32 %v3779_v53, %v3778_v23  ;;  %v3783_v2 = vor.u32 %v3782_v9, %v3781_v43  ;;  %v3872_v8 = vshll.u32 %v5795_v4, %v3869_v28  ;;  %v3873_v52 = vshrl.u32 %v8243_v40, %v3870_v60 }
 0x419   : > { %v3788_v26 = vsel %vm3784_vm11, %v3768_v63, %v3771_v20  ;;  %v3789_v62 = vsel %vm3787_vm5, %v3777_v55, 2102212464  ;;  %v3792_v47 = vsel %vm3784_vm11, %v3771_v20, %v3774_v21  ;;  %v3796_v10 = vsel %vm3784_vm11, %v3774_v21, %v3777_v55 }
 0x41a   : > { %v3790_v3 = vsel %vm3786_vm1, %v3774_v21, %v3789_v62  ;;  %v3793_v34 = vsel %vm3787_vm5, %v3780_v19, 920167782  ;;  %v3797_v59 = vsel %vm3787_vm5, %v3783_v2, 1326507024  ;;  %v3875_v45 = vshll.u32 %v8243_v40, %v3869_v28 }
 0x41b   : > { %v3794_v33 = vsel %vm3786_vm1, %v3777_v55, %v3793_v34  ;;  %v3798_v44 = vsel %vm3786_vm1, %v3780_v19, %v3797_v59  ;;  %v3791_v36 = vsel %vm3785_vm4, %v3788_v26, %v3790_v3  ;;  %v3876_v5 = vshrl.u32 %v8244_v11, %v3870_v60 }
 0x41c   : > { %v3795_v12 = vsel %vm3785_vm4, %v3792_v47, %v3794_v33  ;;  %v3799_v6 = vsel %vm3785_vm4, %v3796_v10, %v3798_v44  ;;  %v3874_v38 = vor.u32 %v3873_v52, %v3872_v8  ;;  %v3878_v53 = vshll.u32 %v8244_v11, %v3869_v28 }
 0x41d   : > { %v7577_v23 = vmul.u32.u64.low %v7537_v18, %v3799_v6  ;;  %v7578_v43 = vmul.u32.u64.high %v7537_v18, %v3799_v6, %v7577_v23  ;;  %v7581_v27 = vmul.u32.u64.low %v7537_v18, %v3795_v12  ;;  %v7582_v30 = vmul.u32.u64.high %v7537_v18, %v3795_v12, %v7581_v27 }
 0x41e   : > { %v3877_v63 = vor.u32 %v3876_v5, %v3875_v45  ;;  %v3879_v9 = vshrl.u32 %v8245_v56, %v3870_v60  ;;  %v3871_v20 = vshrl.u32 %v5795_v4, %v3870_v60  ;;  %v3881_v13 = vshll.u32 %v8245_v56, %v3869_v28 }
 0x41f   : > { %v3882_v21 = vshrl.u32 %v8254_v51, %v3870_v60  ;;  %v3885_v55 = vshrl.u32 %v8255_v0, %v3870_v60  ;;  %v3807_v19 = vmul.u32 %v7537_v18, %v3791_v36  ;;  %v3884_v26 = vshll.u32 %v8254_v51, %v3869_v28 }
 0x420   : > { %v3880_v2 = vor.u32 %v3879_v9, %v3878_v53  ;;  %vm3887_vm14 = vcmp.lt.s32.totalorder %v7548_v7, 1  ;;  %vm3809_vm8 = vc.u32 %v7578_v43, %v7581_v27  ;;  %v3810_v62 = vadd.s32 1, %v7582_v30 }
 0x421   : > { %v3883_v47 = vor.u32 %v3882_v21, %v3881_v13  ;;  %vm3888_vm7 = vcmp.lt.s32.totalorder %v7548_v7, 2  ;;  %v3886_v10 = vor.u32 %v3885_v55, %v3884_v26  ;;  %vm3889_vm10 = vcmp.lt.s32.totalorder %v7548_v7, 3 }
 0x422   : > { %vm3890_vm15 = vcmp.lt.s32.totalorder %v7548_v7, 4  ;;  %v3895_v60 = vsel %vm3887_vm14, %v3874_v38, %v3877_v63  ;;  %v3811_v18 = vsel %vm3809_vm8, %v3810_v62, %v7582_v30  ;;  %v3899_v28 = vsel %vm3887_vm14, %v3877_v63, %v3880_v2 }
 0x423   : > { %v3892_v3 = vsel %vm3890_vm15, %v3880_v2, 2102212464  ;;  %v3896_v34 = vsel %vm3890_vm15, %v3883_v47, 920167782  ;;  %v3812_v59 = vadd.s32 %v3811_v18, %v3807_v19  ;;  %v3891_v8 = vsel %vm3887_vm14, %v3871_v20, %v3874_v38 }
 0x424   : > { %v3897_v33 = vsel %vm3889_vm10, %v3880_v2, %v3896_v34  ;;  %v3900_v44 = vsel %vm3890_vm15, %v3886_v10, 1326507024  ;;  %v3893_v52 = vsel %vm3889_vm10, %v3877_v63, %v3892_v3  ;;  %v3968_v12 = vadd.s32 1, %v7541_v35 }
 0x425   : > { %v3898_v45 = vsel %vm3888_vm7, %v3895_v60, %v3897_v33  ;;  %v3901_v36 = vsel %vm3889_vm10, %v3883_v47, %v3900_v44  ;;  %v3813_v6 = vadd.s32 536870912, %v3812_v59  ;;  %v4065_v63 = vshrl.u32 %v4064_v61, 23 }
 0x426   : > { %v3902_v5 = vsel %vm3888_vm7, %v3899_v28, %v3901_v36  ;;  %v7605_v23 = vmul.u32.u64.low %v7539_v25, %v3898_v45  ;;  %v7606_v30 = vmul.u32.u64.high %v7539_v25, %v3898_v45, %v7605_v23  ;;  %vm3969_vm12 = vcmp.gt.s32.totalorder %v3968_v12, 0 }
 0x427   : > { %v7610_v38 = vmul.u32.u64.low %v7539_v25, %v3902_v5  ;;  %v7611_v53 = vmul.u32.u64.high %v7539_v25, %v3902_v5, %v7610_v38  ;;  %v7615_v9 = vshrl.u32 %v3813_v6, 30  ;;  %v3894_v35 = vsel %vm3888_vm7, %v3891_v8, %v3893_v52 }
 0x428   : > { %v3970_v20 = vsel %vm3969_vm12, %v3968_v12, 0  ;;  %v8236_v13 = vand.u32 2147483647, %v7531_v31  ;;  %v7622_v21 = vmul.f32 %v7495_v16, %v7495_v16  ;;  %v7626_v55 = vmul.f32 %v7497_v37, %v7497_v37 }
 0x429   : > { %v3972_v19 = vand.u32 31, %v3970_v20  ;;  %v7629_v2 = vadd.s32 %v7581_v27, %v7578_v43  ;;  %v3815_v61 = vshll.u32 %v7615_v9, 30  ;;  %v3913_v7 = vadd.s32 1, %v7606_v30 }
 0x42a   : > { %v7635_v26 = vshll.u32 %v3966_v29, 8  ;;  %v3910_v62 = vmul.u32 %v7539_v25, %v3894_v35  ;;  %vm3912_vm0 = vc.u32 %v7611_v53, %v7605_v23  ;;  %v5403_v37 = vadd.s32 4294967169, %v4065_v63 }
 0x42b   : > { %v3973_v16 = vsub.s32 32, %v3972_v19  ;;  %v7640_v47 = vsub.s32 %v3812_v59, %v3815_v61  ;;  %v3914_v43 = vsel %vm3912_vm0, %v3913_v7, %v7606_v30  ;;  %v7643_v27 = vshrl.u32 %v3970_v20, 5 }
 0x42c   : > { %v7647_v10 = vand.u32 8388607, %v8236_v13  ;;  %v3915_v54 = vadd.s32 %v3914_v43, %v3910_v62  ;;  %v3975_v29 = vshll.u32 %v5795_v4, %v3972_v19  ;;  %v3978_v60 = vshll.u32 %v8243_v40, %v3972_v19 }
 0x42d   : > { %v3976_v25 = vshrl.u32 %v8243_v40, %v3973_v16  ;;  %v3818_v18 = vsub.s32 0, %v7640_v47  ;;  %v3979_v3 = vshrl.u32 %v8244_v11, %v3973_v16  ;;  %v3981_v34 = vshll.u32 %v8244_v11, %v3972_v19 }
 0x42e   : > { %v3982_v28 = vshrl.u32 %v8245_v56, %v3973_v16  ;;  %v3838_v59 = vsub.s32 4, %v7615_v9  ;;  %v3916_v8 = vadd.s32 536870912, %v3915_v54  ;;  %v3984_v33 = vshll.u32 %v8245_v56, %v3972_v19 }
 0x42f   : > { %v3985_v44 = vshrl.u32 %v8254_v51, %v3973_v16  ;;  %v5392_v52 = vmin.u32 %v3818_v18, %v7640_v47  ;;  %v3977_v45 = vor.u32 %v3976_v25, %v3975_v29  ;;  %v3980_v36 = vor.u32 %v3979_v3, %v3978_v60 }
 0x430   : > { %v3983_v12 = vor.u32 %v3982_v28, %v3981_v34  ;;  %v7660_v6 = vshrl.u32 %v3916_v8, 30  ;;  %v3987_v30 = vshll.u32 %v8254_v51, %v3972_v19  ;;  %v3988_v38 = vshrl.u32 %v8255_v0, %v3973_v16 }
 0x431   : > { %v3986_v5 = vor.u32 %v3985_v44, %v3984_v33  ;;  %v3820_v63 = vclz %v5392_v52  ;;  %v3974_v35 = vshrl.u32 %v5795_v4, %v3973_v16  ;;  %vm3990_vm2 = vcmp.lt.s32.totalorder %v7643_v27, 1 }
 0x432   : > { %vm3993_vm3 = vcmp.lt.s32.totalorder %v7643_v27, 4  ;;  %v3918_v20 = vshll.u32 %v7660_v6, 30  ;;  %v3989_v61 = vor.u32 %v3988_v38, %v3987_v30  ;;  %vm3991_vm6 = vcmp.lt.s32.totalorder %v7643_v27, 2 }
 0x433   : > { %v3995_v7 = vsel %vm3993_vm3, %v3983_v12, 2102212464  ;;  %v5393_v62 = vadd.s32 4294967294, %v3820_v63  ;;  %vm3992_vm9 = vcmp.lt.s32.totalorder %v7643_v27, 3  ;;  %v3998_v19 = vsel %vm3990_vm2, %v3977_v45, %v3980_v36 }
 0x434   : > { %v3999_v43 = vsel %vm3993_vm3, %v3986_v5, 920167782  ;;  %v7675_v16 = vsub.s32 %v3915_v54, %v3918_v20  ;;  %v3994_v29 = vsel %vm3990_vm2, %v3974_v35, %v3977_v45  ;;  %v4002_v60 = vsel %vm3990_vm2, %v3980_v36, %v3983_v12 }
 0x435   : > { %v4000_v25 = vsel %vm3992_vm9, %v3983_v12, %v3999_v43  ;;  %vm5394_vm11 = vcmp.lt.s32.totalorder %v5393_v62, 0  ;;  %v3996_v18 = vsel %vm3992_vm9, %v3980_v36, %v3995_v7  ;;  %v4003_v34 = vsel %vm3993_vm3, %v3989_v61, 1326507024 }
 0x436   : > { %v4001_v3 = vsel %vm3991_vm6, %v3998_v19, %v4000_v25  ;;  %v3823_v28 = vsel %vm5394_vm11, 0, %v5393_v62  ;;  %v3921_v8 = vsub.s32 0, %v7675_v16  ;;  %v4004_v33 = vsel %vm3992_vm9, %v3986_v5, %v4003_v34  ;;  %v3669_v62 = vpop.permute.xlu1 %3668 }
 0x437   : > { %v4071_v44 = vadd.s32 1, %v5403_v37  ;;  %vm7684_vm4 = vcmp.le.f32.partialorder %v3752_v41, 0.7853982  ;;  %v3824_v52 = vsub.s32 32, %v3823_v28  ;;  %v3825_v45 = vshll.u32 %v7640_v47, %v3823_v28 }
 0x438   : > { %v3828_v36 = vsub.s32 4294967266, %v3823_v28  ;;  %v4005_v12 = vsel %vm3991_vm6, %v4002_v60, %v4004_v33  ;;  %v5396_v30 = vmin.u32 %v3921_v8, %v7675_v16  ;;  %v7704_v20 = vmul.f32 %v7507_v48, %v7507_v48 }
 0x439   : > { %v7693_v38 = vmul.u32.u64.low %v7635_v26, %v4005_v12  ;;  %v7694_v63 = vmul.u32.u64.high %v7635_v26, %v4005_v12, %v7693_v38  ;;  %vm4072_vm1 = vcmp.gt.s32.totalorder %v4071_v44, 0  ;;  %v3826_v37 = vshrl.u32 %v7629_v2, %v3824_v52 }
 0x43a   : > { %v3829_v41 = vadd.s32 127, %v3828_v36  ;;  %v7698_v5 = vmul.u32.u64.low %v7635_v26, %v4001_v3  ;;  %v7699_v35 = vmul.u32.u64.high %v7635_v26, %v4001_v3, %v7698_v5  ;;  %v3923_v47 = vclz %v5396_v30 }
 0x43b   : > { %v7708_v61 = vmul.f32 %v7518_v57, %v7518_v57  ;;  %v4073_v7 = vsel %vm4072_vm1, %v4071_v44, 0  ;;  %v3827_v19 = vor.u32 %v3826_v37, %v3825_v45  ;;  %v3997_v2 = vsel %vm3991_vm6, %v3994_v29, %v3996_v18 }
 0x43c   : > { %v3830_v43 = vshll.u32 %v3829_v41, 23  ;;  %v4075_v25 = vand.u32 31, %v4073_v7  ;;  %v5397_v60 = vadd.s32 4294967294, %v3923_v47  ;;  %vm4015_vm5 = vc.u32 %v7694_v63, %v7698_v5 }
 0x43d   : > { %v4069_v3 = vor.u32 8388608, %v7647_v10  ;;  %v3690_v48 = vadd.f32 %v3669_v62, %v7520_v39  ;;  %v3839_v57 = vsel %vm3754_vm13, %v3838_v59, %v7615_v9  ;;  %v4016_v28 = vadd.s32 1, %v7699_v35 }
 0x43e   : > { %v3831_v34 = vor.u32 4788187, %v3830_v43  ;;  %v4076_v27 = vsub.s32 32, %v4075_v25  ;;  %v3911_v29 = vadd.s32 %v7605_v23, %v7611_v53  ;;  %vm5398_vm14 = vcmp.lt.s32.totalorder %v5397_v60, 0 }
 0x43f   : > { %v4013_v18 = vmul.u32 %v7635_v26, %v3997_v2  ;;  %v7726_v10 = vadd.f32 %v3669_v62, %v7523_v1  ;;  %v3834_v8 = vcvt.s32.f32 %v3827_v19  ;;  %v3926_v33 = vsel %vm5398_vm14, 0, %v5397_v60 }
 0x440   : > { %v3832_v39 = vand.u32 2147483647, %v3831_v34  ;;  %v4017_v44 = vsel %vm4015_vm5, %v4016_v28, %v7699_v35  ;;  %v7731_v9 = vsel %vm7684_vm4, 0, %v3839_v57  ;;  %v3927_v59 = vsub.s32 32, %v3926_v33 }
 0x441   : > { %v3931_v52 = vsub.s32 4294967266, %v3926_v33  ;;  %v4018_v45 = vadd.s32 %v4017_v44, %v4013_v18  ;;  %v3928_v23 = vshll.u32 %v7675_v16, %v3926_v33  ;;  %v4079_v53 = vshrl.u32 %v8243_v40, %v4076_v27 }
 0x442   : > { %v3835_v36 = vmul.f32 %v3834_v8, %v3832_v39  ;;  %v7735_v26 = vshll.u32 %v4069_v3, 8  ;;  %v3929_v1 = vshrl.u32 %v3911_v29, %v3927_v59  ;;  %v4082_v38 = vshrl.u32 %v8244_v11, %v4076_v27 }
 0x443   : > { %v3932_v12 = vadd.s32 127, %v3931_v52  ;;  %v4019_v30 = vadd.s32 536870912, %v4018_v45  ;;  %v4078_v41 = vshll.u32 %v5795_v4, %v4075_v25  ;;  %v4081_v35 = vshll.u32 %v8243_v40, %v4075_v25 }
 0x444   : > { %v3836_v37 = vxor.u32 2147483648, %v3835_v36  ;;  %v4085_v47 = vshrl.u32 %v8245_v56, %v4076_v27  ;;  %v3930_v62 = vor.u32 %v3929_v1, %v3928_v23  ;;  %v4088_v16 = vshrl.u32 %v8254_v51, %v4076_v27 }
 0x445   : > { %v3933_v19 = vshll.u32 %v3932_v12, 23  ;;  %v4020_v43 = vshrl.u32 %v4019_v30, 30  ;;  %v4074_v2 = vshrl.u32 %v4073_v7, 5  ;;  %v4084_v60 = vshll.u32 %v8244_v11, %v4075_v25 }
 0x446   : > { %v4087_v3 = vshll.u32 %v8245_v56, %v4075_v25  ;;  %v4091_v34 = vshrl.u32 %v8255_v0, %v4076_v27  ;;  %v4080_v29 = vor.u32 %v4079_v53, %v4078_v41  ;;  %v4083_v18 = vor.u32 %v4082_v38, %v4081_v35 }
 0x447   : > { %v3934_v57 = vor.u32 4788187, %v3933_v19  ;;  %v4021_v28 = vshll.u32 %v4020_v43, 30  ;;  %v3837_v39 = vsel %vm3754_vm13, %v3836_v37, %v3835_v36  ;;  %v4086_v8 = vor.u32 %v4085_v47, %v4084_v60 }
 0x448   : > { %v4089_v33 = vor.u32 %v4088_v16, %v4087_v3  ;;  %v4090_v44 = vshll.u32 %v8254_v51, %v4075_v25  ;;  %vm3857_vm8 = vcmp.lt.s32.totalorder %v7503_v24, 0  ;;  %v3937_v59 = vcvt.s32.f32 %v3930_v62 }
 0x449   : > { %v3935_v7 = vand.u32 2147483647, %v3934_v57  ;;  %v7749_v52 = vsub.s32 %v4018_v45, %v4021_v28  ;;  %v7751_v23 = vmul.f32 %v3690_v48, %v3690_v48  ;;  %vm3960_vm7 = vcmp.lt.s32.totalorder %v7516_v58, 0 }
 0x44a   : > { %v4077_v53 = vshrl.u32 %v5795_v4, %v4076_v27  ;;  %v4092_v1 = vor.u32 %v4091_v34, %v4090_v44  ;;  %vm4093_vm10 = vcmp.lt.s32.totalorder %v4074_v2, 1  ;;  %v7755_v12 = vmul.f32 5.0, %v3690_v48 }
 0x44b   : > { %v3840_v25 = vsel %vm7684_vm4, %v7500_v42, %v3837_v39  ;;  %v3938_v36 = vmul.f32 %v3937_v59, %v3935_v7  ;;  %v4024_v30 = vsub.s32 0, %v7749_v52  ;;  %vm4096_vm15 = vcmp.lt.s32.totalorder %v4074_v2, 4 }
 0x44c   : > { %vm7763_vm12 = vcmp.le.f32.partialorder %v3855_v50, 0.7853982  ;;  %vm4095_vm0 = vcmp.lt.s32.totalorder %v4074_v2, 3  ;;  %v4098_v27 = vsel %vm4096_vm15, %v4086_v8, 2102212464  ;;  %v4101_v38 = vsel %vm4093_vm10, %v4080_v29, %v4083_v18 }
 0x44d   : > { %v4102_v48 = vsel %vm4096_vm15, %v4089_v33, 920167782  ;;  %v5400_v37 = vmin.u32 %v4024_v30, %v7749_v52  ;;  %vm4094_vm2 = vcmp.lt.s32.totalorder %v4074_v2, 2  ;;  %v4105_v41 = vsel %vm4093_vm10, %v4083_v18, %v4086_v8 }
 0x44e   : > { %v4103_v54 = vsel %vm4095_vm0, %v4086_v8, %v4102_v48  ;;  %v3939_v35 = vxor.u32 2147483648, %v3938_v36  ;;  %v4044_v47 = vsub.s32 4, %v4020_v43  ;;  %v4106_v50 = vsel %vm4096_vm15, %v4092_v1, 1326507024 }
 0x44f   : > { %v4104_v62 = vsel %vm4094_vm2, %v4101_v38, %v4103_v54  ;;  %vm7774_vm3 = vcmp.le.f32.partialorder %v3958_v22, 0.7853982  ;;  %v4026_v16 = vclz %v5400_v37  ;;  %v4097_v60 = vsel %vm4093_vm10, %v4077_v53, %v4080_v29 }
 0x450   : > { %v4099_v3 = vsel %vm4095_vm0, %v4083_v18, %v4098_v27  ;;  %v4107_v34 = vsel %vm4095_vm0, %v4089_v33, %v4106_v50  ;;  %v7783_v28 = vmul.u32.u64.low %v7735_v26, %v4104_v62  ;;  %v7784_v39 = vmul.u32.u64.high %v7735_v26, %v4104_v62, %v7783_v28 }
 0x451   : > { %v4108_v57 = vsel %vm4094_vm2, %v4105_v41, %v4107_v34  ;;  %v8235_v8 = vand.u32 2147483647, %v7755_v12  ;;  %v4014_v22 = vadd.s32 %v7698_v5, %v7694_v63  ;;  %v5401_v44 = vadd.s32 4294967294, %v4026_v16 }
 0x452   : > { %v7790_v7 = vmul.u32.u64.low %v7735_v26, %v4108_v57  ;;  %v7791_v59 = vmul.u32.u64.high %v7735_v26, %v4108_v57, %v7790_v7  ;;  %5690 = vcosq.f32 %v3840_v25  ;;  %v3940_v29 = vsel %vm3857_vm8, %v3939_v35, %v3938_v36  ;;  %v7805_v36 = vpop.permute.xlu0 %3673 }
 0x453   : > { %v4100_v18 = vsel %vm4094_vm2, %v4097_v60, %v4099_v3  ;;  %v4167_v33 = vand.u32 2139095040, %v7755_v12  ;;  %5692 = vsinq.f32 %v3840_v25  ;;  %vm5402_vm6 = vcmp.lt.s32.totalorder %v5401_v44, 0 }
 0x454   : > { %v4045_v53 = vsel %vm3960_vm7, %v4044_v47, %v4020_v43  ;;  %v7800_v63 = vmul.f32 5.0, %v7726_v10  ;;  %v4029_v5 = vsel %vm5402_vm6, 0, %v5401_v44  ;;  %v4119_v1 = vadd.s32 1, %v7784_v39 }
 0x455   : > { %v4168_v30 = vshrl.u32 %v4167_v33, 23  ;;  %v4171_v27 = vand.u32 8388607, %v8235_v8  ;;  %v3943_v2 = vsel %vm7763_vm12, %v7503_v24, %v3940_v29  ;;  %v4030_v25 = vsub.s32 32, %v4029_v5 }
 0x456   : > { %v4034_v38 = vsub.s32 4294967266, %v4029_v5  ;;  %v4116_v43 = vmul.u32 %v7735_v26, %v4100_v18  ;;  %vm4118_vm9 = vc.u32 %v7791_v59, %v7783_v28  ;;  %v8234_v37 = vand.u32 2147483647, %v7800_v63 }
 0x457   : > { %v5407_v48 = vadd.s32 4294967169, %v4168_v30  ;;  %v3692_v54 = vadd.f32 %v7805_v36, %v7533_v49  ;;  %v4031_v41 = vshll.u32 %v7749_v52, %v4029_v5  ;;  %v4032_v35 = vshrl.u32 %v4014_v22, %v4030_v25 }
 0x458   : > { %v4035_v47 = vadd.s32 127, %v4034_v38  ;;  %v4120_v62 = vsel %vm4118_vm9, %v4119_v1, %v7784_v39  ;;  %v7819_v50 = vsel %vm7774_vm3, 0, %v4045_v53  ;;  %v4172_v26 = vor.u32 8388608, %v4171_v27 }
 0x459   : > { %v4121_v16 = vadd.s32 %v4120_v62, %v4116_v43  ;;  %v4174_v60 = vadd.s32 1, %v5407_v48  ;;  %5694 = vcosq.f32 %v3943_v2  ;;  %v4033_v3 = vor.u32 %v4032_v35, %v4031_v41 }
 0x45a   : > { %v4036_v34 = vshll.u32 %v4035_v47, 23  ;;  %v4270_v57 = vand.u32 2139095040, %v7800_v63  ;;  %v7824_v49 = vand.u32 8388607, %v8234_v37  ;;  %v3710_v52 = vmul.f32 %v3692_v54, %v3692_v54 }
 0x45b   : > { %v4122_v44 = vadd.s32 536870912, %v4121_v16  ;;  %vm4175_vm13 = vcmp.gt.s32.totalorder %v4174_v60, 0  ;;  %5696 = vsinq.f32 %v3943_v2  ;;  %v7827_v22 = vadd.s32 %v7783_v28, %v7791_v59 }
 0x45c   : > { %v4037_v39 = vor.u32 4788187, %v4036_v34  ;;  %v4176_v7 = vsel %vm4175_vm13, %v4174_v60, 0  ;;  %v7829_v29 = vpop.eup %5690  ;;  %v7833_v53 = vshll.u32 %v4172_v26, 8  ;;  %v7835_v5 = vmul.f32 -5.0, %v3692_v54 }
 0x45d   : > { %v7831_v18 = vshrl.u32 %v4122_v44, 30  ;;  %v4178_v33 = vand.u32 31, %v4176_v7  ;;  %v7837_v1 = vpop.eup %5692  ;;  %v4040_v27 = vcvt.s32.f32 %v4033_v3  ;;  %v4271_v25 = vshrl.u32 %v4270_v57, 23 }
 0x45e   : > { %v4038_v30 = vand.u32 2147483647, %v4037_v39  ;;  %v3716_v2 = vadd.f32 %v3710_v52, %v7622_v21  ;;  %v4177_v59 = vshrl.u32 %v4176_v7, 5  ;;  %v7859_v37 = vadd.f32 %v7805_v36, %v7535_v17 }
 0x45f   : > { %v4124_v28 = vshll.u32 %v7831_v18, 30  ;;  %v4179_v38 = vsub.s32 32, %v4178_v33  ;;  %v4181_v41 = vshll.u32 %v5795_v4, %v4178_v33  ;;  %v4184_v35 = vshll.u32 %v8243_v40, %v4178_v33 }
 0x460   : > { %v4041_v48 = vmul.f32 %v4040_v27, %v4038_v30  ;;  %v4187_v54 = vshll.u32 %v8244_v11, %v4178_v33  ;;  %v4190_v21 = vshll.u32 %v8245_v56, %v4178_v33  ;;  %v4193_v34 = vshll.u32 %v8254_v51, %v4178_v33 }
 0x461   : > { %v7845_v47 = vsub.s32 %v4121_v16, %v4124_v28  ;;  %v4182_v62 = vshrl.u32 %v8243_v40, %v4179_v38  ;;  %v4185_v26 = vshrl.u32 %v8244_v11, %v4179_v38  ;;  %v4188_v60 = vshrl.u32 %v8245_v56, %v4179_v38 }
 0x462   : > { %v4191_v3 = vshrl.u32 %v8254_v51, %v4179_v38  ;;  %v4194_v57 = vshrl.u32 %v8255_v0, %v4179_v38  ;;  %v5411_v16 = vadd.s32 4294967169, %v4271_v25  ;;  %v4042_v8 = vxor.u32 2147483648, %v4041_v48 }
 0x463   : > { %v4127_v44 = vsub.s32 0, %v7845_v47  ;;  %v4183_v52 = vor.u32 %v4182_v62, %v4181_v41  ;;  %v4186_v39 = vor.u32 %v4185_v26, %v4184_v35  ;;  %v7855_v7 = vpop.eup %5694  ;;  %v4189_v30 = vor.u32 %v4188_v60, %v4187_v54 }
 0x464   : > { %v4192_v27 = vor.u32 %v4191_v3, %v4190_v21  ;;  %v4195_v28 = vor.u32 %v4194_v57, %v4193_v34  ;;  %v4180_v33 = vshrl.u32 %v5795_v4, %v4179_v38  ;;  %vm4196_vm11 = vcmp.lt.s32.totalorder %v4177_v59, 1 }
 0x465   : > { %v5404_v13 = vmin.u32 %v4127_v44, %v7845_v47  ;;  %v7863_v43 = vpop.eup %5696  ;;  %vm4197_vm4 = vcmp.lt.s32.totalorder %v4177_v59, 2  ;;  %vm4198_vm1 = vcmp.lt.s32.totalorder %v4177_v59, 3  ;;  %vm4199_vm5 = vcmp.lt.s32.totalorder %v4177_v59, 4 }
 0x466   : > { %v4204_v25 = vsel %vm4196_vm11, %v4183_v52, %v4186_v39  ;;  %v4200_v35 = vsel %vm4196_vm11, %v4180_v33, %v4183_v52  ;;  %v4201_v54 = vsel %vm4199_vm5, %v4189_v30, 2102212464  ;;  %v4205_v62 = vsel %vm4199_vm5, %v4192_v27, 920167782 }
 0x467   : > { %v4129_v41 = vclz %v5404_v13  ;;  %v4202_v26 = vsel %vm4198_vm1, %v4186_v39, %v4201_v54  ;;  %v4206_v21 = vsel %vm4198_vm1, %v4189_v30, %v4205_v62  ;;  %v4208_v17 = vsel %vm4196_vm11, %v4186_v39, %v4189_v30 }
 0x468   : > { %v4209_v36 = vsel %vm4199_vm5, %v4195_v28, 1326507024  ;;  %v4043_v60 = vsel %vm3960_vm7, %v4042_v8, %v4041_v48  ;;  %v4207_v38 = vsel %vm4197_vm4, %v4204_v25, %v4206_v21  ;;  %v4203_v57 = vsel %vm4197_vm4, %v4200_v35, %v4202_v26 }
 0x469   : > { %v5405_v3 = vadd.s32 4294967294, %v4129_v41  ;;  %v4210_v34 = vsel %vm4198_vm1, %v4192_v27, %v4209_v36  ;;  %v7871_v13 = vmul.u32.u64.low %v7833_v53, %v4207_v38  ;;  %v7872_v52 = vmul.u32.u64.high %v7833_v53, %v4207_v38, %v7871_v13 }
 0x46a   : > { %v4211_v44 = vsel %vm4197_vm4, %v4208_v17, %v4210_v34  ;;  %v4277_v28 = vadd.s32 1, %v5411_v16  ;;  %v7882_v8 = vsel %vm7774_vm3, %v7516_v58, %v4043_v60  ;;  %v7884_v27 = vmul.f32 9.0, %v3716_v2 }
 0x46b   : > { %vm5406_vm14 = vcmp.lt.s32.totalorder %v5405_v3, 0  ;;  %v7876_v39 = vmul.u32.u64.low %v7833_v53, %v4211_v44  ;;  %v7877_v30 = vmul.u32.u64.high %v7833_v53, %v4211_v44, %v7876_v39  ;;  %v3711_v59 = vmul.f32 %v7859_v37, %v7859_v37 }
 0x46c   : > { %v4132_v48 = vsel %vm5406_vm14, 0, %v5405_v3  ;;  %v4219_v41 = vmul.u32 %v7833_v53, %v4203_v57  ;;  %vm4278_vm7 = vcmp.gt.s32.totalorder %v4277_v28, 0  ;;  %v4222_v35 = vadd.s32 1, %v7872_v52 }
 0x46d   : > { %v4133_v33 = vsub.s32 32, %v4132_v48  ;;  %v4137_v25 = vsub.s32 4294967266, %v4132_v48  ;;  %v4279_v54 = vsel %vm4278_vm7, %v4277_v28, 0  ;;  %v3728_v16 = vsub.f32 %v7835_v5, %v7884_v27 }
 0x46e   : > { %v3717_v19 = vadd.f32 %v3711_v59, %v7626_v55  ;;  %v4134_v62 = vshll.u32 %v7845_v47, %v4132_v48  ;;  %vm4221_vm10 = vc.u32 %v7877_v30, %v7871_v13  ;;  %v7900_v53 = vmul.f32 %v7726_v10, %v7726_v10 }
 0x46f   : > { %v4135_v2 = vshrl.u32 %v7827_v22, %v4133_v33  ;;  %v4138_v26 = vadd.s32 127, %v4137_v25  ;;  %v4223_v21 = vsel %vm4221_vm10, %v4222_v35, %v7872_v52  ;;  %v4281_v17 = vand.u32 31, %v4279_v54 }
 0x470   : > { %v8298_v36 = vor.u32 8388608, %v7824_v49  ;;  %5698 = vcosq.f32 %v7882_v8  ;;  %v4224_v22 = vadd.s32 %v4223_v21, %v4219_v41  ;;  %vm4063_vm15 = vcmp.lt.s32.totalorder %v7531_v31, 0 }
 0x471   : > { %v4136_v55 = vor.u32 %v4135_v2, %v4134_v62  ;;  %v4139_v47 = vshll.u32 %v4138_v26, 23  ;;  %v4280_v3 = vshrl.u32 %v4279_v54, 5  ;;  %v4282_v38 = vsub.s32 32, %v4281_v17 }
 0x472   : > { %v7904_v60 = vshll.u32 %v8298_v36, 8  ;;  %v4284_v34 = vshll.u32 %v5795_v4, %v4281_v17  ;;  %v4287_v57 = vshll.u32 %v8243_v40, %v4281_v17  ;;  %v4225_v52 = vadd.s32 536870912, %v4224_v22 }
 0x473   : > { %v4140_v10 = vor.u32 4788187, %v4139_v47  ;;  %v4143_v44 = vcvt.s32.f32 %v4136_v55  ;;  %v4290_v49 = vshll.u32 %v8244_v11, %v4281_v17  ;;  %v8299_v39 = vand.u32 2147483647, %v7531_v31 }
 0x474   : > { %v4285_v48 = vshrl.u32 %v8243_v40, %v4282_v38  ;;  %v4288_v59 = vshrl.u32 %v8244_v11, %v4282_v38  ;;  %v4291_v33 = vshrl.u32 %v8245_v56, %v4282_v38  ;;  %v4293_v25 = vshll.u32 %v8245_v56, %v4281_v17 }
 0x475   : > { %vm7913_vm0 = vcmp.le.f32.partialorder %v8299_v39, 0.7853982  ;;  %v4141_v41 = vand.u32 2147483647, %v4140_v10  ;;  %v7921_v35 = vshrl.u32 %v4225_v52, 30  ;;  %v4294_v54 = vshrl.u32 %v8254_v51, %v4282_v38 }
 0x476   : > { %v4296_v62 = vshll.u32 %v8254_v51, %v4281_v17  ;;  %v4286_v2 = vor.u32 %v4285_v48, %v4284_v34  ;;  %v4289_v26 = vor.u32 %v4288_v59, %v4287_v57  ;;  %v4292_v21 = vor.u32 %v4291_v33, %v4290_v49 }
 0x477   : > { %v4297_v36 = vshrl.u32 %v8255_v0, %v4282_v38  ;;  %v4144_v55 = vmul.f32 %v4143_v44, %v4141_v41  ;;  %v4227_v40 = vshll.u32 %v7921_v35, 30  ;;  %v4295_v11 = vor.u32 %v4294_v54, %v4293_v25 }
 0x478   : > { %v3723_v47 = vmul.f32 9.0, %v3717_v19  ;;  %v4283_v39 = vshrl.u32 %v5795_v4, %v4282_v38  ;;  %vm4299_vm2 = vcmp.lt.s32.totalorder %v4280_v3, 1  ;;  %vm4300_vm3 = vcmp.lt.s32.totalorder %v4280_v3, 2 }
 0x479   : > { %v4298_v56 = vor.u32 %v4297_v36, %v4296_v62  ;;  %v4145_v10 = vxor.u32 2147483648, %v4144_v55  ;;  %v7928_v52 = vsub.s32 %v4224_v22, %v4227_v40  ;;  %vm4301_vm6 = vcmp.lt.s32.totalorder %v4280_v3, 3 }
 0x47a   : > { %vm4302_vm9 = vcmp.lt.s32.totalorder %v4280_v3, 4  ;;  %v4303_v51 = vsel %vm4299_vm2, %v4283_v39, %v4286_v2  ;;  %v4307_v0 = vsel %vm4299_vm2, %v4286_v2, %v4289_v26  ;;  %v7934_v57 = vpop.eup %5698  ;;  %5700 = vsinq.f32 %v7882_v8  ;;  %v3684_v39 = vpop.permute.xlu0 %3683 }
 0x47b   : > { %v4304_v17 = vsel %vm4302_vm9, %v4292_v21, 2102212464  ;;  %v4308_v34 = vsel %vm4302_vm9, %v4295_v11, 920167782  ;;  %v4146_v4 = vsel %vm4063_vm15, %v4145_v10, %v4144_v55  ;;  %v4230_v19 = vsub.s32 0, %v7928_v52 }
 0x47c   : > { %v4305_v22 = vsel %vm4301_vm6, %v4289_v26, %v4304_v17  ;;  %v4309_v38 = vsel %vm4301_vm6, %v4292_v21, %v4308_v34  ;;  %v4311_v49 = vsel %vm4299_vm2, %v4289_v26, %v4292_v21  ;;  %v3699_v48 = vmul.f32 -5.0, %v7859_v37  ;;  %v3679_v37 = vpop.permute.xlu1 %3678 }
 0x47d   : > { %v4310_v44 = vsel %vm4300_vm3, %v4307_v0, %v4309_v38  ;;  %v4149_v59 = vsel %vm7913_vm0, %v7531_v31, %v4146_v4  ;;  %v4220_v33 = vadd.s32 %v7871_v13, %v7877_v30  ;;  %v5408_v25 = vmin.u32 %v4230_v19, %v7928_v52 }
 0x47e   : > { %v4312_v41 = vsel %vm4302_vm9, %v4298_v56, 1326507024  ;;  %v4306_v54 = vsel %vm4300_vm3, %v4303_v51, %v4305_v22  ;;  %v7955_v62 = vmul.u32.u64.low %v7904_v60, %v4310_v44  ;;  %v7956_v2 = vmul.u32.u64.high %v7904_v60, %v4310_v44, %v7955_v62 }
 0x47f   : > { %v4313_v8 = vsel %vm4301_vm6, %v4295_v11, %v4312_v41  ;;  %v4232_v26 = vclz %v5408_v25  ;;  %v3734_v13 = vmul.f32 1.442695, %v3728_v16  ;;  %v3729_v30 = vsub.f32 %v3699_v48, %v3723_v47 }
 0x480   : > { %v4314_v21 = vsel %vm4300_vm3, %v4311_v49, %v4313_v8  ;;  %v3694_v40 = vadd.f32 %v3679_v37, %v7545_v15  ;;  %v3695_v11 = vadd.f32 %v3679_v37, %v7550_v46  ;;  %5702 = vcosq.f32 %v4149_v59 }
 0x481   : > { %v7964_v36 = vmul.u32.u64.low %v7904_v60, %v4314_v21  ;;  %v7965_v55 = vmul.u32.u64.high %v7904_v60, %v4314_v21, %v7964_v36  ;;  %v5409_v56 = vadd.s32 4294967294, %v4232_v26  ;;  %v4250_v10 = vsub.s32 4, %v7921_v35 }
 0x482   : > { %v4322_v3 = vmul.u32 %v7904_v60, %v4306_v54  ;;  %5704 = vsinq.f32 %v4149_v59  ;;  %v4325_v5 = vadd.s32 1, %v7956_v2  ;;  %v3712_v27 = vmul.f32 %v3694_v40, %v3694_v40 }
 0x483   : > { %v3696_v16 = vadd.f32 %v3684_v39, %v7562_v14  ;;  %vm5410_vm13 = vcmp.lt.s32.totalorder %v5409_v56, 0  ;;  %v3736_v47 = vmul.f32 1.442695, %v3729_v30  ;;  %v3713_v51 = vmul.f32 %v3695_v11, %v3695_v11 }
 0x484   : > { %v3697_v15 = vadd.f32 %v3684_v39, %v7564_v32  ;;  %v4235_v17 = vsel %vm5410_vm13, 0, %v5409_v56  ;;  %vm4324_vm11 = vc.u32 %v7965_v55, %v7955_v62  ;;  %v3700_v46 = vmul.f32 -5.0, %v3694_v40  ;;  %v7979_v14 = vpop.eup %5700 }
 0x485   : > { %v3718_v0 = vadd.f32 %v3712_v27, %v7704_v20  ;;  %vm4166_vm4 = vcmp.lt.s32.totalorder %v7755_v12, 0  ;;  %v4236_v60 = vsub.s32 32, %v4235_v17  ;;  %v4240_v34 = vsub.s32 4294967266, %v4235_v17 }
 0x486   : > { %v4326_v4 = vsel %vm4324_vm11, %v4325_v5, %v7956_v2  ;;  %v3701_v19 = vmul.f32 -5.0, %v3695_v11  ;;  %v3719_v32 = vadd.f32 %v3713_v51, %v7708_v61  ;;  %v3714_v44 = vmul.f32 %v3696_v16, %v3696_v16 }
 0x487   : > { %v4327_v22 = vadd.s32 %v4326_v4, %v4322_v3  ;;  %v3724_v38 = vmul.f32 9.0, %v3718_v0  ;;  %v4237_v49 = vshll.u32 %v7928_v52, %v4235_v17  ;;  %v4238_v48 = vshrl.u32 %v4220_v33, %v4236_v60 }
 0x488   : > { %v4241_v59 = vadd.s32 127, %v4240_v34  ;;  %v3715_v25 = vmul.f32 %v3697_v15, %v3697_v15  ;;  %v3725_v54 = vmul.f32 9.0, %v3719_v32  ;;  %v3720_v8 = vadd.f32 %v3714_v44, %v7751_v23 }
 0x489   : > { %v4328_v20 = vadd.s32 536870912, %v4327_v22  ;;  %v3730_v41 = vsub.f32 %v3700_v46, %v3724_v38  ;;  %v4239_v37 = vor.u32 %v4238_v48, %v4237_v49  ;;  %v3941_v21 = vsub.s32 4, %v7660_v6 }
 0x48a   : > { %v4242_v2 = vshll.u32 %v4241_v59, 23  ;;  %v3721_v26 = vadd.f32 %v3715_v25, %v7900_v53  ;;  %v3731_v61 = vsub.f32 %v3701_v19, %v3725_v54  ;;  %v3702_v36 = vmul.f32 -5.0, %v3696_v16  ;;  %v7988_v52 = vpop.eup %5702 }
 0x48b   : > { %v7986_v30 = vshrl.u32 %v4328_v20, 30  ;;  %v3726_v40 = vmul.f32 9.0, %v3720_v8  ;;  %v3738_v11 = vmul.f32 1.442695, %v3730_v41  ;;  %v7990_v39 = vmul.f32 -5.0, %v3697_v15 }
 0x48c   : > { %v4243_v33 = vor.u32 4788187, %v4242_v2  ;;  %v7992_v56 = vmul.f32 9.0, %v3721_v26  ;;  %v7994_v23 = vpop.eup %5704  ;;  %v3740_v53 = vmul.f32 1.442695, %v3731_v61  ;;  %v3942_v27 = vsel %vm3857_vm8, %v3941_v21, %v7660_v6 }
 0x48d   : > { %v4330_v3 = vshll.u32 %v7986_v30, 30  ;;  %v3732_v5 = vsub.f32 %v3702_v36, %v3726_v40  ;;  %v4246_v51 = vcvt.s32.f32 %v4239_v37  ;;  %5706 = vpow2.f32 %v3734_v13 }
 0x48e   : > { %v4244_v16 = vand.u32 2147483647, %v4243_v33  ;;  %v3733_v17 = vsub.f32 %v7990_v39, %v7992_v56  ;;  %v8302_v15 = vand.u32 2147483647, %v7755_v12  ;;  %v8011_v0 = vsel %vm4166_vm4, %v4250_v10, %v7921_v35 }
 0x48f   : > { %v8013_v60 = vsub.s32 %v4327_v22, %v4330_v3  ;;  %5708 = vpow2.f32 %v3736_v47  ;;  %v3944_v13 = vsel %vm7763_vm12, 0, %v3942_v27  ;;  %v4147_v34 = vsub.s32 4, %v7831_v18 }
 0x490   : > { %vm8004_vm1 = vcmp.le.f32.partialorder %v8302_v15, 0.7853982  ;;  %v4247_v6 = vmul.f32 %v4246_v51, %v4244_v16  ;;  %5710 = vpow2.f32 %v3738_v11  ;;  %v4323_v4 = vadd.s32 %v7955_v62, %v7965_v55 }
 0x491   : > { %v4333_v19 = vsub.s32 0, %v8013_v60  ;;  %5712 = vpow2.f32 %v3740_v53  ;;  %v8021_v38 = vmul.f32 1.442695, %v3732_v5  ;;  %vm3947_vm8 = vweird.f32 %v7503_v24 }
 0x492   : > { %v4248_v35 = vxor.u32 2147483648, %v4247_v6  ;;  %v3951_v10 = vxor.u32 2147483648, %v7863_v43  ;;  %v3954_v47 = vxor.u32 2147483648, %v7855_v7  ;;  %v4148_v45 = vsel %vm4063_vm15, %v4147_v34, %v7831_v18 }
 0x493   : > { %v5412_v22 = vmin.u32 %v4333_v19, %v8013_v60  ;;  %v4150_v62 = vsel %vm7913_vm0, 0, %v4148_v45  ;;  %v4573_v55 = vadd.s32 3, %v3944_v13  ;;  %v3948_v32 = vand.u32 3, %v3944_v13 }
 0x494   : > { %v4249_v44 = vsel %vm4166_vm4, %v4248_v35, %v4247_v6  ;;  %vm4153_vm12 = vweird.f32 %v7531_v31  ;;  %v4157_v49 = vxor.u32 2147483648, %v7994_v23  ;;  %v4781_v48 = vadd.s32 3, %v4150_v62 }
 0x495   : > { %v4335_v59 = vclz %v5412_v22  ;;  %v4160_v25 = vxor.u32 2147483648, %v7988_v52  ;;  %v4574_v20 = vand.u32 3, %v4573_v55  ;;  %v4154_v18 = vand.u32 3, %v4150_v62 }
 0x496   : > { %v4252_v28 = vsel %vm8004_vm1, %v7755_v12, %v4249_v44  ;;  %v4782_v41 = vand.u32 3, %v4781_v48  ;;  %vm3949_vm5 = vcmp.lt.s32.totalorder %v3948_v32, 2  ;;  %vm3950_vm14 = vcmp.eq.s32.totalorder %v3948_v32, 0 }
 0x497   : > { %v5413_v54 = vadd.s32 4294967294, %v4335_v59  ;;  %vm4575_vm7 = vcmp.lt.s32.totalorder %v4574_v20, 2  ;;  %vm4576_vm10 = vcmp.eq.s32.totalorder %v4574_v20, 0  ;;  %vm3953_vm15 = vcmp.eq.s32.totalorder %v3948_v32, 2  ;;  %v8040_v8 = vpop.eup %5706 }
 0x498   : > { %v4578_v37 = vsel %vm4576_vm10, %v7855_v7, %v3951_v10  ;;  %vm4579_vm0 = vcmp.eq.s32.totalorder %v4574_v20, 2  ;;  %vm4783_vm2 = vcmp.lt.s32.totalorder %v4782_v41, 2  ;;  %vm4784_vm3 = vcmp.eq.s32.totalorder %v4782_v41, 0 }
 0x499   : > { %v5709_v2 = vpop.eup %5708  ;;  %vm5414_vm6 = vcmp.lt.s32.totalorder %v5413_v54, 0  ;;  %v4581_v26 = vsel %vm4579_vm0, %v3954_v47, %v7863_v43  ;;  %v4786_v21 = vsel %vm4784_vm3, %v7988_v52, %v4157_v49  ;;  %vm4787_vm9 = vcmp.eq.s32.totalorder %v4782_v41, 2 }
 0x49a   : > { %v8045_v61 = vpop.eup %5710  ;;  %v4338_v36 = vsel %vm5414_vm6, 0, %v5413_v54  ;;  %v4582_v40 = vsel %vm4575_vm7, %v4578_v37, %v4581_v26  ;;  %v4789_v33 = vsel %vm4787_vm9, %v4160_v25, %v7994_v23  ;;  %v3952_v11 = vsel %vm3950_vm14, %v7855_v7, %v3951_v10 }
 0x49b   : > { %v5713_v3 = vpop.eup %5712  ;;  %v4339_v53 = vsub.s32 32, %v4338_v36  ;;  %v4340_v5 = vshll.u32 %v8013_v60, %v4338_v36  ;;  %v4343_v27 = vsub.s32 4294967266, %v4338_v36  ;;  %v4583_v16 = vsel %vm3947_vm8, nan, %v4582_v40 }
 0x49c   : > { %v4790_v51 = vsel %vm4783_vm2, %v4786_v21, %v4789_v33  ;;  %v5001_v15 = vmul.f32 %v5709_v2, %v4583_v16  ;;  %v3955_v6 = vsel %vm3953_vm15, %v3954_v47, %v7863_v43  ;;  %vm4155_vm13 = vcmp.lt.s32.totalorder %v4154_v18, 2 }
 0x49d   : > { %v4341_v13 = vshrl.u32 %v4323_v4, %v4339_v53  ;;  %v4344_v34 = vadd.s32 127, %v4343_v27  ;;  %v4791_v7 = vsel %vm4153_vm12, nan, %v4790_v51  ;;  %v3956_v19 = vsel %vm3949_vm5, %v3952_v11, %v3955_v6 }
 0x49e   : > { %v5003_v35 = vmul.f32 %v5713_v3, %v4791_v7  ;;  %v3957_v60 = vsel %vm3947_vm8, nan, %v3956_v19  ;;  %vm4156_vm11 = vcmp.eq.s32.totalorder %v4154_v18, 0  ;;  %vm4159_vm4 = vcmp.eq.s32.totalorder %v4154_v18, 2 }
 0x49f   : > { %v4342_v10 = vor.u32 %v4341_v13, %v4340_v5  ;;  %v4345_v45 = vshll.u32 %v4344_v34, 23  ;;  %v4158_v22 = vsel %vm4156_vm11, %v7988_v52, %v4157_v49  ;;  %v4161_v43 = vsel %vm4159_vm4, %v4160_v25, %v7994_v23 }
 0x4a0   : > { %5714 = vcosq.f32 %v4252_v28  ;;  %vm4269_vm14 = vcmp.lt.s32.totalorder %v7800_v63, 0  ;;  %v8067_v4 = vmul.f32 1.442695, %v3733_v17  ;;  %v5463_v47 = vpack.c.bf16 %v5003_v35, %v5001_v15 }
 0x4a1   : > { %v4162_v24 = vsel %vm4155_vm13, %v4158_v22, %v4161_v43  ;;  %5716 = vsinq.f32 %v4252_v28  ;;  %v8305_v62 = vand.u32 2147483647, %v7800_v63  ;;  %v4346_v52 = vor.u32 4788187, %v4345_v45 }
 0x4a2   : > { %v4163_v23 = vsel %vm4153_vm12, nan, %v4162_v24  ;;  %v4371_v32 = vmul.f32 %v5709_v2, %v3957_v60  ;;  %vm3844_vm5 = vweird.f32 %v7500_v42  ;;  %v4349_v39 = vcvt.s32.f32 %v4342_v10  ;;  %5464 = vmatprep.subr.bf16.mxu1 %v5463_v47 }
 0x4a3   : > { %vm8072_vm8 = vcmp.le.f32.partialorder %v8305_v62, 0.7853982  ;;  %v4373_v56 = vmul.f32 %v5713_v3, %v4163_v23  ;;  %v3848_v17 = vxor.u32 2147483648, %v7837_v1  ;;  %v3851_v44 = vxor.u32 2147483648, %v7829_v29 }
 0x4a4   : > { %v4347_v49 = vand.u32 2147483647, %v4346_v52  ;;  %vm4050_vm7 = vweird.f32 %v7516_v58  ;;  %v4469_v48 = vadd.s32 3, %v7731_v9  ;;  %v4677_v59 = vadd.s32 3, %v7819_v50 }
 0x4a5   : > { %v3845_v31 = vand.u32 3, %v7731_v9  ;;  %v5467_v25 = vpack.c.bf16 %v4373_v56, %v4371_v32  ;;  %v4054_v20 = vxor.u32 2147483648, %v7979_v14  ;;  %v4057_v18 = vxor.u32 2147483648, %v7934_v57 }
 0x4a6   : > { %v4051_v28 = vand.u32 3, %v7819_v50  ;;  %v4350_v41 = vmul.f32 %v4349_v39, %v4347_v49  ;;  %v4470_v54 = vand.u32 3, %v4469_v48  ;;  %v4678_v37 = vand.u32 3, %v4677_v59 }
 0x4a7   : > { %v4353_v2 = vsub.s32 4, %v7986_v30  ;;  %5468 = vmatprep.subr.bf16.mxu0 %v5467_v25  ;;  %vm3846_vm12 = vcmp.lt.s32.totalorder %v3845_v31, 2  ;;  %vm3847_vm10 = vcmp.eq.s32.totalorder %v3845_v31, 0  ;;  %vm3850_vm15 = vcmp.eq.s32.totalorder %v3845_v31, 2 }
 0x4a8   : > { %vm4053_vm0 = vcmp.eq.s32.totalorder %v4051_v28, 0  ;;  %v4351_v26 = vxor.u32 2147483648, %v4350_v41  ;;  %vm4471_vm2 = vcmp.lt.s32.totalorder %v4470_v54, 2  ;;  %vm4472_vm3 = vcmp.eq.s32.totalorder %v4470_v54, 0 }
 0x4a9   : > { %vm4475_vm6 = vcmp.eq.s32.totalorder %v4470_v54, 2  ;;  %v4474_v9 = vsel %vm4472_vm3, %v7829_v29, %v3848_v17  ;;  %vm4679_vm9 = vcmp.lt.s32.totalorder %v4678_v37, 2  ;;  %vm4680_vm13 = vcmp.eq.s32.totalorder %v4678_v37, 0 }
 0x4aa   : > { %v4477_v21 = vsel %vm4475_vm6, %v3851_v44, %v7837_v1  ;;  %v4352_v50 = vsel %vm4269_vm14, %v4351_v26, %v4350_v41  ;;  %v4682_v40 = vsel %vm4680_vm13, %v7934_v57, %v4054_v20  ;;  %vm4683_vm11 = vcmp.eq.s32.totalorder %v4678_v37, 2  ;;  %v5715_v33 = vpop.eup %5714 }
 0x4ab   : > { %v4478_v36 = vsel %vm4471_vm2, %v4474_v9, %v4477_v21  ;;  %v4355_v11 = vsel %vm8072_vm8, %v7800_v63, %v4352_v50  ;;  %v4685_v53 = vsel %vm4683_vm11, %v4057_v18, %v7979_v14  ;;  %v3849_v5 = vsel %vm3847_vm10, %v7829_v29, %v3848_v17  ;;  %v5717_v27 = vpop.eup %5716  ;;  %v5007_v21 = vld [vmem:[%s8204_s9] sm:$0xff] }
 0x4ac   : > { %v4479_v3 = vsel %vm3844_vm5, nan, %v4478_v36  ;;  %5718 = vcosq.f32 %v4355_v11  ;;  %v4686_v16 = vsel %vm4679_vm9, %v4682_v40, %v4685_v53  ;;  %v3852_v15 = vsel %vm3850_vm15, %v3851_v44, %v7837_v1 }
 0x4ad   : > { %v5000_v51 = vmul.f32 %v8040_v8, %v4479_v3  ;;  %5720 = vsinq.f32 %v4355_v11  ;;  %v4687_v6 = vsel %vm4050_vm7, nan, %v4686_v16  ;;  %v3853_v13 = vsel %vm3846_vm12, %v3849_v5, %v3852_v15  ;;  %v5160_v11 = vpop.permute.xlu1 %5159 }
 0x4ae   : > { %v4055_v34 = vsel %vm4053_vm0, %v7934_v57, %v4054_v20  ;;  %v5002_v7 = vmul.f32 %v8045_v61, %v4687_v6  ;;  %v3854_v29 = vsel %vm3844_vm5, nan, %v3853_v13  ;;  %vm4056_vm4 = vcmp.eq.s32.totalorder %v4051_v28, 2 }
 0x4af   : > { %v4354_v19 = vsel %vm4269_vm14, %v4353_v2, %v7986_v30  ;;  %vm4052_vm10 = vcmp.lt.s32.totalorder %v4051_v28, 2  ;;  %v4058_v1 = vsel %vm4056_vm4, %v4057_v18, %v7979_v14  ;;  %v4253_v57 = vsel %vm8004_vm1, 0, %v8011_v0 }
 0x4b0   : > { %v4356_v35 = vsel %vm8072_vm8, 0, %v4354_v19  ;;  %v5465_v60 = vpack.c.bf16 %v5002_v7, %v5000_v51  ;;  %v4059_v10 = vsel %vm4052_vm10, %v4055_v34, %v4058_v1  ;;  %5722 = vpow2.f32 %v8067_v4 }
 0x4b1   : > { %v4989_v45 = vadd.s32 3, %v4356_v35  ;;  %v4360_v42 = vand.u32 3, %v4356_v35  ;;  %v4060_v22 = vsel %vm4050_vm7, nan, %v4059_v10  ;;  %v4370_v30 = vmul.f32 %v8040_v8, %v3854_v29 }
 0x4b2   : > { %5466 = vmatpush1.bf16.msra.mxu1 %v5465_v60  ;;  %v4372_v14 = vmul.f32 %v8045_v61, %v4060_v22  ;;  %v4260_v47 = vxor.u32 2147483648, %v5717_v27  ;;  %v4263_v24 = vxor.u32 2147483648, %v5715_v33  ;;  %5724 = vpow2.f32 %v8021_v38 }
 0x4b3   : > { %v4990_v43 = vand.u32 3, %v4989_v45  ;;  %v4885_v46 = vadd.s32 3, %v4253_v57  ;;  %v4257_v0 = vand.u32 3, %v4253_v57  ;;  %vm4359_vm1 = vweird.f32 %v7800_v63 }
 0x4b4   : > { %v5469_v62 = vpack.c.bf16 %v4372_v14, %v4370_v30  ;;  %vm4362_vm14 = vcmp.eq.s32.totalorder %v4360_v42, 0  ;;  %vm4256_vm8 = vweird.f32 %v7755_v12  ;;  %vm4365_vm5 = vcmp.eq.s32.totalorder %v4360_v42, 2  ;;  %v5006_v12 = vld [vmem:[%s8203_s8] sm:$0xff] }
 0x4b5   : > { %v4886_v58 = vand.u32 3, %v4885_v46  ;;  %vm4259_vm7 = vcmp.eq.s32.totalorder %v4257_v0, 0  ;;  %vm4262_vm12 = vcmp.eq.s32.totalorder %v4257_v0, 2  ;;  %vm4995_vm15 = vcmp.eq.s32.totalorder %v4990_v43, 2 }
 0x4b6   : > { %v5719_v8 = vpop.eup %5718  ;;  %5470 = vmatpush1.bf16.msra.mxu0 %v5469_v62  ;;  %vm4258_vm0 = vcmp.lt.s32.totalorder %v4257_v0, 2  ;;  %v4261_v61 = vsel %vm4259_vm7, %v5715_v33, %v4260_v47  ;;  %v4264_v4 = vsel %vm4262_vm12, %v4263_v24, %v5717_v27  ;;  %vm4992_vm9 = vcmp.eq.s32.totalorder %v4990_v43, 0 }
 0x4b7   : > { %v5721_v55 = vpop.eup %5720  ;;  %v4366_v38 = vxor.u32 2147483648, %v5719_v8  ;;  %vm4887_vm2 = vcmp.lt.s32.totalorder %v4886_v58, 2  ;;  %vm4888_vm3 = vcmp.eq.s32.totalorder %v4886_v58, 0  ;;  %vm4891_vm6 = vcmp.eq.s32.totalorder %v4886_v58, 2 }
 0x4b8   : > { %v4363_v52 = vxor.u32 2147483648, %v5721_v55  ;;  %v4890_v23 = vsel %vm4888_vm3, %v5715_v33, %v4260_v47  ;;  %v4893_v32 = vsel %vm4891_vm6, %v4263_v24, %v5717_v27  ;;  %v4265_v39 = vsel %vm4258_vm0, %v4261_v61, %v4264_v4 }
 0x4b9   : > { %v4997_v56 = vsel %vm4995_vm15, %v4366_v38, %v5721_v55  ;;  %v4367_v17 = vsel %vm4365_vm5, %v4366_v38, %v5721_v55  ;;  %v4894_v44 = vsel %vm4887_vm2, %v4890_v23, %v4893_v32  ;;  %vm4991_vm13 = vcmp.lt.s32.totalorder %v4990_v43, 2 }
 0x4ba   : > { %v4994_v49 = vsel %vm4992_vm9, %v5719_v8, %v4363_v52  ;;  %vm4361_vm11 = vcmp.lt.s32.totalorder %v4360_v42, 2  ;;  %v4364_v48 = vsel %vm4362_vm14, %v5719_v8, %v4363_v52  ;;  %v5723_v59 = vpop.eup %5722  ;;  %v4895_v20 = vsel %vm4256_vm8, nan, %v4894_v44 }
 0x4bb   : > { %v4998_v31 = vsel %vm4991_vm13, %v4994_v49, %v4997_v56  ;;  %v4368_v25 = vsel %vm4361_vm11, %v4364_v48, %v4367_v17  ;;  %v4266_v18 = vsel %vm4256_vm8, nan, %v4265_v39  ;;  %vm8308_vm4 = vcmask 195584  }
 0x4bc   : > { %v4999_v28 = vsel %vm4359_vm1, nan, %v4998_v31  ;;  %v4369_v41 = vsel %vm4359_vm1, nan, %v4368_v25  ;;  %v5725_v54 = vpop.eup %5724  ;;  %vm8309_vm10 = vmmov %vm8308_vm4 }
 0x4bd   : > { %v5005_v37 = vmul.f32 %v5723_v59, %v4999_v28  ;;  %v4375_v2 = vmul.f32 %v5723_v59, %v4369_v41  ;;  %v5004_v26 = vmul.f32 %v5725_v54, %v4895_v20  ;;  %v4374_v9 = vmul.f32 %v5725_v54, %v4266_v18 }
 0x4bf   : > { %5015 = vmatprep.subr.mxu1 %v5005_v37  ;;  %5089 = vmatprep.subr.mxu0 %v4375_v2 }
 0x4c0   : > { %5016 = vmatpush1.msra.mxu1 %v5004_v26  ;;  %5090 = vmatpush1.msra.mxu0 %v4374_v9 }
 0x4c1   : > { %5439 = vmatmul.mubr.msk.f32.vlgmr.msra.gmra.mrb[12].mxu1 %vm8308_vm4, %v5007_v21  ;;  %5440 = vmatmul.mubr.msk.f32.vlgmr.msra.gmra.mrb[12].mxu0 %vm8309_vm10, %v5006_v12 }
 0x594   : > { %v5077_v63 = vpop.f32.mrb[12].mxu1  ;;  %v5151_v50 = vpop.f32.mrb[12].mxu0 }
 0x595   : > { %v5152_v36 = vadd.f32 %v5151_v50, %v5077_v63  ;;  %v5079_v40 = vpop.f32.mrb[13].mxu1  ;;  %v5153_v33 = vpop.f32.mrb[13].mxu0 }
 0x596   : > { %v5154_v3 = vadd.f32 %v5153_v33, %v5079_v40 }
 0x597   : > { %v5162_v53 = vadd.f32 %v5160_v11, %v5152_v36 }
 0x598   : > { %v5163_v5 = vadd.f32 %v5160_v11, %v5154_v3 }
 0x599   : > { %5164 = vst [vmem:[%s392_s16] sm:$0xff] %v5162_v53 }
 0x59a   : > { %5165 = vst [vmem:[%s392_s16 + $0x8] sm:$0xff] %v5163_v5 }
 0x59b   : > { %5739 = shalt.err (!%p5736_p3)
}
 0x59c   : > { %s5740_s13 = scalar_lea.hbm %s8153_s29, 256  ;;  %s5744_s24 = scalar_lea.hbm %s8206_s11, 512 }
 0x59d   : > { %p5741_p4 = scmp.ne.s32.totalorder %s8153_s29, %s5740_s13  ;;  %p5745_p9 = scmp.lt.u32.totalorder %s8153_s29, %s8206_s11 }
 0x59e   : > { %p5746_p10 = scmp.lt.u32.totalorder %s5744_s24, %s5740_s13  ;;  %p5748_p12 = scmp.lt.u32.totalorder %s5740_s13, %s8153_s29 }
 0x59f   : > { %p5742_p7 = pnand %p5741_p4, %p5897_p5 }
 0x5a0   : > { %p5747_p11 = por %p5746_p10, %p5745_p9 }
 0x5a1   : > { %p5743_p8 = pneg %p5742_p7 }
 0x5a2   : > { %p5749_p13 = por %p5748_p12, %p5747_p11 }
 0x5a4   : > { %p5750_p0 = pnand %p5749_p13, %p5743_p8 }
 0x5a6   : > { %5753 = shalt.err (!%p5750_p0)
}
 0x5a7   : > { %5569 = dma.vmem_to_hbm [thread:$0]  (%p5897_p5), %s8155_s22, 256, %s8153_s29, %s5167_s30  }
 0x5a8 PF: > { %p5575_p1 = scmp.ge.s32.totalorder %s5788_s20, 2  ;;  %s5193_s0 = sand.u32 1, %s5776_s17  }
 0x5a9   : > { %s5194_s21 = scalar_lea.sflag [#allocation3], %s5193_s0 }
 0x5aa   : > { %p5572_p2 = pnand %p5575_p1, %p5901_p6 }
 0x5ac   : > { %5771 = dma.done.wait (!%p5572_p2), %s5194_s21, 256  }
 0x5ad   : > { %5773 = vsyncadd (!%p5572_p2), %s5194_s21, 4294967040  ;;  %p21_p3 = scmp.ge.s32.totalorder %s5884_s23, 4   ;;  %s8310_s17 = smov %s5780_s18 }
 0x5ae   : > { %s8311_s18 = smov %s5784_s19  ;;  %s8312_s19 = smov %s5895_s26 }
 0x5af   : > { %s8313_s20 = smov %s5884_s23  ;;  %23 = sbr.rel (!%p21_p3) target bundleno = 5 (0x5), region = 105 }
 0x5b6   :  { %5199 = vsyncpa [#allocation3], 1 }
 0x5b7   :  { %5201 = vsyncpa [#allocation3 + $0x1], 1 }

</bundles_post_ra>
